<compile_context>
chip_gen: v6e
topology: v6e:2x2x1
jax: 0.10.0
libtpu: 0.0.40
codegen_flags: <defaults>
</compile_context>

<pallas_src>
import functools

import jax
import jax.numpy as jnp
from jax.experimental import pallas as pl
from jax.experimental.pallas import tpu as pltpu

EPS = 1e-5


def _round_up(x, m):
    return ((x + m - 1) // m) * m


def _layernorm(x, gamma, beta):
    mean = jnp.mean(x, axis=-1, keepdims=True)
    var = jnp.mean((x - mean) * (x - mean), axis=-1, keepdims=True)
    return (x - mean) * jax.lax.rsqrt(var + EPS) * gamma + beta


def regressor_kernel(
    x_ref,                                   # [tb, tk]   flattened pixel tile (bf16)
    wenc_ref,                                # [tk, 1024] encoder weight tile (bf16)
    benc_ref,                                # [1, 1024]
    w1_ref, b1_ref, g1_ref, be1_ref,         # 1024->512 + LayerNorm(512)
    w2_ref, b2_ref, g2_ref, be2_ref,         # 512->256  + LayerNorm(256)
    wh_ref, bh_ref,                          # fused head 256->OUT_W (lane-dense)
    out_ref,                                 # [tb, OUT_W] fused output
    acc_ref,                                 # VMEM scratch [tb, 1024] f32
    *, K,
):
    k = pl.program_id(1)

    @pl.when(k == 0)
    def _():
        acc_ref[...] = jnp.zeros_like(acc_ref)

    # --- synthetic encoder: accumulate pooled_output over Din tiles (bf16 MXU,
    #     f32 accumulation) ---
    acc_ref[...] += jnp.dot(
        x_ref[...], wenc_ref[...], preferred_element_type=jnp.float32)

    @pl.when(k == pl.num_programs(1) - 1)
    def _():
        pooled = acc_ref[...] + benc_ref[...]

        # --- head block 1: Linear(1024,512) + LayerNorm + ReLU (+Dropout eval) ---
        h = jnp.dot(pooled, w1_ref[...], preferred_element_type=jnp.float32)
        h = h + b1_ref[...]
        h = _layernorm(h, g1_ref[...], be1_ref[...])
        h = jnp.maximum(h, 0.0)

        # --- head block 2: Linear(512,256) + LayerNorm + ReLU (+Dropout eval) ---
        h = jnp.dot(h, w2_ref[...], preferred_element_type=jnp.float32)
        h = h + b2_ref[...]
        h = _layernorm(h, g2_ref[...], be2_ref[...])
        h = jnp.maximum(h, 0.0)

        # --- fused lane-dense output head: [pi logits | mu | sigma logits | pad] ---
        z = jnp.dot(h, wh_ref[...], preferred_element_type=jnp.float32) + bh_ref[...]
        tb, outw = z.shape
        col = jax.lax.broadcasted_iota(jnp.int32, (tb, outw), 1)
        is_pi = col < K
        is_sig = jnp.logical_and(col >= 3 * K, col < 4 * K)

        # softmax over the K pi columns only (pad/mu/sigma columns masked out).
        # Exact divide: this epilogue runs once per batch tile, so the exact
        # reciprocal costs nothing and keeps row sums == 1 to f32 precision.
        neg = jnp.float32(-1e30)
        logits = jnp.where(is_pi, z, neg)
        m = jnp.max(logits, axis=-1, keepdims=True)
        e = jnp.exp(logits - m)                       # masked cols -> exp(-huge) = 0
        denom = jnp.sum(e, axis=-1, keepdims=True)
        pi_vals = e / denom

        # sigma = exp(logits) on its columns (inputs masked to 0 elsewhere to
        # avoid spurious overflow)
        sig_vals = jnp.exp(jnp.where(is_sig, z, 0.0))

        out = jnp.where(is_pi, pi_vals, z)            # mu (and pad) columns keep z
        out = jnp.where(is_sig, sig_vals, out)
        out_ref[...] = out


def init_params(key, din, K):
    """Deterministic init. Linear weights stored as (in, out); PyTorch-style
    uniform(-1/sqrt(fan_in), 1/sqrt(fan_in)); LayerNorm gamma=1, beta=0."""
    def linear(k, fan_in, fan_out):
        kw, kb = jax.random.split(k)
        bound = 1.0 / jnp.sqrt(jnp.float32(fan_in))
        w = jax.random.uniform(kw, (fan_in, fan_out), jnp.float32, -bound, bound)
        b = jax.random.uniform(kb, (1, fan_out), jnp.float32, -bound, bound)
        return w, b

    keys = jax.random.split(key, 6)
    wenc, benc = linear(keys[0], din, 1024)
    w1, b1 = linear(keys[1], 1024, 512)
    w2, b2 = linear(keys[2], 512, 256)
    wpi, bpi = linear(keys[3], 256, K)
    wmu, bmu = linear(keys[4], 256, 2 * K)
    wsg, bsg = linear(keys[5], 256, K)
    g1 = jnp.ones((1, 512), jnp.float32)
    be1 = jnp.zeros((1, 512), jnp.float32)
    g2 = jnp.ones((1, 256), jnp.float32)
    be2 = jnp.zeros((1, 256), jnp.float32)
    return dict(wenc=wenc, benc=benc, w1=w1, b1=b1, g1=g1, be1=be1,
                w2=w2, b2=b2, g2=g2, be2=be2,
                wpi=wpi, bpi=bpi, wmu=wmu, bmu=bmu, wsg=wsg, bsg=bsg)


def prepare_params(params, K, *, tk=2048):
    """One-time parameter prep (hoisted out of the per-call wrapper):
       * zero-pad wenc to a tk multiple along Din and cast to bf16,
       * fuse the pi/mu/sigma heads into one lane-dense [256, OUT_W] weight."""
    din = params["wenc"].shape[0]
    tk = min(tk, _round_up(din, 512))          # don't over-pad tiny Din
    din_pad = _round_up(din, tk)

    wenc = jnp.zeros((din_pad, 1024), jnp.float32).at[:din, :].set(params["wenc"])
    wenc = wenc.astype(jnp.bfloat16)           # halve the dominant HBM stream

    out_w = max(128, _round_up(4 * K, 128))
    wh = jnp.zeros((256, out_w), jnp.float32)
    wh = wh.at[:, 0:K].set(params["wpi"])
    wh = wh.at[:, K:3 * K].set(params["wmu"])
    wh = wh.at[:, 3 * K:4 * K].set(params["wsg"])
    bh = jnp.zeros((1, out_w), jnp.float32)
    bh = bh.at[:, 0:K].set(params["bpi"])
    bh = bh.at[:, K:3 * K].set(params["bmu"])
    bh = bh.at[:, 3 * K:4 * K].set(params["bsg"])

    return dict(
        wenc=wenc, benc=params["benc"],
        w1=params["w1"], b1=params["b1"], g1=params["g1"], be1=params["be1"],
        w2=params["w2"], b2=params["b2"], g2=params["g2"], be2=params["be2"],
        wh=wh, bh=bh,
        din=din, din_pad=din_pad, tk=tk, out_w=out_w, K=K,
    )


def street_clip_regressor(pixel_values, prep):
    """pixel_values: [B, C, H, W] float32 (NCHW). Returns (pi, mu, sigma)."""
    K = prep["K"]
    din, din_pad, tk, out_w = prep["din"], prep["din_pad"], prep["tk"], prep["out_w"]

    B = pixel_values.shape[0]
    x_flat = pixel_values.reshape(B, -1)
    assert x_flat.shape[1] == din

    # ---- pad batch (MXU M / sublane) and cast x to bf16 ----
    b_pad = _round_up(max(B, 8), 8)
    tb = min(b_pad, 512)                       # fewer wenc re-streams for large B
    b_pad = _round_up(b_pad, tb)

    x_p = jnp.zeros((b_pad, din_pad), jnp.bfloat16)
    x_p = x_p.at[:B, :din].set(x_flat.astype(jnp.bfloat16))

    grid = (b_pad // tb, din_pad // tk)

    const = lambda shape: pl.BlockSpec(shape, lambda i, k: (0, 0))

    in_specs = [
        pl.BlockSpec((tb, tk), lambda i, k: (i, k)),      # x tile (bf16)
        pl.BlockSpec((tk, 1024), lambda i, k: (k, 0)),    # wenc tile (streamed, bf16)
        const((1, 1024)),                                 # benc
        const((1024, 512)), const((1, 512)), const((1, 512)), const((1, 512)),
        const((512, 256)), const((1, 256)), const((1, 256)), const((1, 256)),
        const((256, out_w)), const((1, out_w)),           # fused head
    ]
    out_spec = pl.BlockSpec((tb, out_w), lambda i, k: (i, 0))

    # Memory-bound cost hint for XLA's scheduler.
    n_btiles = b_pad // tb
    head_bytes = 4 * (1024 * 512 + 512 * 256 + 256 * out_w + 1024 + 4 * 512 + 4 * 256 + out_w)
    bytes_accessed = (
        n_btiles * din_pad * 1024 * 2        # wenc stream (bf16), per batch tile
        + b_pad * din_pad * 2                # x (bf16)
        + b_pad * out_w * 4                  # output
        + head_bytes
    )
    flops = 2 * b_pad * (din_pad * 1024 + 1024 * 512 + 512 * 256 + 256 * out_w)
    cost = pl.CostEstimate(flops=flops, transcendentals=b_pad * 2 * out_w,
                           bytes_accessed=bytes_accessed)

    fused_out = pl.pallas_call(
        functools.partial(regressor_kernel, K=K),
        out_shape=jax.ShapeDtypeStruct((b_pad, out_w), jnp.float32),
        grid=grid,
        in_specs=in_specs,
        out_specs=out_spec,
        scratch_shapes=[pltpu.VMEM((tb, 1024), jnp.float32)],
        compiler_params=pltpu.CompilerParams(
            dimension_semantics=("parallel", "arbitrary"),
            vmem_limit_bytes=32 * 1024 * 1024),
        cost_estimate=cost,
    )(
        x_p, prep["wenc"], prep["benc"],
        prep["w1"], prep["b1"], prep["g1"], prep["be1"],
        prep["w2"], prep["b2"], prep["g2"], prep["be2"],
        prep["wh"], prep["bh"],
    )

    pi = fused_out[:B, 0:K]
    mu = fused_out[:B, K:3 * K].reshape(-1, K, 2)
    sigma = fused_out[:B, 3 * K:4 * K]
    return pi, mu, sigma


if __name__ == "__main__":
    K = 4
    B, C, H, W = 2, 4, 16, 16   # small NCHW pixel input
    key = jax.random.PRNGKey(0)
    k_x, k_p = jax.random.split(key)

    pixel_values = jax.random.normal(k_x, (B, C, H, W), jnp.float32)
    params = init_params(k_p, C * H * W, K)
    prep = prepare_params(params, K)           # one-time weight prep (hoisted)

    pi, mu, sigma = street_clip_regressor(pixel_values, prep)
    jax.block_until_ready((pi, mu, sigma))

    assert pi.shape == (B, K)
    assert mu.shape == (B, K, 2)
    assert sigma.shape == (B, K)
    # sanity: softmax rows sum to 1, sigma positive
    assert bool(jnp.all(jnp.abs(jnp.sum(pi, axis=-1) - 1.0) < 1e-4))
    assert bool(jnp.all(sigma > 0.0))
    print("KERNEL_OK")
</pallas_src>

<mosaic_0001>
module attributes {stable_mosaic.version = 11 : i64} {
  func.func @regressor_kernel(%arg0: i32, %arg1: i32, %arg2: memref<8x1024xbf16, #tpu.memory_space<vmem>>, %arg3: memref<1024x1024xbf16, #tpu.memory_space<vmem>>, %arg4: memref<1x1024xf32, #tpu.memory_space<vmem>>, %arg5: memref<1024x512xf32, #tpu.memory_space<vmem>>, %arg6: memref<1x512xf32, #tpu.memory_space<vmem>>, %arg7: memref<1x512xf32, #tpu.memory_space<vmem>>, %arg8: memref<1x512xf32, #tpu.memory_space<vmem>>, %arg9: memref<512x256xf32, #tpu.memory_space<vmem>>, %arg10: memref<1x256xf32, #tpu.memory_space<vmem>>, %arg11: memref<1x256xf32, #tpu.memory_space<vmem>>, %arg12: memref<1x256xf32, #tpu.memory_space<vmem>>, %arg13: memref<256x128xf32, #tpu.memory_space<vmem>>, %arg14: memref<1x128xf32, #tpu.memory_space<vmem>>, %arg15: memref<8x128xf32, #tpu.memory_space<vmem>>, %arg16: memref<8x1024xf32, #tpu.memory_space<vmem>>) attributes {dimension_semantics = [#tpu.dimension_semantics<parallel>, #tpu.dimension_semantics<arbitrary>], iteration_bounds = array<i64: 1, 1>, scalar_prefetch = 0 : i64, scratch_operands = 1 : i64, tpu.core_type = #tpu.core_type<tc>, window_params = [{transform_indices = @transform_0, window_bounds = array<i64: 8, 1024>}, {transform_indices = @transform_1, window_bounds = array<i64: 1024, 1024>}, {pipeline_mode = #tpu.pipeline_mode<synchronous>, transform_indices = @transform_2, window_bounds = array<i64: 1, 1024>}, {pipeline_mode = #tpu.pipeline_mode<synchronous>, transform_indices = @transform_3, window_bounds = array<i64: 1024, 512>}, {pipeline_mode = #tpu.pipeline_mode<synchronous>, transform_indices = @transform_4, window_bounds = array<i64: 1, 512>}, {pipeline_mode = #tpu.pipeline_mode<synchronous>, transform_indices = @transform_5, window_bounds = array<i64: 1, 512>}, {pipeline_mode = #tpu.pipeline_mode<synchronous>, transform_indices = @transform_6, window_bounds = array<i64: 1, 512>}, {pipeline_mode = #tpu.pipeline_mode<synchronous>, transform_indices = @transform_7, window_bounds = array<i64: 512, 256>}, {pipeline_mode = #tpu.pipeline_mode<synchronous>, transform_indices = @transform_8, window_bounds = array<i64: 1, 256>}, {pipeline_mode = #tpu.pipeline_mode<synchronous>, transform_indices = @transform_9, window_bounds = array<i64: 1, 256>}, {pipeline_mode = #tpu.pipeline_mode<synchronous>, transform_indices = @transform_10, window_bounds = array<i64: 1, 256>}, {pipeline_mode = #tpu.pipeline_mode<synchronous>, transform_indices = @transform_11, window_bounds = array<i64: 256, 128>}, {pipeline_mode = #tpu.pipeline_mode<synchronous>, transform_indices = @transform_12, window_bounds = array<i64: 1, 128>}, {transform_indices = @transform_13, window_bounds = array<i64: 8, 128>}]} {
    %c0_i32 = arith.constant 0 : i32
    %0 = arith.cmpi eq, %arg1, %c0_i32 : i32
    %1 = arith.extui %0 : i1 to i32
    %c0_i32_0 = arith.constant 0 : i32
    %2 = arith.cmpi ne, %1, %c0_i32_0 : i32
    scf.if %2 {
      %cst_10 = arith.constant 0.000000e+00 : f32
      %12 = vector.broadcast %cst_10 : f32 to vector<8x1024xf32>
      %c0_11 = arith.constant 0 : index
      %c0_12 = arith.constant 0 : index
      %13 = vector.load %arg16[%c0_11, %c0_12] : memref<8x1024xf32, #tpu.memory_space<vmem>>, vector<8x1024xf32>
      tpu.vector_store %arg16[%c0_11, %c0_12], %12 {strides = array<i32>} : memref<8x1024xf32, #tpu.memory_space<vmem>>, vector<8x1024xf32>,
    } else {
    }
    %c0 = arith.constant 0 : index
    %c0_1 = arith.constant 0 : index
    %3 = vector.load %arg16[%c0, %c0_1] : memref<8x1024xf32, #tpu.memory_space<vmem>>, vector<8x1024xf32>
    %c0_2 = arith.constant 0 : index
    %c0_3 = arith.constant 0 : index
    %4 = vector.load %arg2[%c0_2, %c0_3] : memref<8x1024xbf16, #tpu.memory_space<vmem>>, vector<8x1024xbf16>
    %c0_4 = arith.constant 0 : index
    %c0_5 = arith.constant 0 : index
    %5 = vector.load %arg3[%c0_4, %c0_5] : memref<1024x1024xbf16, #tpu.memory_space<vmem>>, vector<1024x1024xbf16>
    %cst = arith.constant dense<0.000000e+00> : vector<8x1024xf32>
    %6 = tpu.matmul %4, %5, %cst {dimension_numbers = #tpu.dot_dimension_numbers<[1], [0], [0], [1], [0, 0, 1, 1], [], []>} : vector<8x1024xbf16>, vector<1024x1024xbf16>, vector<8x1024xf32> -> vector<8x1024xf32>
    %7 = arith.addf %3, %6 : vector<8x1024xf32>
    %c0_6 = arith.constant 0 : index
    %c0_7 = arith.constant 0 : index
    %8 = vector.load %arg16[%c0_6, %c0_7] : memref<8x1024xf32, #tpu.memory_space<vmem>>, vector<8x1024xf32>
    tpu.vector_store %arg16[%c0_6, %c0_7], %7 {strides = array<i32>} : memref<8x1024xf32, #tpu.memory_space<vmem>>, vector<8x1024xf32>,
    %c0_i32_8 = arith.constant 0 : i32
    %9 = arith.cmpi eq, %arg1, %c0_i32_8 : i32
    %10 = arith.extui %9 : i1 to i32
    %c0_i32_9 = arith.constant 0 : i32
    %11 = arith.cmpi ne, %10, %c0_i32_9 : i32
    scf.if %11 {
      %c0_10 = arith.constant 0 : index
      %c0_11 = arith.constant 0 : index
      %12 = vector.load %arg16[%c0_10, %c0_11] : memref<8x1024xf32, #tpu.memory_space<vmem>>, vector<8x1024xf32>
      %c0_12 = arith.constant 0 : index
      %c0_13 = arith.constant 0 : index
      %13 = vector.load %arg4[%c0_12, %c0_13] : memref<1x1024xf32, #tpu.memory_space<vmem>>, vector<1x1024xf32>
      %14 = vector.broadcast %13 : vector<1x1024xf32> to vector<8x1024xf32>
      %15 = arith.addf %12, %14 : vector<8x1024xf32>
      %c0_14 = arith.constant 0 : index
      %c0_15 = arith.constant 0 : index
      %16 = vector.load %arg5[%c0_14, %c0_15] : memref<1024x512xf32, #tpu.memory_space<vmem>>, vector<1024x512xf32>
      %cst_16 = arith.constant dense<0.000000e+00> : vector<8x512xf32>
      %17 = tpu.matmul %15, %16, %cst_16 {dimension_numbers = #tpu.dot_dimension_numbers<[1], [0], [0], [1], [0, 0, 1, 1], [], []>} : vector<8x1024xf32>, vector<1024x512xf32>, vector<8x512xf32> -> vector<8x512xf32>
      %c0_17 = arith.constant 0 : index
      %c0_18 = arith.constant 0 : index
      %18 = vector.load %arg6[%c0_17, %c0_18] : memref<1x512xf32, #tpu.memory_space<vmem>>, vector<1x512xf32>
      %19 = vector.broadcast %18 : vector<1x512xf32> to vector<8x512xf32>
      %20 = arith.addf %17, %19 : vector<8x512xf32>
      %c0_19 = arith.constant 0 : index
      %c0_20 = arith.constant 0 : index
      %21 = vector.load %arg7[%c0_19, %c0_20] : memref<1x512xf32, #tpu.memory_space<vmem>>, vector<1x512xf32>
      %c0_21 = arith.constant 0 : index
      %c0_22 = arith.constant 0 : index
      %22 = vector.load %arg8[%c0_21, %c0_22] : memref<1x512xf32, #tpu.memory_space<vmem>>, vector<1x512xf32>
      %cst_23 = arith.constant dense<0.000000e+00> : vector<8xf32>
      %23 = vector.multi_reduction <add>, %20, %cst_23 [1] : vector<8x512xf32> to vector<8xf32>
      %24 = vector.shape_cast %23 : vector<8xf32> to vector<8x1xf32>
      %cst_24 = arith.constant 5.120000e+02 : f32
      %25 = vector.broadcast %cst_24 : f32 to vector<8x1xf32>
      %26 = arith.divf %24, %25 : vector<8x1xf32>
      %27 = vector.broadcast %26 : vector<8x1xf32> to vector<8x512xf32>
      %28 = arith.subf %20, %27 : vector<8x512xf32>
      %29 = vector.broadcast %26 : vector<8x1xf32> to vector<8x512xf32>
      %30 = arith.subf %20, %29 : vector<8x512xf32>
      %31 = arith.mulf %28, %30 : vector<8x512xf32>
      %cst_25 = arith.constant dense<0.000000e+00> : vector<8xf32>
      %32 = vector.multi_reduction <add>, %31, %cst_25 [1] : vector<8x512xf32> to vector<8xf32>
      %33 = vector.shape_cast %32 : vector<8xf32> to vector<8x1xf32>
      %cst_26 = arith.constant 5.120000e+02 : f32
      %34 = vector.broadcast %cst_26 : f32 to vector<8x1xf32>
      %35 = arith.divf %33, %34 : vector<8x1xf32>
      %36 = vector.broadcast %26 : vector<8x1xf32> to vector<8x512xf32>
      %37 = arith.subf %20, %36 : vector<8x512xf32>
      %cst_27 = arith.constant 9.99999974E-6 : f32
      %38 = vector.broadcast %cst_27 : f32 to vector<8x1xf32>
      %39 = arith.addf %35, %38 : vector<8x1xf32>
      %40 = math.rsqrt %39 : vector<8x1xf32>
      %41 = vector.broadcast %40 : vector<8x1xf32> to vector<8x512xf32>
      %42 = arith.mulf %37, %41 : vector<8x512xf32>
      %43 = vector.broadcast %21 : vector<1x512xf32> to vector<8x512xf32>
      %44 = arith.mulf %42, %43 : vector<8x512xf32>
      %45 = vector.broadcast %22 : vector<1x512xf32> to vector<8x512xf32>
      %46 = arith.addf %44, %45 : vector<8x512xf32>
      %cst_28 = arith.constant 0.000000e+00 : f32
      %47 = vector.broadcast %cst_28 : f32 to vector<8x512xf32>
      %48 = arith.maximumf %46, %47 : vector<8x512xf32>
      %c0_29 = arith.constant 0 : index
      %c0_30 = arith.constant 0 : index
      %49 = vector.load %arg9[%c0_29, %c0_30] : memref<512x256xf32, #tpu.memory_space<vmem>>, vector<512x256xf32>
      %cst_31 = arith.constant dense<0.000000e+00> : vector<8x256xf32>
      %50 = tpu.matmul %48, %49, %cst_31 {dimension_numbers = #tpu.dot_dimension_numbers<[1], [0], [0], [1], [0, 0, 1, 1], [], []>} : vector<8x512xf32>, vector<512x256xf32>, vector<8x256xf32> -> vector<8x256xf32>
      %c0_32 = arith.constant 0 : index
      %c0_33 = arith.constant 0 : index
      %51 = vector.load %arg10[%c0_32, %c0_33] : memref<1x256xf32, #tpu.memory_space<vmem>>, vector<1x256xf32>
      %52 = vector.broadcast %51 : vector<1x256xf32> to vector<8x256xf32>
      %53 = arith.addf %50, %52 : vector<8x256xf32>
      %c0_34 = arith.constant 0 : index
      %c0_35 = arith.constant 0 : index
      %54 = vector.load %arg11[%c0_34, %c0_35] : memref<1x256xf32, #tpu.memory_space<vmem>>, vector<1x256xf32>
      %c0_36 = arith.constant 0 : index
      %c0_37 = arith.constant 0 : index
      %55 = vector.load %arg12[%c0_36, %c0_37] : memref<1x256xf32, #tpu.memory_space<vmem>>, vector<1x256xf32>
      %cst_38 = arith.constant dense<0.000000e+00> : vector<8xf32>
      %56 = vector.multi_reduction <add>, %53, %cst_38 [1] : vector<8x256xf32> to vector<8xf32>
      %57 = vector.shape_cast %56 : vector<8xf32> to vector<8x1xf32>
      %cst_39 = arith.constant 2.560000e+02 : f32
      %58 = vector.broadcast %cst_39 : f32 to vector<8x1xf32>
      %59 = arith.divf %57, %58 : vector<8x1xf32>
      %60 = vector.broadcast %59 : vector<8x1xf32> to vector<8x256xf32>
      %61 = arith.subf %53, %60 : vector<8x256xf32>
      %62 = vector.broadcast %59 : vector<8x1xf32> to vector<8x256xf32>
      %63 = arith.subf %53, %62 : vector<8x256xf32>
      %64 = arith.mulf %61, %63 : vector<8x256xf32>
      %cst_40 = arith.constant dense<0.000000e+00> : vector<8xf32>
      %65 = vector.multi_reduction <add>, %64, %cst_40 [1] : vector<8x256xf32> to vector<8xf32>
      %66 = vector.shape_cast %65 : vector<8xf32> to vector<8x1xf32>
      %cst_41 = arith.constant 2.560000e+02 : f32
      %67 = vector.broadcast %cst_41 : f32 to vector<8x1xf32>
      %68 = arith.divf %66, %67 : vector<8x1xf32>
      %69 = vector.broadcast %59 : vector<8x1xf32> to vector<8x256xf32>
      %70 = arith.subf %53, %69 : vector<8x256xf32>
      %cst_42 = arith.constant 9.99999974E-6 : f32
      %71 = vector.broadcast %cst_42 : f32 to vector<8x1xf32>
      %72 = arith.addf %68, %71 : vector<8x1xf32>
      %73 = math.rsqrt %72 : vector<8x1xf32>
      %74 = vector.broadcast %73 : vector<8x1xf32> to vector<8x256xf32>
      %75 = arith.mulf %70, %74 : vector<8x256xf32>
      %76 = vector.broadcast %54 : vector<1x256xf32> to vector<8x256xf32>
      %77 = arith.mulf %75, %76 : vector<8x256xf32>
      %78 = vector.broadcast %55 : vector<1x256xf32> to vector<8x256xf32>
      %79 = arith.addf %77, %78 : vector<8x256xf32>
      %cst_43 = arith.constant 0.000000e+00 : f32
      %80 = vector.broadcast %cst_43 : f32 to vector<8x256xf32>
      %81 = arith.maximumf %79, %80 : vector<8x256xf32>
      %c0_44 = arith.constant 0 : index
      %c0_45 = arith.constant 0 : index
      %82 = vector.load %arg13[%c0_44, %c0_45] : memref<256x128xf32, #tpu.memory_space<vmem>>, vector<256x128xf32>
      %cst_46 = arith.constant dense<0.000000e+00> : vector<8x128xf32>
      %83 = tpu.matmul %81, %82, %cst_46 {dimension_numbers = #tpu.dot_dimension_numbers<[1], [0], [0], [1], [0, 0, 1, 1], [], []>} : vector<8x256xf32>, vector<256x128xf32>, vector<8x128xf32> -> vector<8x128xf32>
      %c0_47 = arith.constant 0 : index
      %c0_48 = arith.constant 0 : index
      %84 = vector.load %arg14[%c0_47, %c0_48] : memref<1x128xf32, #tpu.memory_space<vmem>>, vector<1x128xf32>
      %85 = vector.broadcast %84 : vector<1x128xf32> to vector<8x128xf32>
      %86 = arith.addf %83, %85 : vector<8x128xf32>
      %87 = tpu.iota {dimensions = array<i32: 1>} : vector<8x128xi32>
      %c4_i32 = arith.constant 4 : i32
      %88 = vector.broadcast %c4_i32 : i32 to vector<8x128xi32>
      %89 = arith.cmpi slt, %87, %88 : vector<8x128xi32>
      %c12_i32 = arith.constant 12 : i32
      %90 = vector.broadcast %c12_i32 : i32 to vector<8x128xi32>
      %91 = arith.cmpi sge, %87, %90 : vector<8x128xi32>
      %c16_i32 = arith.constant 16 : i32
      %92 = vector.broadcast %c16_i32 : i32 to vector<8x128xi32>
      %93 = arith.cmpi slt, %87, %92 : vector<8x128xi32>
      %94 = arith.andi %91, %93 : vector<8x128xi1>
      %cst_49 = arith.constant -1.000000e+30 : f32
      %95 = vector.broadcast %cst_49 : f32 to vector<8x128xf32>
      %96 = arith.select %89, %86, %95 : vector<8x128xi1>, vector<8x128xf32>
      %cst_50 = arith.constant dense<0xFF800000> : vector<8xf32>
      %97 = vector.multi_reduction <maximumf>, %96, %cst_50 [1] : vector<8x128xf32> to vector<8xf32>
      %98 = vector.shape_cast %97 : vector<8xf32> to vector<8x1xf32>
      %99 = vector.broadcast %98 : vector<8x1xf32> to vector<8x128xf32>
      %100 = arith.subf %96, %99 : vector<8x128xf32>
      %101 = math.exp %100 : vector<8x128xf32>
      %cst_51 = arith.constant dense<0.000000e+00> : vector<8xf32>
      %102 = vector.multi_reduction <add>, %101, %cst_51 [1] : vector<8x128xf32> to vector<8xf32>
      %103 = vector.shape_cast %102 : vector<8xf32> to vector<8x1xf32>
      %104 = vector.broadcast %103 : vector<8x1xf32> to vector<8x128xf32>
      %105 = arith.divf %101, %104 : vector<8x128xf32>
      %cst_52 = arith.constant 0.000000e+00 : f32
      %106 = vector.broadcast %cst_52 : f32 to vector<8x128xf32>
      %107 = arith.select %94, %86, %106 : vector<8x128xi1>, vector<8x128xf32>
      %108 = math.exp %107 : vector<8x128xf32>
      %109 = arith.select %89, %105, %86 : vector<8x128xi1>, vector<8x128xf32>
      %110 = arith.select %94, %108, %109 : vector<8x128xi1>, vector<8x128xf32>
      %c0_53 = arith.constant 0 : index
      %c0_54 = arith.constant 0 : index
      %111 = vector.load %arg15[%c0_53, %c0_54] : memref<8x128xf32, #tpu.memory_space<vmem>>, vector<8x128xf32>
      tpu.vector_store %arg15[%c0_53, %c0_54], %110 {strides = array<i32>} : memref<8x128xf32, #tpu.memory_space<vmem>>, vector<8x128xf32>,
    } else {
    }
    return
  }
  func.func @transform_0(%arg0: i32, %arg1: i32) -> (i32, i32) {
    %c0_i32 = arith.constant 0 : i32
    return %arg0, %arg1 : i32, i32
  }
  func.func @transform_1(%arg0: i32, %arg1: i32) -> (i32, i32) {
    %c0_i32 = arith.constant 0 : i32
    %c0_i32_0 = arith.constant 0 : i32
    return %arg1, %c0_i32 : i32, i32
  }
  func.func @transform_2(%arg0: i32, %arg1: i32) -> (i32, i32) {
    %c0_i32 = arith.constant 0 : i32
    %c0_i32_0 = arith.constant 0 : i32
    %c0_i32_1 = arith.constant 0 : i32
    return %c0_i32, %c0_i32_0 : i32, i32
  }
  func.func @transform_3(%arg0: i32, %arg1: i32) -> (i32, i32) {
    %c0_i32 = arith.constant 0 : i32
    %c0_i32_0 = arith.constant 0 : i32
    %c0_i32_1 = arith.constant 0 : i32
    return %c0_i32, %c0_i32_0 : i32, i32
  }
  func.func @transform_4(%arg0: i32, %arg1: i32) -> (i32, i32) {
    %c0_i32 = arith.constant 0 : i32
    %c0_i32_0 = arith.constant 0 : i32
    %c0_i32_1 = arith.constant 0 : i32
    return %c0_i32, %c0_i32_0 : i32, i32
  }
  func.func @transform_5(%arg0: i32, %arg1: i32) -> (i32, i32) {
    %c0_i32 = arith.constant 0 : i32
    %c0_i32_0 = arith.constant 0 : i32
    %c0_i32_1 = arith.constant 0 : i32
    return %c0_i32, %c0_i32_0 : i32, i32
  }
  func.func @transform_6(%arg0: i32, %arg1: i32) -> (i32, i32) {
    %c0_i32 = arith.constant 0 : i32
    %c0_i32_0 = arith.constant 0 : i32
    %c0_i32_1 = arith.constant 0 : i32
    return %c0_i32, %c0_i32_0 : i32, i32
  }
  func.func @transform_7(%arg0: i32, %arg1: i32) -> (i32, i32) {
    %c0_i32 = arith.constant 0 : i32
    %c0_i32_0 = arith.constant 0 : i32
    %c0_i32_1 = arith.constant 0 : i32
    return %c0_i32, %c0_i32_0 : i32, i32
  }
  func.func @transform_8(%arg0: i32, %arg1: i32) -> (i32, i32) {
    %c0_i32 = arith.constant 0 : i32
    %c0_i32_0 = arith.constant 0 : i32
    %c0_i32_1 = arith.constant 0 : i32
    return %c0_i32, %c0_i32_0 : i32, i32
  }
  func.func @transform_9(%arg0: i32, %arg1: i32) -> (i32, i32) {
    %c0_i32 = arith.constant 0 : i32
    %c0_i32_0 = arith.constant 0 : i32
    %c0_i32_1 = arith.constant 0 : i32
    return %c0_i32, %c0_i32_0 : i32, i32
  }
  func.func @transform_10(%arg0: i32, %arg1: i32) -> (i32, i32) {
    %c0_i32 = arith.constant 0 : i32
    %c0_i32_0 = arith.constant 0 : i32
    %c0_i32_1 = arith.constant 0 : i32
    return %c0_i32, %c0_i32_0 : i32, i32
  }
  func.func @transform_11(%arg0: i32, %arg1: i32) -> (i32, i32) {
    %c0_i32 = arith.constant 0 : i32
    %c0_i32_0 = arith.constant 0 : i32
    %c0_i32_1 = arith.constant 0 : i32
    return %c0_i32, %c0_i32_0 : i32, i32
  }
  func.func @transform_12(%arg0: i32, %arg1: i32) -> (i32, i32) {
    %c0_i32 = arith.constant 0 : i32
    %c0_i32_0 = arith.constant 0 : i32
    %c0_i32_1 = arith.constant 0 : i32
    return %c0_i32, %c0_i32_0 : i32, i32
  }
  func.func @transform_13(%arg0: i32, %arg1: i32) -> (i32, i32) {
    %c0_i32 = arith.constant 0 : i32
    %c0_i32_0 = arith.constant 0 : i32
    return %arg0, %c0_i32 : i32, i32
  }
}

</mosaic_0001>

<bundles_post_ra>
// kernel: tpu_custom_call.1
= control target key start
LH: loop header
LB: loop body
LE: loop exit
PB: predicated region body
PF: predicated region fallthrough
CT: control target
= control target key end

     0   :  { %18 = vsyncpa [#allocation4], 0  ;;  %s7006_s0 = inlined_call_operand.hbm [shape: bf16[8,1024], index: 0, kind: input, shape index: {}]   ;;  %s7007_s1 = inlined_call_operand.hbm [shape: bf16[1024,1024], index: 1, kind: input, shape index: {}]   ;;  %s7008_s2 = inlined_call_operand.hbm [shape: f32[1,1024], index: 2, kind: input, shape index: {}]   ;;  %s7009_s3 = inlined_call_operand.hbm [shape: f32[1024,512], index: 3, kind: input, shape index: {}]   ;;  %s7010_s4 = inlined_call_operand.hbm [shape: f32[1,512], index: 4, kind: input, shape index: {}]   ;;  %s7011_s5 = inlined_call_operand.hbm [shape: f32[1,512], index: 5, kind: input, shape index: {}]   ;;  %s7012_s6 = inlined_call_operand.hbm [shape: f32[1,512], index: 6, kind: input, shape index: {}]   ;;  %s7013_s7 = inlined_call_operand.hbm [shape: f32[512,256], index: 7, kind: input, shape index: {}]   ;;  %s7014_s8 = inlined_call_operand.hbm [shape: f32[1,256], index: 8, kind: input, shape index: {}]   ;;  %s7015_s9 = inlined_call_operand.hbm [shape: f32[1,256], index: 9, kind: input, shape index: {}]   ;;  %s7016_s10 = inlined_call_operand.hbm [shape: f32[1,256], index: 10, kind: input, shape index: {}]   ;;  %s7017_s11 = inlined_call_operand.hbm [shape: f32[256,128], index: 11, kind: input, shape index: {}]   ;;  %s7018_s12 = inlined_call_operand.hbm [shape: f32[1,128], index: 12, kind: input, shape index: {}]   ;;  %s7019_s13 = inlined_call_operand.hbm [shape: f32[8,128], index: 13, kind: output, shape index: {}]  }
   0x1   :  { %19 = vsyncpa [#allocation7], 0 }
   0x2   :  { %20 = vsyncpa [#allocation10], 0 }
   0x3   :  { %21 = vsyncpa [#allocation13], 0 }
   0x4   :  { %22 = vsyncpa [#allocation16], 0 }
   0x5   :  { %23 = vsyncpa [#allocation19], 0 }
   0x6   :  { %24 = vsyncpa [#allocation22], 0 }
   0x7   :  { %25 = vsyncpa [#allocation5], 0  ;;  %s6617_s25 = smov [#allocation6]  }
   0x8   :  { %s41_s26 = sshll.u32 %s6617_s25, 4  ;;  %s42_s26 = int_to_ptr.vmem [resolvable:$true] %s41_s26 }
   0x9   :  { %s6329_s27 = scalar_lea.vmem %s42_s26, 65536  ;;  %p6334_p1 = scmp.lt.s32.totalorder %s42_s26, %s42_s26 }
   0xa   :  { %p6330_p0 = scmp.ne.s32.totalorder %s42_s26, %s6329_s27  ;;  %p6335_p2 = scmp.lt.s32.totalorder %s6329_s27, %s6329_s27 }
   0xc   :  { %p6336_p3 = por %p6335_p2, %p6334_p1 }
   0xe   :  { %p6337_p4 = pnand %p6336_p3, %p6330_p0 }
  0x10   :  { %6340 = shalt.err (!%p6337_p4)
}
  0x11   :  { %s6618_s28 = smov 512   ;;  %s6619_s29 = smov 32  }
  0x12   :  { %47 = dma.hbm_to_vmem [thread:$0]  %s7007_s1, 65536, %s42_s26, [#allocation7], %s6618_s28, %s6618_s28, %s6619_s29  }
  0x13   :  { %s6620_s15 = smov [#allocation9]   ;;  %s6621_s17 = smov [#allocation12]  }
  0x14   :  { %s63_s16 = sshll.u32 %s6620_s15, 4  ;;  %s86_s18 = sshll.u32 %s6621_s17, 4  ;;  %s64_s16 = int_to_ptr.vmem [resolvable:$true] %s63_s16  ;;  %s87_s18 = int_to_ptr.vmem [resolvable:$true] %s86_s18 }
  0x15   :  { %s6349_s19 = scalar_lea.vmem %s64_s16, 65536  ;;  %p6354_p6 = scmp.lt.s32.totalorder %s64_s16, %s64_s16 }
  0x16   :  { %p6350_p5 = scmp.ne.s32.totalorder %s64_s16, %s6349_s19  ;;  %p6355_p7 = scmp.lt.s32.totalorder %s6349_s19, %s6349_s19 }
  0x18   :  { %p6356_p8 = por %p6355_p7, %p6354_p6 }
  0x1a   :  { %p6357_p9 = pnand %p6356_p8, %p6350_p5 }
  0x1c   :  { %6360 = shalt.err (!%p6357_p9)
}
  0x1d   :  { %69 = dma.hbm_to_vmem [thread:$0]  %s7009_s3, 65536, %s64_s16, [#allocation10], %s6618_s28, %s6618_s28, %s6619_s29  }
  0x1e   :  { %s6369_s22 = scalar_lea.vmem %s87_s18, 64  ;;  %p6374_p11 = scmp.lt.s32.totalorder %s87_s18, %s87_s18 }
  0x1f   :  { %p6370_p10 = scmp.ne.s32.totalorder %s87_s18, %s6369_s22  ;;  %p6375_p12 = scmp.lt.s32.totalorder %s6369_s22, %s6369_s22 }
  0x21   :  { %p6376_p13 = por %p6375_p12, %p6374_p11 }
  0x23   :  { %p6377_p0 = pnand %p6376_p13, %p6370_p10 }
  0x25   :  { %6380 = shalt.err (!%p6377_p0)
}
  0x26   :  { %89 = dma.hbm_to_vmem [thread:$0]  %s7011_s5, 64, %s87_s18, [#allocation13]  }
  0x27   :  { %s6622_s24 = smov [#allocation15]  }
  0x28   :  { %s105_s25 = sshll.u32 %s6622_s24, 4  ;;  %s106_s25 = int_to_ptr.vmem [resolvable:$true] %s105_s25 }
  0x29   :  { %s6389_s26 = scalar_lea.vmem %s106_s25, 16384  ;;  %p6394_p2 = scmp.lt.s32.totalorder %s106_s25, %s106_s25 }
  0x2a   :  { %p6390_p1 = scmp.ne.s32.totalorder %s106_s25, %s6389_s26  ;;  %p6395_p3 = scmp.lt.s32.totalorder %s6389_s26, %s6389_s26 }
  0x2c   :  { %p6396_p4 = por %p6395_p3, %p6394_p2 }
  0x2e   :  { %p6397_p5 = pnand %p6396_p4, %p6390_p1 }
  0x30   :  { %6400 = shalt.err (!%p6397_p5)
}
  0x31   :  { %s6623_s3 = smov 256   ;;  %s6624_s27 = smov 16  }
  0x32   :  { %111 = dma.hbm_to_vmem [thread:$0]  %s7013_s7, 16384, %s106_s25, [#allocation16], %s6623_s3, %s6623_s3, %s6624_s27  }
  0x33   :  { %s6625_s30 = smov [#allocation18]   ;;  %s6626_s15 = smov [#allocation21]  }
  0x34   :  { %s128_s14 = sshll.u32 %s6625_s30, 4  ;;  %s147_s5 = sshll.u32 %s6626_s15, 4  ;;  %s129_s14 = int_to_ptr.vmem [resolvable:$true] %s128_s14  ;;  %s148_s5 = int_to_ptr.vmem [resolvable:$true] %s147_s5 }
  0x35   :  { %s6409_s16 = scalar_lea.vmem %s129_s14, 32  ;;  %p6414_p7 = scmp.lt.s32.totalorder %s129_s14, %s129_s14 }
  0x36   :  { %p6410_p6 = scmp.ne.s32.totalorder %s129_s14, %s6409_s16  ;;  %p6415_p8 = scmp.lt.s32.totalorder %s6409_s16, %s6409_s16 }
  0x38   :  { %p6416_p9 = por %p6415_p8, %p6414_p7 }
  0x3a   :  { %p6417_p10 = pnand %p6416_p9, %p6410_p6 }
  0x3c   :  { %6420 = shalt.err (!%p6417_p10)
}
  0x3d   :  { %131 = dma.hbm_to_vmem [thread:$0]  %s7015_s9, 32, %s129_s14, [#allocation19]  }
  0x3e   :  { %s6429_s19 = scalar_lea.vmem %s148_s5, 4096  ;;  %p6434_p12 = scmp.lt.s32.totalorder %s148_s5, %s148_s5 }
  0x3f   :  { %p6430_p11 = scmp.ne.s32.totalorder %s148_s5, %s6429_s19  ;;  %p6435_p13 = scmp.lt.s32.totalorder %s6429_s19, %s6429_s19 }
  0x41   :  { %p6436_p0 = por %p6435_p13, %p6434_p12 }
  0x43   :  { %p6437_p1 = pnand %p6436_p0, %p6430_p11 }
  0x45   :  { %6440 = shalt.err (!%p6437_p1)
}
  0x46   :  { %s6627_s7 = smov 128   ;;  %s6628_s20 = smov 8  }
  0x47   :  { %153 = dma.hbm_to_vmem [thread:$0]  %s7017_s11, 4096, %s148_s5, [#allocation22], %s6627_s7, %s6627_s7, %s6628_s20  }
  0x48   :  { %s6629_s1 = smov [#allocation3]   ;;  %s6630_s24 = smov [#allocation8]  }
  0x49   :  { %s32_s23 = sshll.u32 %s6629_s1, 4  ;;  %s54_s25 = sshll.u32 %s6630_s24, 4  ;;  %s33_s23 = int_to_ptr.vmem [resolvable:$true] %s32_s23  ;;  %s55_s25 = int_to_ptr.vmem [resolvable:$true] %s54_s25 }
  0x4a   :  { %s6449_s9 = scalar_lea.vmem %s33_s23, 512  ;;  %p6454_p3 = scmp.lt.s32.totalorder %s33_s23, %s33_s23 }
  0x4b   :  { %p6450_p2 = scmp.ne.s32.totalorder %s33_s23, %s6449_s9  ;;  %p6455_p4 = scmp.lt.s32.totalorder %s6449_s9, %s6449_s9 }
  0x4d   :  { %p6456_p5 = por %p6455_p4, %p6454_p3 }
  0x4f   :  { %p6457_p6 = pnand %p6456_p5, %p6450_p2 }
  0x51   :  { %6460 = shalt.err (!%p6457_p6)
}
  0x52   :  { %35 = dma.hbm_to_vmem [thread:$0]  %s7006_s0, 512, %s33_s23, [#allocation4]  }
  0x53   :  { %s6469_s27 = scalar_lea.vmem %s55_s25, 128  ;;  %p6474_p8 = scmp.lt.s32.totalorder %s55_s25, %s55_s25 }
  0x54   :  { %p6470_p7 = scmp.ne.s32.totalorder %s55_s25, %s6469_s27  ;;  %p6475_p9 = scmp.lt.s32.totalorder %s6469_s27, %s6469_s27 }
  0x56   :  { %p6476_p10 = por %p6475_p9, %p6474_p8 }
  0x58   :  { %p6477_p11 = pnand %p6476_p10, %p6470_p7 }
  0x5a   :  { %6480 = shalt.err (!%p6477_p11)
}
  0x5b   :  { %57 = dma.hbm_to_vmem [thread:$0]  %s7008_s2, 128, %s55_s25, [#allocation7]  }
  0x5c   :  { %s6631_s29 = smov [#allocation11]   ;;  %s6632_s14 = smov [#allocation14]  }
  0x5d   :  { %s76_s30 = sshll.u32 %s6631_s29, 4  ;;  %s96_s15 = sshll.u32 %s6632_s14, 4  ;;  %s77_s30 = int_to_ptr.vmem [resolvable:$true] %s76_s30  ;;  %s97_s15 = int_to_ptr.vmem [resolvable:$true] %s96_s15 }
  0x5e   :  { %s6489_s5 = scalar_lea.vmem %s77_s30, 64  ;;  %p6494_p13 = scmp.lt.s32.totalorder %s77_s30, %s77_s30 }
  0x5f   :  { %p6490_p12 = scmp.ne.s32.totalorder %s77_s30, %s6489_s5  ;;  %p6495_p0 = scmp.lt.s32.totalorder %s6489_s5, %s6489_s5 }
  0x61   :  { %p6496_p1 = por %p6495_p0, %p6494_p13 }
  0x63   :  { %p6497_p2 = pnand %p6496_p1, %p6490_p12 }
  0x65   :  { %6500 = shalt.err (!%p6497_p2)
}
  0x66   :  { %79 = dma.hbm_to_vmem [thread:$0]  %s7010_s4, 64, %s77_s30, [#allocation10]  }
  0x67   :  { %s6509_s17 = scalar_lea.vmem %s97_s15, 64  ;;  %p6514_p4 = scmp.lt.s32.totalorder %s97_s15, %s97_s15 }
  0x68   :  { %p6510_p3 = scmp.ne.s32.totalorder %s97_s15, %s6509_s17  ;;  %p6515_p5 = scmp.lt.s32.totalorder %s6509_s17, %s6509_s17 }
  0x6a   :  { %p6516_p6 = por %p6515_p5, %p6514_p4 }
  0x6c   :  { %p6517_p7 = pnand %p6516_p6, %p6510_p3 }
  0x6e   :  { %6520 = shalt.err (!%p6517_p7)
}
  0x6f   :  { %99 = dma.hbm_to_vmem [thread:$0]  %s7012_s6, 64, %s97_s15, [#allocation13]  }
  0x70   :  { %s6633_s19 = smov [#allocation17]   ;;  %s6634_s20 = smov [#allocation20]  }
  0x71   :  { %s118_s7 = sshll.u32 %s6633_s19, 4  ;;  %s138_s21 = sshll.u32 %s6634_s20, 4  ;;  %s119_s7 = int_to_ptr.vmem [resolvable:$true] %s118_s7  ;;  %s139_s21 = int_to_ptr.vmem [resolvable:$true] %s138_s21 }
  0x72   :  { %s6529_s22 = scalar_lea.vmem %s119_s7, 32  ;;  %p6534_p9 = scmp.lt.s32.totalorder %s119_s7, %s119_s7 }
  0x73   :  { %p6530_p8 = scmp.ne.s32.totalorder %s119_s7, %s6529_s22  ;;  %p6535_p10 = scmp.lt.s32.totalorder %s6529_s22, %s6529_s22 }
  0x75   :  { %p6536_p11 = por %p6535_p10, %p6534_p9 }
  0x77   :  { %p6537_p12 = pnand %p6536_p11, %p6530_p8 }
  0x79   :  { %6540 = shalt.err (!%p6537_p12)
}
  0x7a   :  { %121 = dma.hbm_to_vmem [thread:$0]  %s7014_s8, 32, %s119_s7, [#allocation16]  }
  0x7b   :  { %s6549_s23 = scalar_lea.vmem %s139_s21, 32  ;;  %p6554_p0 = scmp.lt.s32.totalorder %s139_s21, %s139_s21 }
  0x7c   :  { %p6550_p13 = scmp.ne.s32.totalorder %s139_s21, %s6549_s23  ;;  %p6555_p1 = scmp.lt.s32.totalorder %s6549_s23, %s6549_s23 }
  0x7e   :  { %p6556_p2 = por %p6555_p1, %p6554_p0 }
  0x80   :  { %p6557_p3 = pnand %p6556_p2, %p6550_p13 }
  0x82   :  { %6560 = shalt.err (!%p6557_p3)
}
  0x83   :  { %141 = dma.hbm_to_vmem [thread:$0]  %s7016_s10, 32, %s139_s21, [#allocation19]  }
  0x84   :  { %s6635_s25 = smov [#allocation23]  }
  0x85   :  { %s160_s9 = sshll.u32 %s6635_s25, 4  ;;  %s161_s9 = int_to_ptr.vmem [resolvable:$true] %s160_s9 }
  0x86   :  { %s6569_s26 = scalar_lea.vmem %s161_s9, 16  ;;  %s6573_s3 = scalar_lea.vmem %s161_s9, 32 }
  0x87   :  { %p6570_p4 = scmp.ne.s32.totalorder %s161_s9, %s6569_s26  ;;  %p6574_p5 = scmp.lt.s32.totalorder %s161_s9, %s161_s9 }
  0x88   :  { %p6575_p6 = scmp.lt.s32.totalorder %s6573_s3, %s6569_s26 }
  0x8a   :  { %p6576_p7 = por %p6575_p6, %p6574_p5 }
  0x8c   :  { %p6577_p8 = pnand %p6576_p7, %p6570_p4 }
  0x8e   :  { %6580 = shalt.err (!%p6577_p8)
}
  0x8f   :  { %163 = dma.hbm_to_vmem [thread:$0]  %s7018_s12, 16, %s161_s9, [#allocation22]  }
  0x90   :  { %6601 = dma.done.wait [#allocation4], 512  }
  0x91   :  { %6602 = vsyncadd [#allocation4], 4294966784 }
  0x92   :  { %6603 = dma.done.wait [#allocation7], 65664  }
  0x93   :  { %6604 = vsyncadd [#allocation7], 4294901632 }
  0x94   :  { %6605 = dma.done.wait [#allocation10], 65600  }
  0x95   :  { %6606 = vsyncadd [#allocation10], 4294901696 }
  0x96   :  { %6607 = dma.done.wait [#allocation13], 128  }
  0x97   :  { %6608 = vsyncadd [#allocation13], 4294967168 }
  0x98   :  { %6609 = dma.done.wait [#allocation16], 16416  }
  0x99   :  { %6610 = vsyncadd [#allocation16], 4294950880 }
  0x9a   :  { %6611 = dma.done.wait [#allocation19], 64  }
  0x9b   :  { %6612 = vsyncadd [#allocation19], 4294967232 }
  0x9c   :  { %6613 = dma.done.wait [#allocation22], 4112  }
  0x9d   :  { %6614 = vsyncadd [#allocation22], 4294963184  ;;  %v283_v0 = vld [vmem:[#allocation6 + $0x1c0] sm:$0xff]  ;;  %v6748_v54 = vld [vmem:[#allocation3 + $0x8] sm:$0xff]  ;;  %s6636_s10 = smov [#allocation24]  }
  0x9e   :  { %v287_v1 = vld [vmem:[#allocation6 + $0x1e0] sm:$0xff]  ;;  %v6756_v59 = vcombine.high %v6748_v54, %v6748_v54  ;;  %s5711_s12 = sshll.u32 %s6636_s10, 4  ;;  %s5712_s12 = int_to_ptr.vmem [resolvable:$true] %s5711_s12 }
  0x9f   :  { %v411_v2 = vld [vmem:[#allocation6 + $0x5c0] sm:$0xff]  ;;  %v5791_v3 = vcombine.high %v283_v0, %v287_v1  ;;  %v5790_v5 = vcombine.low %v283_v0, %v287_v1  ;;  %s6581_s11 = scalar_lea.vmem %s5712_s12, 128  ;;  %p6586_p10 = scmp.lt.s32.totalorder %s5712_s12, %s5712_s12 }
  0xa0   :  { %v415_v4 = vld [vmem:[#allocation6 + $0x5e0] sm:$0xff]  ;;  %3400 = vmatprep.mubr.bf16.mxu1 %v6756_v59  ;;  %p6582_p9 = scmp.ne.s32.totalorder %s5712_s12, %s6581_s11  ;;  %p6587_p11 = scmp.lt.s32.totalorder %s6581_s11, %s6581_s11 }
  0xa1   :  { %v275_v6 = vld [vmem:[#allocation6 + $0x180] sm:$0xff]  ;;  %v5919_v8 = vcombine.high %v411_v2, %v415_v4  ;;  %v5918_v9 = vcombine.low %v411_v2, %v415_v4  ;;  %3327 = vmatprep.subr.bf16.mxu0 %v5791_v3 }
  0xa2   :  { %v279_v7 = vld [vmem:[#allocation6 + $0x1a0] sm:$0xff]  ;;  %3328 = vmatpush1.bf16.msra.mxu0 %v5790_v5  ;;  %p6588_p12 = por %p6587_p11, %p6586_p10 }
  0xa3   :  { %v5783_v10 = vcombine.high %v275_v6, %v279_v7  ;;  %v403_v11 = vld [vmem:[#allocation6 + $0x580] sm:$0xff]  ;;  %3368 = vmatprep.subr.bf16.mxu1 %v5919_v8  ;;  %v5782_v18 = vcombine.low %v275_v6, %v279_v7 }
  0xa4   :  { %v407_v12 = vld [vmem:[#allocation6 + $0x5a0] sm:$0xff]  ;;  %3369 = vmatpush1.bf16.msra.mxu1 %v5918_v9  ;;  %p6589_p13 = pnand %p6588_p12, %p6582_p9 }
  0xa5   :  { %v267_v13 = vld [vmem:[#allocation6 + $0x140] sm:$0xff]  ;;  %v5911_v14 = vcombine.high %v403_v11, %v407_v12  ;;  %3329 = vmatprep.subr.bf16.mxu0 %v5783_v10  ;;  %v5910_v19 = vcombine.low %v403_v11, %v407_v12 }
  0xa6   :  { %v271_v15 = vld [vmem:[#allocation6 + $0x160] sm:$0xff]  ;;  %3330 = vmatpush1.bf16.msra.mxu0 %v5782_v18 }
  0xa7   :  { %v395_v16 = vld [vmem:[#allocation6 + $0x540] sm:$0xff]  ;;  %v5775_v20 = vcombine.high %v267_v13, %v271_v15  ;;  %3370 = vmatprep.subr.bf16.mxu1 %v5911_v14  ;;  %v5774_v26 = vcombine.low %v267_v13, %v271_v15 }
  0xa8   :  { %v399_v17 = vld [vmem:[#allocation6 + $0x560] sm:$0xff]  ;;  %3371 = vmatpush1.bf16.msra.mxu1 %v5910_v19 }
  0xa9   :  { %v5903_v21 = vcombine.high %v395_v16, %v399_v17  ;;  %v259_v22 = vld [vmem:[#allocation6 + $0x100] sm:$0xff]  ;;  %3331 = vmatprep.subr.bf16.mxu0 %v5775_v20  ;;  %v5902_v27 = vcombine.low %v395_v16, %v399_v17 }
  0xaa   :  { %v263_v23 = vld [vmem:[#allocation6 + $0x120] sm:$0xff]  ;;  %3332 = vmatpush1.bf16.msra.mxu0 %v5774_v26 }
  0xab   :  { %v387_v24 = vld [vmem:[#allocation6 + $0x500] sm:$0xff]  ;;  %v5767_v28 = vcombine.high %v259_v22, %v263_v23  ;;  %3372 = vmatprep.subr.bf16.mxu1 %v5903_v21  ;;  %v5766_v34 = vcombine.low %v259_v22, %v263_v23 }
  0xac   :  { %v391_v25 = vld [vmem:[#allocation6 + $0x520] sm:$0xff]  ;;  %3373 = vmatpush1.bf16.msra.mxu1 %v5902_v27 }
  0xad   :  { %v5895_v29 = vcombine.high %v387_v24, %v391_v25  ;;  %v251_v30 = vld [vmem:[#allocation6 + $0xc0] sm:$0xff]  ;;  %3333 = vmatprep.subr.bf16.mxu0 %v5767_v28  ;;  %v5894_v35 = vcombine.low %v387_v24, %v391_v25 }
  0xae   :  { %v255_v31 = vld [vmem:[#allocation6 + $0xe0] sm:$0xff]  ;;  %3334 = vmatpush1.bf16.msra.mxu0 %v5766_v34 }
  0xaf   :  { %v379_v32 = vld [vmem:[#allocation6 + $0x4c0] sm:$0xff]  ;;  %v5759_v36 = vcombine.high %v251_v30, %v255_v31  ;;  %3374 = vmatprep.subr.bf16.mxu1 %v5895_v29  ;;  %v5758_v42 = vcombine.low %v251_v30, %v255_v31 }
  0xb0   :  { %v383_v33 = vld [vmem:[#allocation6 + $0x4e0] sm:$0xff]  ;;  %3375 = vmatpush1.bf16.msra.mxu1 %v5894_v35 }
  0xb1   :  { %v5887_v37 = vcombine.high %v379_v32, %v383_v33  ;;  %v243_v38 = vld [vmem:[#allocation6 + $0x80] sm:$0xff]  ;;  %3335 = vmatprep.subr.bf16.mxu0 %v5759_v36  ;;  %v5886_v43 = vcombine.low %v379_v32, %v383_v33 }
  0xb2   :  { %v247_v39 = vld [vmem:[#allocation6 + $0xa0] sm:$0xff]  ;;  %3336 = vmatpush1.bf16.msra.mxu0 %v5758_v42 }
  0xb3   :  { %v371_v40 = vld [vmem:[#allocation6 + $0x480] sm:$0xff]  ;;  %v5751_v44 = vcombine.high %v243_v38, %v247_v39  ;;  %3376 = vmatprep.subr.bf16.mxu1 %v5887_v37  ;;  %v5750_v50 = vcombine.low %v243_v38, %v247_v39 }
  0xb4   :  { %v375_v41 = vld [vmem:[#allocation6 + $0x4a0] sm:$0xff]  ;;  %3377 = vmatpush1.bf16.msra.mxu1 %v5886_v43 }
  0xb5   :  { %v5879_v45 = vcombine.high %v371_v40, %v375_v41  ;;  %v235_v46 = vld [vmem:[#allocation6 + $0x40] sm:$0xff]  ;;  %3337 = vmatprep.subr.bf16.mxu0 %v5751_v44  ;;  %v5878_v51 = vcombine.low %v371_v40, %v375_v41 }
  0xb6   :  { %v239_v47 = vld [vmem:[#allocation6 + $0x60] sm:$0xff]  ;;  %3338 = vmatpush1.bf16.msra.mxu0 %v5750_v50 }
  0xb7   :  { %v363_v48 = vld [vmem:[#allocation6 + $0x440] sm:$0xff]  ;;  %v5743_v52 = vcombine.high %v235_v46, %v239_v47  ;;  %3378 = vmatprep.subr.bf16.mxu1 %v5879_v45  ;;  %v5742_v62 = vcombine.low %v235_v46, %v239_v47 }
  0xb8   :  { %v367_v49 = vld [vmem:[#allocation6 + $0x460] sm:$0xff]  ;;  %3379 = vmatpush1.bf16.msra.mxu1 %v5878_v51 }
  0xb9   :  { %v6746_v53 = vld [vmem:[#allocation3] sm:$0xff]  ;;  %v5871_v55 = vcombine.high %v363_v48, %v367_v49  ;;  %3339 = vmatprep.subr.bf16.mxu0 %v5743_v52  ;;  %v5870_v63 = vcombine.low %v363_v48, %v367_v49 }
  0xba   :  { %v227_v56 = vld [vmem:[#allocation6] sm:$0xff]  ;;  %v6752_v58 = vcombine.high %v6746_v53, %v6746_v53  ;;  %3340 = vmatpush1.bf16.msra.mxu0 %v5742_v62 }
  0xbb   :  { %v231_v57 = vld [vmem:[#allocation6 + $0x20] sm:$0xff]  ;;  %3380 = vmatprep.subr.bf16.mxu1 %v5871_v55 }
  0xbc   :  { %v355_v60 = vld [vmem:[#allocation6 + $0x400] sm:$0xff]  ;;  %3359 = vmatprep.mubr.bf16.mxu0 %v6752_v58  ;;  %v5735_v0 = vcombine.high %v227_v56, %v231_v57  ;;  %v5734_v6 = vcombine.low %v227_v56, %v231_v57  ;;  %3381 = vmatpush1.bf16.msra.mxu1 %v5870_v63 }
  0xbd   :  { %v359_v61 = vld [vmem:[#allocation6 + $0x420] sm:$0xff] }
  0xbe   :  { %v5863_v1 = vcombine.high %v355_v60, %v359_v61  ;;  %v347_v2 = vld [vmem:[#allocation6 + $0x3c0] sm:$0xff]  ;;  %3341 = vmatprep.subr.bf16.mxu0 %v5735_v0  ;;  %v5862_v7 = vcombine.low %v355_v60, %v359_v61 }
  0xbf   :  { %v351_v3 = vld [vmem:[#allocation6 + $0x3e0] sm:$0xff]  ;;  %3342 = vmatpush1.bf16.msra.mxu0 %v5734_v6 }
  0xc0   :  { %v475_v4 = vld [vmem:[#allocation6 + $0x7c0] sm:$0xff]  ;;  %v5855_v8 = vcombine.high %v347_v2, %v351_v3  ;;  %3382 = vmatprep.subr.bf16.mxu1 %v5863_v1  ;;  %v5854_v14 = vcombine.low %v347_v2, %v351_v3 }
  0xc1   :  { %v479_v5 = vld [vmem:[#allocation6 + $0x7e0] sm:$0xff]  ;;  %3383 = vmatpush1.bf16.msra.mxu1 %v5862_v7 }
  0xc2   :  { %v5983_v9 = vcombine.high %v475_v4, %v479_v5  ;;  %v339_v10 = vld [vmem:[#allocation6 + $0x380] sm:$0xff]  ;;  %3343 = vmatprep.subr.bf16.mxu0 %v5855_v8  ;;  %v5982_v15 = vcombine.low %v475_v4, %v479_v5 }
  0xc3   :  { %v343_v11 = vld [vmem:[#allocation6 + $0x3a0] sm:$0xff]  ;;  %3344 = vmatpush2.bf16.msra.mxu0 %v5854_v14 }
  0xc4   :  { %v467_v12 = vld [vmem:[#allocation6 + $0x780] sm:$0xff]  ;;  %v5847_v16 = vcombine.high %v339_v10, %v343_v11  ;;  %3384 = vmatprep.subr.bf16.mxu1 %v5983_v9  ;;  %v5846_v22 = vcombine.low %v339_v10, %v343_v11 }
  0xc5   :  { %v471_v13 = vld [vmem:[#allocation6 + $0x7a0] sm:$0xff]  ;;  %3385 = vmatpush2.bf16.msra.mxu1 %v5982_v15 }
  0xc6   :  { %v5975_v17 = vcombine.high %v467_v12, %v471_v13  ;;  %v331_v18 = vld [vmem:[#allocation6 + $0x340] sm:$0xff]  ;;  %3345 = vmatprep.subr.bf16.mxu0 %v5847_v16  ;;  %v5974_v23 = vcombine.low %v467_v12, %v471_v13  ;;  %v6762_v16 = vcombine.low %v6746_v53, %v6746_v53 }
  0xc7   :  { %v335_v19 = vld [vmem:[#allocation6 + $0x360] sm:$0xff]  ;;  %3346 = vmatpush2.bf16.msra.mxu0 %v5846_v22  ;;  %v6770_v22 = vld [vmem:[#allocation3 + $0x18] sm:$0xff] }
  0xc8   :  { %v459_v20 = vld [vmem:[#allocation6 + $0x740] sm:$0xff]  ;;  %v5839_v24 = vcombine.high %v331_v18, %v335_v19  ;;  %3386 = vmatprep.subr.bf16.mxu1 %v5975_v17  ;;  %v5838_v30 = vcombine.low %v331_v18, %v335_v19  ;;  %v6764_v19 = vld [vmem:[#allocation3 + $0x10] sm:$0xff] }
  0xc9   :  { %v463_v21 = vld [vmem:[#allocation6 + $0x760] sm:$0xff]  ;;  %3387 = vmatpush2.bf16.msra.mxu1 %v5974_v23 }
  0xca   :  { %v5967_v25 = vcombine.high %v459_v20, %v463_v21  ;;  %v323_v26 = vld [vmem:[#allocation6 + $0x300] sm:$0xff]  ;;  %3347 = vmatprep.subr.bf16.mxu0 %v5839_v24  ;;  %v5966_v31 = vcombine.low %v459_v20, %v463_v21  ;;  %v6768_v20 = vcombine.low %v6748_v54, %v6748_v54 }
  0xcb   :  { %v327_v27 = vld [vmem:[#allocation6 + $0x320] sm:$0xff]  ;;  %3348 = vmatpush2.bf16.msra.mxu0 %v5838_v30 }
  0xcc   :  { %v451_v28 = vld [vmem:[#allocation6 + $0x700] sm:$0xff]  ;;  %v5831_v32 = vcombine.high %v323_v26, %v327_v27  ;;  %3388 = vmatprep.subr.bf16.mxu1 %v5967_v25  ;;  %v5830_v38 = vcombine.low %v323_v26, %v327_v27  ;;  %v6774_v27 = vcombine.high %v6764_v19, %v6764_v19 }
  0xcd   :  { %v455_v29 = vld [vmem:[#allocation6 + $0x720] sm:$0xff]  ;;  %3389 = vmatpush2.bf16.msra.mxu1 %v5966_v31 }
  0xce   :  { %v5959_v33 = vcombine.high %v451_v28, %v455_v29  ;;  %v315_v34 = vld [vmem:[#allocation6 + $0x2c0] sm:$0xff]  ;;  %3349 = vmatprep.subr.bf16.mxu0 %v5831_v32  ;;  %v5958_v39 = vcombine.low %v451_v28, %v455_v29  ;;  %v6779_v29 = vcombine.high %v6770_v22, %v6770_v22 }
  0xcf   :  { %v319_v35 = vld [vmem:[#allocation6 + $0x2e0] sm:$0xff]  ;;  %3350 = vmatpush2.bf16.msra.mxu0 %v5830_v38 }
  0xd0   :  { %v443_v36 = vld [vmem:[#allocation6 + $0x6c0] sm:$0xff]  ;;  %v5823_v40 = vcombine.high %v315_v34, %v319_v35  ;;  %3390 = vmatprep.subr.bf16.mxu1 %v5959_v33  ;;  %v5822_v46 = vcombine.low %v315_v34, %v319_v35 }
  0xd1   :  { %v447_v37 = vld [vmem:[#allocation6 + $0x6e0] sm:$0xff]  ;;  %3391 = vmatpush2.bf16.msra.mxu1 %v5958_v39 }
  0xd2   :  { %v5951_v41 = vcombine.high %v443_v36, %v447_v37  ;;  %v307_v42 = vld [vmem:[#allocation6 + $0x280] sm:$0xff]  ;;  %3351 = vmatprep.subr.bf16.mxu0 %v5823_v40  ;;  %v5950_v47 = vcombine.low %v443_v36, %v447_v37 }
  0xd3   :  { %v311_v43 = vld [vmem:[#allocation6 + $0x2a0] sm:$0xff]  ;;  %3352 = vmatpush2.bf16.msra.mxu0 %v5822_v46 }
  0xd4   :  { %v435_v44 = vld [vmem:[#allocation6 + $0x680] sm:$0xff]  ;;  %v5815_v48 = vcombine.high %v307_v42, %v311_v43  ;;  %3392 = vmatprep.subr.bf16.mxu1 %v5951_v41  ;;  %v5814_v56 = vcombine.low %v307_v42, %v311_v43 }
  0xd5   :  { %v439_v45 = vld [vmem:[#allocation6 + $0x6a0] sm:$0xff]  ;;  %3393 = vmatpush2.bf16.msra.mxu1 %v5950_v47 }
  0xd6   :  { %v5943_v49 = vcombine.high %v435_v44, %v439_v45  ;;  %v299_v50 = vld [vmem:[#allocation6 + $0x240] sm:$0xff]  ;;  %3353 = vmatprep.subr.bf16.mxu0 %v5815_v48  ;;  %v5942_v57 = vcombine.low %v435_v44, %v439_v45 }
  0xd7   :  { %v303_v51 = vld [vmem:[#allocation6 + $0x260] sm:$0xff]  ;;  %3354 = vmatpush2.bf16.msra.mxu0 %v5814_v56 }
  0xd8   :  { %v427_v52 = vld [vmem:[#allocation6 + $0x640] sm:$0xff]  ;;  %v5807_v60 = vcombine.high %v299_v50, %v303_v51  ;;  %3394 = vmatprep.subr.bf16.mxu1 %v5943_v49  ;;  %v5806_v2 = vcombine.low %v299_v50, %v303_v51 }
  0xd9   :  { %v431_v55 = vld [vmem:[#allocation6 + $0x660] sm:$0xff]  ;;  %3395 = vmatpush2.bf16.msra.mxu1 %v5942_v57 }
  0xda   :  { %v5935_v61 = vcombine.high %v427_v52, %v431_v55  ;;  %v291_v62 = vld [vmem:[#allocation6 + $0x200] sm:$0xff]  ;;  %3355 = vmatprep.subr.bf16.mxu0 %v5807_v60  ;;  %v5934_v3 = vcombine.low %v427_v52, %v431_v55 }
  0xdb   :  { %v295_v63 = vld [vmem:[#allocation6 + $0x220] sm:$0xff]  ;;  %3356 = vmatpush2.bf16.msra.mxu0 %v5806_v2 }
  0xdc   :  { %v419_v0 = vld [vmem:[#allocation6 + $0x600] sm:$0xff]  ;;  %v5799_v4 = vcombine.high %v291_v62, %v295_v63  ;;  %3396 = vmatprep.subr.bf16.mxu1 %v5935_v61  ;;  %v5798_v10 = vcombine.low %v291_v62, %v295_v63 }
  0xdd   :  { %v423_v1 = vld [vmem:[#allocation6 + $0x620] sm:$0xff]  ;;  %3397 = vmatpush2.bf16.msra.mxu1 %v5934_v3 }
  0xde   :  { %v5927_v5 = vcombine.high %v419_v0, %v423_v1  ;;  %v539_v6 = vld [vmem:[#allocation6 + $0x9c0] sm:$0xff]  ;;  %3357 = vmatprep.subr.bf16.mxu0 %v5799_v4  ;;  %v5926_v11 = vcombine.low %v419_v0, %v423_v1 }
  0xdf   :  { %v543_v7 = vld [vmem:[#allocation6 + $0x9e0] sm:$0xff]  ;;  %3358 = vmatpush2.bf16.msra.mxu0 %v5798_v10 }
  0xe0   :  { %v667_v8 = vld [vmem:[#allocation6 + $0xdc0] sm:$0xff]  ;;  %v6047_v12 = vcombine.high %v539_v6, %v543_v7  ;;  %3398 = vmatprep.subr.bf16.mxu1 %v5927_v5  ;;  %v6046_v21 = vcombine.low %v539_v6, %v543_v7 }
  0xe1   :  { %v671_v9 = vld [vmem:[#allocation6 + $0xde0] sm:$0xff]  ;;  %3399 = vmatpush2.bf16.msra.mxu1 %v5926_v11 }
  0xe2   :  { %v6175_v13 = vcombine.high %v667_v8, %v671_v9  ;;  %v531_v14 = vld [vmem:[#allocation6 + $0x980] sm:$0xff]  ;;  %3409 = vmatprep.subr.bf16.mxu0 %v6047_v12  ;;  %v6174_v23 = vcombine.low %v667_v8, %v671_v9  ;;  %3360 = vmatmul.mubr.bf16.vlgmr.msra.gmra.mxu0 %v6762_v16 }
  0xe3   :  { %v535_v15 = vld [vmem:[#allocation6 + $0x9a0] sm:$0xff]  ;;  %3410 = vmatpush1.bf16.msra.mxu0 %v6046_v21  ;;  %3441 = vmatprep.mubr.bf16.mxu0 %v6774_v27 }
  0xe4   :  { %v659_v17 = vld [vmem:[#allocation6 + $0xd80] sm:$0xff]  ;;  %v6039_v24 = vcombine.high %v531_v14, %v535_v15  ;;  %3450 = vmatprep.subr.bf16.mxu1 %v6175_v13  ;;  %3401 = vmatmul.mubr.bf16.vlgmr.msra.gmra.mxu1 %v6768_v20  ;;  %v6038_v30 = vcombine.low %v531_v14, %v535_v15 }
  0xe5   :  { %v663_v18 = vld [vmem:[#allocation6 + $0xda0] sm:$0xff]  ;;  %3451 = vmatpush1.bf16.msra.mxu1 %v6174_v23  ;;  %3482 = vmatprep.mubr.bf16.mxu1 %v6779_v29 }
  0xe6   :  { %v6167_v25 = vcombine.high %v659_v17, %v663_v18  ;;  %v523_v53 = vld [vmem:[#allocation6 + $0x940] sm:$0xff]  ;;  %3411 = vmatprep.subr.bf16.mxu0 %v6039_v24  ;;  %v6166_v31 = vcombine.low %v659_v17, %v663_v18 }
  0xe7   :  { %v527_v26 = vld [vmem:[#allocation6 + $0x960] sm:$0xff]  ;;  %3412 = vmatpush1.bf16.msra.mxu0 %v6038_v30 }
  0xe8   :  { %v651_v28 = vld [vmem:[#allocation6 + $0xd40] sm:$0xff]  ;;  %v6031_v32 = vcombine.high %v523_v53, %v527_v26  ;;  %3452 = vmatprep.subr.bf16.mxu1 %v6167_v25  ;;  %v6030_v38 = vcombine.low %v523_v53, %v527_v26 }
  0xe9   :  { %v655_v54 = vld [vmem:[#allocation6 + $0xd60] sm:$0xff]  ;;  %3453 = vmatpush1.bf16.msra.mxu1 %v6166_v31 }
  0xea   :  { %v6159_v33 = vcombine.high %v651_v28, %v655_v54  ;;  %v515_v34 = vld [vmem:[#allocation6 + $0x900] sm:$0xff]  ;;  %3413 = vmatprep.subr.bf16.mxu0 %v6031_v32  ;;  %v6158_v39 = vcombine.low %v651_v28, %v655_v54 }
  0xeb   :  { %v519_v35 = vld [vmem:[#allocation6 + $0x920] sm:$0xff]  ;;  %3414 = vmatpush1.bf16.msra.mxu0 %v6030_v38 }
  0xec   :  { %v643_v36 = vld [vmem:[#allocation6 + $0xd00] sm:$0xff]  ;;  %v6023_v40 = vcombine.high %v515_v34, %v519_v35  ;;  %3454 = vmatprep.subr.bf16.mxu1 %v6159_v33  ;;  %v6022_v46 = vcombine.low %v515_v34, %v519_v35 }
  0xed   :  { %v647_v37 = vld [vmem:[#allocation6 + $0xd20] sm:$0xff]  ;;  %3455 = vmatpush1.bf16.msra.mxu1 %v6158_v39 }
  0xee   :  { %v6151_v41 = vcombine.high %v643_v36, %v647_v37  ;;  %v507_v42 = vld [vmem:[#allocation6 + $0x8c0] sm:$0xff]  ;;  %3415 = vmatprep.subr.bf16.mxu0 %v6023_v40  ;;  %v6150_v47 = vcombine.low %v643_v36, %v647_v37 }
  0xef   :  { %v511_v43 = vld [vmem:[#allocation6 + $0x8e0] sm:$0xff]  ;;  %3416 = vmatpush1.bf16.msra.mxu0 %v6022_v46 }
  0xf0   :  { %v635_v44 = vld [vmem:[#allocation6 + $0xcc0] sm:$0xff]  ;;  %v6015_v48 = vcombine.high %v507_v42, %v511_v43  ;;  %3456 = vmatprep.subr.bf16.mxu1 %v6151_v41  ;;  %v6014_v56 = vcombine.low %v507_v42, %v511_v43 }
  0xf1   :  { %v639_v45 = vld [vmem:[#allocation6 + $0xce0] sm:$0xff]  ;;  %3457 = vmatpush1.bf16.msra.mxu1 %v6150_v47 }
  0xf2   :  { %v6143_v49 = vcombine.high %v635_v44, %v639_v45  ;;  %v499_v50 = vld [vmem:[#allocation6 + $0x880] sm:$0xff]  ;;  %3417 = vmatprep.subr.bf16.mxu0 %v6015_v48  ;;  %v6142_v57 = vcombine.low %v635_v44, %v639_v45 }
  0xf3   :  { %v503_v51 = vld [vmem:[#allocation6 + $0x8a0] sm:$0xff]  ;;  %3418 = vmatpush1.bf16.msra.mxu0 %v6014_v56 }
  0xf4   :  { %v627_v52 = vld [vmem:[#allocation6 + $0xc80] sm:$0xff]  ;;  %v6007_v60 = vcombine.high %v499_v50, %v503_v51  ;;  %3458 = vmatprep.subr.bf16.mxu1 %v6143_v49  ;;  %v6006_v2 = vcombine.low %v499_v50, %v503_v51 }
  0xf5   :  { %v631_v55 = vld [vmem:[#allocation6 + $0xca0] sm:$0xff]  ;;  %3459 = vmatpush1.bf16.msra.mxu1 %v6142_v57 }
  0xf6   :  { %v6135_v61 = vcombine.high %v627_v52, %v631_v55  ;;  %v491_v62 = vld [vmem:[#allocation6 + $0x840] sm:$0xff]  ;;  %3419 = vmatprep.subr.bf16.mxu0 %v6007_v60  ;;  %v6134_v3 = vcombine.low %v627_v52, %v631_v55 }
  0xf7   :  { %v495_v63 = vld [vmem:[#allocation6 + $0x860] sm:$0xff]  ;;  %3420 = vmatpush1.bf16.msra.mxu0 %v6006_v2 }
  0xf8   :  { %v619_v0 = vld [vmem:[#allocation6 + $0xc40] sm:$0xff]  ;;  %v5999_v4 = vcombine.high %v491_v62, %v495_v63  ;;  %3460 = vmatprep.subr.bf16.mxu1 %v6135_v61  ;;  %v5998_v10 = vcombine.low %v491_v62, %v495_v63 }
  0xf9   :  { %v623_v1 = vld [vmem:[#allocation6 + $0xc60] sm:$0xff]  ;;  %3461 = vmatpush1.bf16.msra.mxu1 %v6134_v3 }
  0xfa   :  { %v6127_v5 = vcombine.high %v619_v0, %v623_v1  ;;  %v483_v6 = vld [vmem:[#allocation6 + $0x800] sm:$0xff]  ;;  %3421 = vmatprep.subr.bf16.mxu0 %v5999_v4  ;;  %v6126_v11 = vcombine.low %v619_v0, %v623_v1 }
  0xfb   :  { %v487_v7 = vld [vmem:[#allocation6 + $0x820] sm:$0xff]  ;;  %3422 = vmatpush1.bf16.msra.mxu0 %v5998_v10 }
  0xfc   :  { %v611_v8 = vld [vmem:[#allocation6 + $0xc00] sm:$0xff]  ;;  %v5991_v12 = vcombine.high %v483_v6, %v487_v7  ;;  %3462 = vmatprep.subr.bf16.mxu1 %v6127_v5  ;;  %v5990_v21 = vcombine.low %v483_v6, %v487_v7 }
  0xfd   :  { %v615_v9 = vld [vmem:[#allocation6 + $0xc20] sm:$0xff]  ;;  %3463 = vmatpush1.bf16.msra.mxu1 %v6126_v11 }
  0xfe   :  { %v6119_v13 = vcombine.high %v611_v8, %v615_v9  ;;  %v603_v14 = vld [vmem:[#allocation6 + $0xbc0] sm:$0xff]  ;;  %3423 = vmatprep.subr.bf16.mxu0 %v5991_v12  ;;  %v6118_v23 = vcombine.low %v611_v8, %v615_v9 }
  0xff   :  { %v607_v15 = vld [vmem:[#allocation6 + $0xbe0] sm:$0xff]  ;;  %3424 = vmatpush1.bf16.msra.mxu0 %v5990_v21 }
 0x100   :  { %v731_v17 = vld [vmem:[#allocation6 + $0xfc0] sm:$0xff]  ;;  %v6111_v24 = vcombine.high %v603_v14, %v607_v15  ;;  %3464 = vmatprep.subr.bf16.mxu1 %v6119_v13  ;;  %v6110_v30 = vcombine.low %v603_v14, %v607_v15 }
 0x101   :  { %v735_v18 = vld [vmem:[#allocation6 + $0xfe0] sm:$0xff]  ;;  %3465 = vmatpush1.bf16.msra.mxu1 %v6118_v23 }
 0x102   :  { %v6239_v25 = vcombine.high %v731_v17, %v735_v18  ;;  %v595_v53 = vld [vmem:[#allocation6 + $0xb80] sm:$0xff]  ;;  %3425 = vmatprep.subr.bf16.mxu0 %v6111_v24  ;;  %v6238_v31 = vcombine.low %v731_v17, %v735_v18 }
 0x103   :  { %v599_v26 = vld [vmem:[#allocation6 + $0xba0] sm:$0xff]  ;;  %3426 = vmatpush2.bf16.msra.mxu0 %v6110_v30 }
 0x104   :  { %v723_v28 = vld [vmem:[#allocation6 + $0xf80] sm:$0xff]  ;;  %v6103_v32 = vcombine.high %v595_v53, %v599_v26  ;;  %3466 = vmatprep.subr.bf16.mxu1 %v6239_v25  ;;  %v6102_v38 = vcombine.low %v595_v53, %v599_v26  ;;  %v284_v53 = vld [vmem:[#allocation6 + $0x1c8] sm:$0xff] }
 0x105   :  { %v727_v54 = vld [vmem:[#allocation6 + $0xfa0] sm:$0xff]  ;;  %3467 = vmatpush2.bf16.msra.mxu1 %v6238_v31  ;;  %v288_v26 = vld [vmem:[#allocation6 + $0x1e8] sm:$0xff] }
 0x106   :  { %v6231_v33 = vcombine.high %v723_v28, %v727_v54  ;;  %v587_v34 = vld [vmem:[#allocation6 + $0xb40] sm:$0xff]  ;;  %3427 = vmatprep.subr.bf16.mxu0 %v6103_v32  ;;  %v6230_v39 = vcombine.low %v723_v28, %v727_v54  ;;  %v412_v28 = vld [vmem:[#allocation6 + $0x5c8] sm:$0xff]  ;;  %v5793_v32 = vcombine.high %v284_v53, %v288_v26 }
 0x107   :  { %v591_v35 = vld [vmem:[#allocation6 + $0xb60] sm:$0xff]  ;;  %3428 = vmatpush2.bf16.msra.mxu0 %v6102_v38  ;;  %v416_v54 = vld [vmem:[#allocation6 + $0x5e8] sm:$0xff] }
 0x108   :  { %v715_v36 = vld [vmem:[#allocation6 + $0xf40] sm:$0xff]  ;;  %v6095_v40 = vcombine.high %v587_v34, %v591_v35  ;;  %3468 = vmatprep.subr.bf16.mxu1 %v6231_v33  ;;  %v6094_v46 = vcombine.low %v587_v34, %v591_v35  ;;  %v5921_v33 = vcombine.high %v412_v28, %v416_v54  ;;  %v276_v34 = vld [vmem:[#allocation6 + $0x188] sm:$0xff] }
 0x109   :  { %v719_v37 = vld [vmem:[#allocation6 + $0xf60] sm:$0xff]  ;;  %3469 = vmatpush2.bf16.msra.mxu1 %v6230_v39  ;;  %v280_v35 = vld [vmem:[#allocation6 + $0x1a8] sm:$0xff]  ;;  %v6790_v39 = vcombine.low %v6770_v22, %v6770_v22 }
 0x10a   :  { %v6223_v41 = vcombine.high %v715_v36, %v719_v37  ;;  %v579_v42 = vld [vmem:[#allocation6 + $0xb00] sm:$0xff]  ;;  %3429 = vmatprep.subr.bf16.mxu0 %v6095_v40  ;;  %v6222_v47 = vcombine.low %v715_v36, %v719_v37  ;;  %v6786_v36 = vcombine.low %v6764_v19, %v6764_v19  ;;  %v404_v37 = vld [vmem:[#allocation6 + $0x588] sm:$0xff]  ;;  %v5792_v40 = vcombine.low %v284_v53, %v288_v26 }
 0x10b   :  { %v583_v43 = vld [vmem:[#allocation6 + $0xb20] sm:$0xff]  ;;  %3430 = vmatpush2.bf16.msra.mxu0 %v6094_v46  ;;  %v408_v38 = vld [vmem:[#allocation6 + $0x5a8] sm:$0xff] }
 0x10c   :  { %v707_v44 = vld [vmem:[#allocation6 + $0xf00] sm:$0xff]  ;;  %v6087_v48 = vcombine.high %v579_v42, %v583_v43  ;;  %3470 = vmatprep.subr.bf16.mxu1 %v6223_v41  ;;  %v6086_v56 = vcombine.low %v579_v42, %v583_v43  ;;  %v5920_v41 = vcombine.low %v412_v28, %v416_v54  ;;  %v5785_v42 = vcombine.high %v276_v34, %v280_v35  ;;  %v396_v19 = vld [vmem:[#allocation6 + $0x548] sm:$0xff] }
 0x10d   :  { %v711_v45 = vld [vmem:[#allocation6 + $0xf20] sm:$0xff]  ;;  %3471 = vmatpush2.bf16.msra.mxu1 %v6222_v47  ;;  %v5913_v43 = vcombine.high %v404_v37, %v408_v38  ;;  %v400_v46 = vld [vmem:[#allocation6 + $0x568] sm:$0xff]  ;;  %v5784_v47 = vcombine.low %v276_v34, %v280_v35  ;;  %v5912_v22 = vcombine.low %v404_v37, %v408_v38 }
 0x10e   :  { %v6215_v49 = vcombine.high %v707_v44, %v711_v45  ;;  %v571_v50 = vld [vmem:[#allocation6 + $0xac0] sm:$0xff]  ;;  %3431 = vmatprep.subr.bf16.mxu0 %v6087_v48  ;;  %v6214_v57 = vcombine.low %v707_v44, %v711_v45  ;;  %v268_v44 = vld [vmem:[#allocation6 + $0x148] sm:$0xff] }
 0x10f   :  { %v575_v51 = vld [vmem:[#allocation6 + $0xae0] sm:$0xff]  ;;  %3432 = vmatpush2.bf16.msra.mxu0 %v6086_v56  ;;  %v272_v45 = vld [vmem:[#allocation6 + $0x168] sm:$0xff] }
 0x110   :  { %v699_v52 = vld [vmem:[#allocation6 + $0xec0] sm:$0xff]  ;;  %v6079_v60 = vcombine.high %v571_v50, %v575_v51  ;;  %3472 = vmatprep.subr.bf16.mxu1 %v6215_v49  ;;  %v6078_v2 = vcombine.low %v571_v50, %v575_v51  ;;  %v5777_v48 = vcombine.high %v268_v44, %v272_v45  ;;  %v5905_v49 = vcombine.high %v396_v19, %v400_v46  ;;  %v260_v50 = vld [vmem:[#allocation6 + $0x108] sm:$0xff] }
 0x111   :  { %v703_v55 = vld [vmem:[#allocation6 + $0xee0] sm:$0xff]  ;;  %3473 = vmatpush2.bf16.msra.mxu1 %v6214_v57  ;;  %v264_v51 = vld [vmem:[#allocation6 + $0x128] sm:$0xff]  ;;  %v5776_v56 = vcombine.low %v268_v44, %v272_v45  ;;  %v5904_v57 = vcombine.low %v396_v19, %v400_v46 }
 0x112   :  { %v6207_v61 = vcombine.high %v699_v52, %v703_v55  ;;  %v563_v62 = vld [vmem:[#allocation6 + $0xa80] sm:$0xff]  ;;  %3433 = vmatprep.subr.bf16.mxu0 %v6079_v60  ;;  %v6206_v3 = vcombine.low %v699_v52, %v703_v55  ;;  %v388_v52 = vld [vmem:[#allocation6 + $0x508] sm:$0xff]  ;;  %v5769_v60 = vcombine.high %v260_v50, %v264_v51 }
 0x113   :  { %v567_v63 = vld [vmem:[#allocation6 + $0xaa0] sm:$0xff]  ;;  %3434 = vmatpush2.bf16.msra.mxu0 %v6078_v2  ;;  %v392_v55 = vld [vmem:[#allocation6 + $0x528] sm:$0xff]  ;;  %v5768_v2 = vcombine.low %v260_v50, %v264_v51 }
 0x114   :  { %v691_v0 = vld [vmem:[#allocation6 + $0xe80] sm:$0xff]  ;;  %v6071_v4 = vcombine.high %v563_v62, %v567_v63  ;;  %3474 = vmatprep.subr.bf16.mxu1 %v6207_v61  ;;  %v6070_v10 = vcombine.low %v563_v62, %v567_v63  ;;  %v5897_v61 = vcombine.high %v388_v52, %v392_v55  ;;  %v252_v62 = vld [vmem:[#allocation6 + $0xc8] sm:$0xff] }
 0x115   :  { %v695_v1 = vld [vmem:[#allocation6 + $0xea0] sm:$0xff]  ;;  %3475 = vmatpush2.bf16.msra.mxu1 %v6206_v3  ;;  %v256_v63 = vld [vmem:[#allocation6 + $0xe8] sm:$0xff]  ;;  %v5896_v3 = vcombine.low %v388_v52, %v392_v55 }
 0x116   :  { %v6199_v5 = vcombine.high %v691_v0, %v695_v1  ;;  %v555_v6 = vld [vmem:[#allocation6 + $0xa40] sm:$0xff]  ;;  %3435 = vmatprep.subr.bf16.mxu0 %v6071_v4  ;;  %v6198_v11 = vcombine.low %v691_v0, %v695_v1  ;;  %v380_v0 = vld [vmem:[#allocation6 + $0x4c8] sm:$0xff]  ;;  %v5761_v4 = vcombine.high %v252_v62, %v256_v63 }
 0x117   :  { %v559_v7 = vld [vmem:[#allocation6 + $0xa60] sm:$0xff]  ;;  %3436 = vmatpush2.bf16.msra.mxu0 %v6070_v10  ;;  %v384_v1 = vld [vmem:[#allocation6 + $0x4e8] sm:$0xff]  ;;  %v5760_v10 = vcombine.low %v252_v62, %v256_v63 }
 0x118   :  { %v683_v8 = vld [vmem:[#allocation6 + $0xe40] sm:$0xff]  ;;  %v6063_v12 = vcombine.high %v555_v6, %v559_v7  ;;  %3476 = vmatprep.subr.bf16.mxu1 %v6199_v5  ;;  %v6062_v21 = vcombine.low %v555_v6, %v559_v7  ;;  %v5889_v5 = vcombine.high %v380_v0, %v384_v1  ;;  %v244_v6 = vld [vmem:[#allocation6 + $0x88] sm:$0xff] }
 0x119   :  { %v687_v9 = vld [vmem:[#allocation6 + $0xe60] sm:$0xff]  ;;  %3477 = vmatpush2.bf16.msra.mxu1 %v6198_v11  ;;  %v248_v7 = vld [vmem:[#allocation6 + $0xa8] sm:$0xff]  ;;  %v5888_v11 = vcombine.low %v380_v0, %v384_v1 }
 0x11a   :  { %v6191_v13 = vcombine.high %v683_v8, %v687_v9  ;;  %v547_v14 = vld [vmem:[#allocation6 + $0xa00] sm:$0xff]  ;;  %3437 = vmatprep.subr.bf16.mxu0 %v6063_v12  ;;  %v6190_v23 = vcombine.low %v683_v8, %v687_v9  ;;  %v372_v8 = vld [vmem:[#allocation6 + $0x488] sm:$0xff]  ;;  %v5753_v12 = vcombine.high %v244_v6, %v248_v7 }
 0x11b   :  { %v551_v15 = vld [vmem:[#allocation6 + $0xa20] sm:$0xff]  ;;  %3438 = vmatpush2.bf16.msra.mxu0 %v6062_v21  ;;  %v376_v9 = vld [vmem:[#allocation6 + $0x4a8] sm:$0xff]  ;;  %v5752_v21 = vcombine.low %v244_v6, %v248_v7 }
 0x11c   :  { %v675_v17 = vld [vmem:[#allocation6 + $0xe00] sm:$0xff]  ;;  %v6055_v24 = vcombine.high %v547_v14, %v551_v15  ;;  %3478 = vmatprep.subr.bf16.mxu1 %v6191_v13  ;;  %v6054_v30 = vcombine.low %v547_v14, %v551_v15  ;;  %v5881_v13 = vcombine.high %v372_v8, %v376_v9  ;;  %v236_v14 = vld [vmem:[#allocation6 + $0x48] sm:$0xff] }
 0x11d   :  { %v679_v18 = vld [vmem:[#allocation6 + $0xe20] sm:$0xff]  ;;  %3479 = vmatpush2.bf16.msra.mxu1 %v6190_v23  ;;  %v240_v15 = vld [vmem:[#allocation6 + $0x68] sm:$0xff]  ;;  %v5880_v23 = vcombine.low %v372_v8, %v376_v9 }
 0x11e   :  { %v6183_v25 = vcombine.high %v675_v17, %v679_v18  ;;  %3439 = vmatprep.subr.bf16.mxu0 %v6055_v24  ;;  %v6182_v31 = vcombine.low %v675_v17, %v679_v18  ;;  %v364_v17 = vld [vmem:[#allocation6 + $0x448] sm:$0xff]  ;;  %v5745_v24 = vcombine.high %v236_v14, %v240_v15 }
 0x11f   :  { %3440 = vmatpush2.bf16.msra.mxu0 %v6054_v30  ;;  %v368_v18 = vld [vmem:[#allocation6 + $0x468] sm:$0xff]  ;;  %v5744_v30 = vcombine.low %v236_v14, %v240_v15 }
 0x120   :  { %3480 = vmatprep.subr.bf16.mxu1 %v6183_v25  ;;  %3491 = vmatprep.subr.bf16.mxu0 %v5793_v32  ;;  %v5873_v25 = vcombine.high %v364_v17, %v368_v18  ;;  %v228_v53 = vld [vmem:[#allocation6 + $0x8] sm:$0xff] }
 0x121   :  { %3481 = vmatpush2.bf16.msra.mxu1 %v6182_v31  ;;  %v232_v26 = vld [vmem:[#allocation6 + $0x28] sm:$0xff]  ;;  %v5872_v31 = vcombine.low %v364_v17, %v368_v18 }
 0x122   :  { %3532 = vmatprep.subr.bf16.mxu1 %v5921_v33  ;;  %3442 = vmatmul.mubr.bf16.vlgmr.msra.gmra.mxu0 %v6786_v36  ;;  %v356_v28 = vld [vmem:[#allocation6 + $0x408] sm:$0xff]  ;;  %v5737_v32 = vcombine.high %v228_v53, %v232_v26 }
 0x123   :  { %3492 = vmatpush1.bf16.msra.mxu0 %v5792_v40  ;;  %3523 = vmatprep.mubr.bf16.mxu0 %v6752_v58  ;;  %v360_v54 = vld [vmem:[#allocation6 + $0x428] sm:$0xff]  ;;  %v5736_v40 = vcombine.low %v228_v53, %v232_v26 }
 0x124   :  { %3483 = vmatmul.mubr.bf16.vlgmr.msra.gmra.mxu1 %v6790_v39  ;;  %3493 = vmatprep.subr.bf16.mxu0 %v5785_v42  ;;  %v5865_v33 = vcombine.high %v356_v28, %v360_v54  ;;  %v348_v34 = vld [vmem:[#allocation6 + $0x3c8] sm:$0xff] }
 0x125   :  { %3533 = vmatpush1.bf16.msra.mxu1 %v5920_v41  ;;  %3564 = vmatprep.mubr.bf16.mxu1 %v6756_v59  ;;  %v352_v35 = vld [vmem:[#allocation6 + $0x3e8] sm:$0xff]  ;;  %v5864_v41 = vcombine.low %v356_v28, %v360_v54 }
 0x126   :  { %3534 = vmatprep.subr.bf16.mxu1 %v5913_v43  ;;  %v476_v37 = vld [vmem:[#allocation6 + $0x7c8] sm:$0xff]  ;;  %v5857_v42 = vcombine.high %v348_v34, %v352_v35 }
 0x127   :  { %3494 = vmatpush1.bf16.msra.mxu0 %v5784_v47  ;;  %v480_v38 = vld [vmem:[#allocation6 + $0x7e8] sm:$0xff]  ;;  %v5856_v47 = vcombine.low %v348_v34, %v352_v35 }
 0x128   :  { %3495 = vmatprep.subr.bf16.mxu0 %v5777_v48  ;;  %v5985_v43 = vcombine.high %v476_v37, %v480_v38  ;;  %v340_v44 = vld [vmem:[#allocation6 + $0x388] sm:$0xff] }
 0x129   :  { %3535 = vmatpush1.bf16.msra.mxu1 %v5912_v22  ;;  %v344_v45 = vld [vmem:[#allocation6 + $0x3a8] sm:$0xff]  ;;  %v5984_v22 = vcombine.low %v476_v37, %v480_v38 }
 0x12a   :  { %3536 = vmatprep.subr.bf16.mxu1 %v5905_v49  ;;  %v468_v19 = vld [vmem:[#allocation6 + $0x788] sm:$0xff]  ;;  %v5849_v48 = vcombine.high %v340_v44, %v344_v45 }
 0x12b   :  { %3496 = vmatpush1.bf16.msra.mxu0 %v5776_v56  ;;  %v472_v46 = vld [vmem:[#allocation6 + $0x7a8] sm:$0xff]  ;;  %v5848_v56 = vcombine.low %v340_v44, %v344_v45 }
 0x12c   :  { %3497 = vmatprep.subr.bf16.mxu0 %v5769_v60  ;;  %v5977_v49 = vcombine.high %v468_v19, %v472_v46  ;;  %v332_v50 = vld [vmem:[#allocation6 + $0x348] sm:$0xff] }
 0x12d   :  { %3537 = vmatpush1.bf16.msra.mxu1 %v5904_v57  ;;  %v336_v51 = vld [vmem:[#allocation6 + $0x368] sm:$0xff]  ;;  %v5976_v57 = vcombine.low %v468_v19, %v472_v46 }
 0x12e   :  { %3538 = vmatprep.subr.bf16.mxu1 %v5897_v61  ;;  %v460_v52 = vld [vmem:[#allocation6 + $0x748] sm:$0xff]  ;;  %v5841_v60 = vcombine.high %v332_v50, %v336_v51 }
 0x12f   :  { %3498 = vmatpush1.bf16.msra.mxu0 %v5768_v2  ;;  %v464_v55 = vld [vmem:[#allocation6 + $0x768] sm:$0xff]  ;;  %v5840_v2 = vcombine.low %v332_v50, %v336_v51 }
 0x130   :  { %3499 = vmatprep.subr.bf16.mxu0 %v5761_v4  ;;  %v5969_v61 = vcombine.high %v460_v52, %v464_v55  ;;  %v324_v62 = vld [vmem:[#allocation6 + $0x308] sm:$0xff] }
 0x131   :  { %3539 = vmatpush1.bf16.msra.mxu1 %v5896_v3  ;;  %v328_v63 = vld [vmem:[#allocation6 + $0x328] sm:$0xff]  ;;  %v5968_v3 = vcombine.low %v460_v52, %v464_v55 }
 0x132   :  { %3540 = vmatprep.subr.bf16.mxu1 %v5889_v5  ;;  %v452_v0 = vld [vmem:[#allocation6 + $0x708] sm:$0xff]  ;;  %v5833_v4 = vcombine.high %v324_v62, %v328_v63 }
 0x133   :  { %3500 = vmatpush1.bf16.msra.mxu0 %v5760_v10  ;;  %v456_v1 = vld [vmem:[#allocation6 + $0x728] sm:$0xff]  ;;  %v5832_v10 = vcombine.low %v324_v62, %v328_v63 }
 0x134   :  { %3501 = vmatprep.subr.bf16.mxu0 %v5753_v12  ;;  %v5961_v5 = vcombine.high %v452_v0, %v456_v1  ;;  %v316_v6 = vld [vmem:[#allocation6 + $0x2c8] sm:$0xff] }
 0x135   :  { %3541 = vmatpush1.bf16.msra.mxu1 %v5888_v11  ;;  %v320_v7 = vld [vmem:[#allocation6 + $0x2e8] sm:$0xff]  ;;  %v5960_v11 = vcombine.low %v452_v0, %v456_v1 }
 0x136   :  { %3542 = vmatprep.subr.bf16.mxu1 %v5881_v13  ;;  %v444_v8 = vld [vmem:[#allocation6 + $0x6c8] sm:$0xff]  ;;  %v5825_v12 = vcombine.high %v316_v6, %v320_v7 }
 0x137   :  { %3502 = vmatpush1.bf16.msra.mxu0 %v5752_v21  ;;  %v448_v9 = vld [vmem:[#allocation6 + $0x6e8] sm:$0xff]  ;;  %v5824_v21 = vcombine.low %v316_v6, %v320_v7 }
 0x138   :  { %3503 = vmatprep.subr.bf16.mxu0 %v5745_v24  ;;  %v5953_v13 = vcombine.high %v444_v8, %v448_v9  ;;  %v308_v14 = vld [vmem:[#allocation6 + $0x288] sm:$0xff] }
 0x139   :  { %3543 = vmatpush1.bf16.msra.mxu1 %v5880_v23  ;;  %v312_v15 = vld [vmem:[#allocation6 + $0x2a8] sm:$0xff]  ;;  %v5952_v23 = vcombine.low %v444_v8, %v448_v9 }
 0x13a   :  { %3544 = vmatprep.subr.bf16.mxu1 %v5873_v25  ;;  %v436_v17 = vld [vmem:[#allocation6 + $0x688] sm:$0xff]  ;;  %v5817_v24 = vcombine.high %v308_v14, %v312_v15 }
 0x13b   :  { %3504 = vmatpush1.bf16.msra.mxu0 %v5744_v30  ;;  %v440_v18 = vld [vmem:[#allocation6 + $0x6a8] sm:$0xff]  ;;  %v5816_v30 = vcombine.low %v308_v14, %v312_v15 }
 0x13c   :  { %3505 = vmatprep.subr.bf16.mxu0 %v5737_v32  ;;  %v5945_v25 = vcombine.high %v436_v17, %v440_v18  ;;  %v300_v53 = vld [vmem:[#allocation6 + $0x248] sm:$0xff] }
 0x13d   :  { %3545 = vmatpush1.bf16.msra.mxu1 %v5872_v31  ;;  %v304_v26 = vld [vmem:[#allocation6 + $0x268] sm:$0xff]  ;;  %v5944_v31 = vcombine.low %v436_v17, %v440_v18 }
 0x13e   :  { %3546 = vmatprep.subr.bf16.mxu1 %v5865_v33  ;;  %v428_v28 = vld [vmem:[#allocation6 + $0x648] sm:$0xff]  ;;  %v5809_v32 = vcombine.high %v300_v53, %v304_v26 }
 0x13f   :  { %3506 = vmatpush1.bf16.msra.mxu0 %v5736_v40  ;;  %v432_v54 = vld [vmem:[#allocation6 + $0x668] sm:$0xff]  ;;  %v5808_v40 = vcombine.low %v300_v53, %v304_v26 }
 0x140   :  { %3507 = vmatprep.subr.bf16.mxu0 %v5857_v42  ;;  %v5937_v33 = vcombine.high %v428_v28, %v432_v54  ;;  %v292_v34 = vld [vmem:[#allocation6 + $0x208] sm:$0xff] }
 0x141   :  { %3547 = vmatpush1.bf16.msra.mxu1 %v5864_v41  ;;  %v296_v35 = vld [vmem:[#allocation6 + $0x228] sm:$0xff]  ;;  %v5936_v41 = vcombine.low %v428_v28, %v432_v54 }
 0x142   :  { %3548 = vmatprep.subr.bf16.mxu1 %v5985_v43  ;;  %v420_v37 = vld [vmem:[#allocation6 + $0x608] sm:$0xff]  ;;  %v5801_v42 = vcombine.high %v292_v34, %v296_v35 }
 0x143   :  { %3508 = vmatpush2.bf16.msra.mxu0 %v5856_v47  ;;  %v424_v38 = vld [vmem:[#allocation6 + $0x628] sm:$0xff]  ;;  %v5800_v47 = vcombine.low %v292_v34, %v296_v35 }
 0x144   :  { %3509 = vmatprep.subr.bf16.mxu0 %v5849_v48  ;;  %v5929_v43 = vcombine.high %v420_v37, %v424_v38  ;;  %v540_v44 = vld [vmem:[#allocation6 + $0x9c8] sm:$0xff] }
 0x145   :  { %3549 = vmatpush2.bf16.msra.mxu1 %v5984_v22  ;;  %v544_v45 = vld [vmem:[#allocation6 + $0x9e8] sm:$0xff]  ;;  %v5928_v22 = vcombine.low %v420_v37, %v424_v38 }
 0x146   :  { %3550 = vmatprep.subr.bf16.mxu1 %v5977_v49  ;;  %v668_v19 = vld [vmem:[#allocation6 + $0xdc8] sm:$0xff]  ;;  %v6049_v48 = vcombine.high %v540_v44, %v544_v45 }
 0x147   :  { %3510 = vmatpush2.bf16.msra.mxu0 %v5848_v56  ;;  %v672_v46 = vld [vmem:[#allocation6 + $0xde8] sm:$0xff]  ;;  %v6048_v56 = vcombine.low %v540_v44, %v544_v45 }
 0x148   :  { %3511 = vmatprep.subr.bf16.mxu0 %v5841_v60  ;;  %v6177_v49 = vcombine.high %v668_v19, %v672_v46  ;;  %v532_v50 = vld [vmem:[#allocation6 + $0x988] sm:$0xff] }
 0x149   :  { %3551 = vmatpush2.bf16.msra.mxu1 %v5976_v57  ;;  %v536_v51 = vld [vmem:[#allocation6 + $0x9a8] sm:$0xff]  ;;  %v6176_v57 = vcombine.low %v668_v19, %v672_v46 }
 0x14a   :  { %3552 = vmatprep.subr.bf16.mxu1 %v5969_v61  ;;  %v660_v52 = vld [vmem:[#allocation6 + $0xd88] sm:$0xff]  ;;  %v6041_v60 = vcombine.high %v532_v50, %v536_v51 }
 0x14b   :  { %3512 = vmatpush2.bf16.msra.mxu0 %v5840_v2  ;;  %v664_v55 = vld [vmem:[#allocation6 + $0xda8] sm:$0xff]  ;;  %v6040_v2 = vcombine.low %v532_v50, %v536_v51 }
 0x14c   :  { %3513 = vmatprep.subr.bf16.mxu0 %v5833_v4  ;;  %v6169_v61 = vcombine.high %v660_v52, %v664_v55  ;;  %v524_v62 = vld [vmem:[#allocation6 + $0x948] sm:$0xff] }
 0x14d   :  { %3553 = vmatpush2.bf16.msra.mxu1 %v5968_v3  ;;  %v528_v63 = vld [vmem:[#allocation6 + $0x968] sm:$0xff]  ;;  %v6168_v3 = vcombine.low %v660_v52, %v664_v55 }
 0x14e   :  { %3554 = vmatprep.subr.bf16.mxu1 %v5961_v5  ;;  %v652_v0 = vld [vmem:[#allocation6 + $0xd48] sm:$0xff]  ;;  %v6033_v4 = vcombine.high %v524_v62, %v528_v63 }
 0x14f   :  { %3514 = vmatpush2.bf16.msra.mxu0 %v5832_v10  ;;  %v656_v1 = vld [vmem:[#allocation6 + $0xd68] sm:$0xff]  ;;  %v6032_v10 = vcombine.low %v524_v62, %v528_v63 }
 0x150   :  { %3515 = vmatprep.subr.bf16.mxu0 %v5825_v12  ;;  %v6161_v5 = vcombine.high %v652_v0, %v656_v1  ;;  %v516_v6 = vld [vmem:[#allocation6 + $0x908] sm:$0xff] }
 0x151   :  { %3555 = vmatpush2.bf16.msra.mxu1 %v5960_v11  ;;  %v520_v7 = vld [vmem:[#allocation6 + $0x928] sm:$0xff]  ;;  %v6160_v11 = vcombine.low %v652_v0, %v656_v1 }
 0x152   :  { %3556 = vmatprep.subr.bf16.mxu1 %v5953_v13  ;;  %v644_v8 = vld [vmem:[#allocation6 + $0xd08] sm:$0xff]  ;;  %v6025_v12 = vcombine.high %v516_v6, %v520_v7 }
 0x153   :  { %3516 = vmatpush2.bf16.msra.mxu0 %v5824_v21  ;;  %v648_v9 = vld [vmem:[#allocation6 + $0xd28] sm:$0xff]  ;;  %v6024_v21 = vcombine.low %v516_v6, %v520_v7 }
 0x154   :  { %3517 = vmatprep.subr.bf16.mxu0 %v5817_v24  ;;  %v6153_v13 = vcombine.high %v644_v8, %v648_v9  ;;  %v508_v14 = vld [vmem:[#allocation6 + $0x8c8] sm:$0xff] }
 0x155   :  { %3557 = vmatpush2.bf16.msra.mxu1 %v5952_v23  ;;  %v512_v15 = vld [vmem:[#allocation6 + $0x8e8] sm:$0xff]  ;;  %v6152_v23 = vcombine.low %v644_v8, %v648_v9 }
 0x156   :  { %3558 = vmatprep.subr.bf16.mxu1 %v5945_v25  ;;  %v636_v17 = vld [vmem:[#allocation6 + $0xcc8] sm:$0xff]  ;;  %v6017_v24 = vcombine.high %v508_v14, %v512_v15 }
 0x157   :  { %3518 = vmatpush2.bf16.msra.mxu0 %v5816_v30  ;;  %v640_v18 = vld [vmem:[#allocation6 + $0xce8] sm:$0xff]  ;;  %v6016_v30 = vcombine.low %v508_v14, %v512_v15 }
 0x158   :  { %3519 = vmatprep.subr.bf16.mxu0 %v5809_v32  ;;  %v6145_v25 = vcombine.high %v636_v17, %v640_v18  ;;  %v500_v53 = vld [vmem:[#allocation6 + $0x888] sm:$0xff] }
 0x159   :  { %3559 = vmatpush2.bf16.msra.mxu1 %v5944_v31  ;;  %v504_v26 = vld [vmem:[#allocation6 + $0x8a8] sm:$0xff]  ;;  %v6144_v31 = vcombine.low %v636_v17, %v640_v18 }
 0x15a   :  { %3560 = vmatprep.subr.bf16.mxu1 %v5937_v33  ;;  %v628_v28 = vld [vmem:[#allocation6 + $0xc88] sm:$0xff]  ;;  %v6009_v32 = vcombine.high %v500_v53, %v504_v26 }
 0x15b   :  { %3520 = vmatpush2.bf16.msra.mxu0 %v5808_v40  ;;  %v632_v54 = vld [vmem:[#allocation6 + $0xca8] sm:$0xff]  ;;  %v6008_v40 = vcombine.low %v500_v53, %v504_v26 }
 0x15c   :  { %3521 = vmatprep.subr.bf16.mxu0 %v5801_v42  ;;  %v6137_v33 = vcombine.high %v628_v28, %v632_v54  ;;  %v492_v34 = vld [vmem:[#allocation6 + $0x848] sm:$0xff] }
 0x15d   :  { %3561 = vmatpush2.bf16.msra.mxu1 %v5936_v41  ;;  %v496_v35 = vld [vmem:[#allocation6 + $0x868] sm:$0xff]  ;;  %v6136_v41 = vcombine.low %v628_v28, %v632_v54 }
 0x15e   :  { %3562 = vmatprep.subr.bf16.mxu1 %v5929_v43  ;;  %v620_v37 = vld [vmem:[#allocation6 + $0xc48] sm:$0xff]  ;;  %v6001_v42 = vcombine.high %v492_v34, %v496_v35 }
 0x15f   :  { %3522 = vmatpush2.bf16.msra.mxu0 %v5800_v47  ;;  %v624_v38 = vld [vmem:[#allocation6 + $0xc68] sm:$0xff]  ;;  %v6000_v47 = vcombine.low %v492_v34, %v496_v35 }
 0x160   :  { %3573 = vmatprep.subr.bf16.mxu0 %v6049_v48  ;;  %v6129_v43 = vcombine.high %v620_v37, %v624_v38  ;;  %v484_v44 = vld [vmem:[#allocation6 + $0x808] sm:$0xff] }
 0x161   :  { %3563 = vmatpush2.bf16.msra.mxu1 %v5928_v22  ;;  %v488_v45 = vld [vmem:[#allocation6 + $0x828] sm:$0xff]  ;;  %v6128_v22 = vcombine.low %v620_v37, %v624_v38 }
 0x162   :  { %3614 = vmatprep.subr.bf16.mxu1 %v6177_v49  ;;  %3524 = vmatmul.mubr.bf16.vlgmr.msra.gmra.mxu0 %v6762_v16  ;;  %v612_v19 = vld [vmem:[#allocation6 + $0xc08] sm:$0xff]  ;;  %v5993_v48 = vcombine.high %v484_v44, %v488_v45 }
 0x163   :  { %3574 = vmatpush1.bf16.msra.mxu0 %v6048_v56  ;;  %3605 = vmatprep.mubr.bf16.mxu0 %v6774_v27  ;;  %v616_v46 = vld [vmem:[#allocation6 + $0xc28] sm:$0xff]  ;;  %v5992_v56 = vcombine.low %v484_v44, %v488_v45 }
 0x164   :  { %3565 = vmatmul.mubr.bf16.vlgmr.msra.gmra.mxu1 %v6768_v20  ;;  %3575 = vmatprep.subr.bf16.mxu0 %v6041_v60  ;;  %v6121_v49 = vcombine.high %v612_v19, %v616_v46  ;;  %v604_v50 = vld [vmem:[#allocation6 + $0xbc8] sm:$0xff] }
 0x165   :  { %3615 = vmatpush1.bf16.msra.mxu1 %v6176_v57  ;;  %3646 = vmatprep.mubr.bf16.mxu1 %v6779_v29  ;;  %v608_v51 = vld [vmem:[#allocation6 + $0xbe8] sm:$0xff]  ;;  %v6120_v57 = vcombine.low %v612_v19, %v616_v46 }
 0x166   :  { %3616 = vmatprep.subr.bf16.mxu1 %v6169_v61  ;;  %v732_v52 = vld [vmem:[#allocation6 + $0xfc8] sm:$0xff]  ;;  %v6113_v60 = vcombine.high %v604_v50, %v608_v51 }
 0x167   :  { %3576 = vmatpush1.bf16.msra.mxu0 %v6040_v2  ;;  %v736_v55 = vld [vmem:[#allocation6 + $0xfe8] sm:$0xff]  ;;  %v6112_v2 = vcombine.low %v604_v50, %v608_v51 }
 0x168   :  { %3577 = vmatprep.subr.bf16.mxu0 %v6033_v4  ;;  %v6241_v61 = vcombine.high %v732_v52, %v736_v55  ;;  %v596_v62 = vld [vmem:[#allocation6 + $0xb88] sm:$0xff] }
 0x169   :  { %3617 = vmatpush1.bf16.msra.mxu1 %v6168_v3  ;;  %v600_v63 = vld [vmem:[#allocation6 + $0xba8] sm:$0xff]  ;;  %v6240_v3 = vcombine.low %v732_v52, %v736_v55 }
 0x16a   :  { %3618 = vmatprep.subr.bf16.mxu1 %v6161_v5  ;;  %v724_v0 = vld [vmem:[#allocation6 + $0xf88] sm:$0xff]  ;;  %v6105_v4 = vcombine.high %v596_v62, %v600_v63 }
 0x16b   :  { %3578 = vmatpush1.bf16.msra.mxu0 %v6032_v10  ;;  %v728_v1 = vld [vmem:[#allocation6 + $0xfa8] sm:$0xff]  ;;  %v6104_v10 = vcombine.low %v596_v62, %v600_v63  ;;  %v285_v62 = vld [vmem:[#allocation6 + $0x1d0] sm:$0xff] }
 0x16c   :  { %3579 = vmatprep.subr.bf16.mxu0 %v6025_v12  ;;  %v6233_v5 = vcombine.high %v724_v0, %v728_v1  ;;  %v588_v6 = vld [vmem:[#allocation6 + $0xb48] sm:$0xff]  ;;  %v289_v63 = vld [vmem:[#allocation6 + $0x1f0] sm:$0xff] }
 0x16d   :  { %3619 = vmatpush1.bf16.msra.mxu1 %v6160_v11  ;;  %v592_v7 = vld [vmem:[#allocation6 + $0xb68] sm:$0xff]  ;;  %v6232_v11 = vcombine.low %v724_v0, %v728_v1  ;;  %v413_v0 = vld [vmem:[#allocation6 + $0x5d0] sm:$0xff] }
 0x16e   :  { %3620 = vmatprep.subr.bf16.mxu1 %v6153_v13  ;;  %v716_v8 = vld [vmem:[#allocation6 + $0xf48] sm:$0xff]  ;;  %v6097_v12 = vcombine.high %v588_v6, %v592_v7  ;;  %v417_v1 = vld [vmem:[#allocation6 + $0x5f0] sm:$0xff] }
 0x16f   :  { %3580 = vmatpush1.bf16.msra.mxu0 %v6024_v21  ;;  %v720_v9 = vld [vmem:[#allocation6 + $0xf68] sm:$0xff]  ;;  %v6096_v21 = vcombine.low %v588_v6, %v592_v7  ;;  %v277_v6 = vld [vmem:[#allocation6 + $0x190] sm:$0xff] }
 0x170   :  { %3581 = vmatprep.subr.bf16.mxu0 %v6017_v24  ;;  %v6225_v13 = vcombine.high %v716_v8, %v720_v9  ;;  %v580_v14 = vld [vmem:[#allocation6 + $0xb08] sm:$0xff]  ;;  %v281_v7 = vld [vmem:[#allocation6 + $0x1b0] sm:$0xff] }
 0x171   :  { %3621 = vmatpush1.bf16.msra.mxu1 %v6152_v23  ;;  %v584_v15 = vld [vmem:[#allocation6 + $0xb28] sm:$0xff]  ;;  %v6224_v23 = vcombine.low %v716_v8, %v720_v9  ;;  %v405_v8 = vld [vmem:[#allocation6 + $0x590] sm:$0xff] }
 0x172   :  { %3622 = vmatprep.subr.bf16.mxu1 %v6145_v25  ;;  %v708_v17 = vld [vmem:[#allocation6 + $0xf08] sm:$0xff]  ;;  %v6089_v24 = vcombine.high %v580_v14, %v584_v15  ;;  %v409_v9 = vld [vmem:[#allocation6 + $0x5b0] sm:$0xff] }
 0x173   :  { %3582 = vmatpush1.bf16.msra.mxu0 %v6016_v30  ;;  %v712_v18 = vld [vmem:[#allocation6 + $0xf28] sm:$0xff]  ;;  %v6088_v30 = vcombine.low %v580_v14, %v584_v15  ;;  %v269_v14 = vld [vmem:[#allocation6 + $0x150] sm:$0xff] }
 0x174   :  { %3583 = vmatprep.subr.bf16.mxu0 %v6009_v32  ;;  %v6217_v25 = vcombine.high %v708_v17, %v712_v18  ;;  %v572_v53 = vld [vmem:[#allocation6 + $0xac8] sm:$0xff]  ;;  %v273_v15 = vld [vmem:[#allocation6 + $0x170] sm:$0xff] }
 0x175   :  { %3623 = vmatpush1.bf16.msra.mxu1 %v6144_v31  ;;  %v576_v26 = vld [vmem:[#allocation6 + $0xae8] sm:$0xff]  ;;  %v6216_v31 = vcombine.low %v708_v17, %v712_v18  ;;  %v397_v18 = vld [vmem:[#allocation6 + $0x550] sm:$0xff] }
 0x176   :  { %3624 = vmatprep.subr.bf16.mxu1 %v6137_v33  ;;  %v700_v28 = vld [vmem:[#allocation6 + $0xec8] sm:$0xff]  ;;  %v6081_v32 = vcombine.high %v572_v53, %v576_v26 }
 0x177   :  { %3584 = vmatpush1.bf16.msra.mxu0 %v6008_v40  ;;  %v704_v54 = vld [vmem:[#allocation6 + $0xee8] sm:$0xff]  ;;  %v6080_v40 = vcombine.low %v572_v53, %v576_v26  ;;  %v5914_v26 = vcombine.low %v405_v8, %v409_v9 }
 0x178   :  { %3585 = vmatprep.subr.bf16.mxu0 %v6001_v42  ;;  %v6209_v33 = vcombine.high %v700_v28, %v704_v54  ;;  %v564_v34 = vld [vmem:[#allocation6 + $0xa88] sm:$0xff] }
 0x179   :  { %3625 = vmatpush1.bf16.msra.mxu1 %v6136_v41  ;;  %v568_v35 = vld [vmem:[#allocation6 + $0xaa8] sm:$0xff]  ;;  %v6208_v41 = vcombine.low %v700_v28, %v704_v54  ;;  %v5779_v28 = vcombine.high %v269_v14, %v273_v15 }
 0x17a   :  { %3626 = vmatprep.subr.bf16.mxu1 %v6129_v43  ;;  %v692_v37 = vld [vmem:[#allocation6 + $0xe88] sm:$0xff]  ;;  %v6073_v42 = vcombine.high %v564_v34, %v568_v35 }
 0x17b   :  { %3586 = vmatpush1.bf16.msra.mxu0 %v6000_v47  ;;  %v696_v38 = vld [vmem:[#allocation6 + $0xea8] sm:$0xff]  ;;  %v6072_v47 = vcombine.low %v564_v34, %v568_v35  ;;  %v389_v35 = vld [vmem:[#allocation6 + $0x510] sm:$0xff] }
 0x17c   :  { %3587 = vmatprep.subr.bf16.mxu0 %v5993_v48  ;;  %v6201_v43 = vcombine.high %v692_v37, %v696_v38  ;;  %v556_v44 = vld [vmem:[#allocation6 + $0xa48] sm:$0xff] }
 0x17d   :  { %3627 = vmatpush1.bf16.msra.mxu1 %v6128_v22  ;;  %v560_v45 = vld [vmem:[#allocation6 + $0xa68] sm:$0xff]  ;;  %v6200_v22 = vcombine.low %v692_v37, %v696_v38  ;;  %v393_v37 = vld [vmem:[#allocation6 + $0x530] sm:$0xff] }
 0x17e   :  { %3628 = vmatprep.subr.bf16.mxu1 %v6121_v49  ;;  %v684_v19 = vld [vmem:[#allocation6 + $0xe48] sm:$0xff]  ;;  %v6065_v48 = vcombine.high %v556_v44, %v560_v45 }
 0x17f   :  { %3588 = vmatpush1.bf16.msra.mxu0 %v5992_v56  ;;  %v688_v46 = vld [vmem:[#allocation6 + $0xe68] sm:$0xff]  ;;  %v6064_v56 = vcombine.low %v556_v44, %v560_v45  ;;  %v5899_v45 = vcombine.high %v389_v35, %v393_v37 }
 0x180   :  { %3589 = vmatprep.subr.bf16.mxu0 %v6113_v60  ;;  %v6193_v49 = vcombine.high %v684_v19, %v688_v46  ;;  %v548_v50 = vld [vmem:[#allocation6 + $0xa08] sm:$0xff] }
 0x181   :  { %3629 = vmatpush1.bf16.msra.mxu1 %v6120_v57  ;;  %v552_v51 = vld [vmem:[#allocation6 + $0xa28] sm:$0xff]  ;;  %v6192_v57 = vcombine.low %v684_v19, %v688_v46  ;;  %v253_v19 = vld [vmem:[#allocation6 + $0xd0] sm:$0xff] }
 0x182   :  { %3630 = vmatprep.subr.bf16.mxu1 %v6241_v61  ;;  %v676_v52 = vld [vmem:[#allocation6 + $0xe08] sm:$0xff]  ;;  %v6057_v60 = vcombine.high %v548_v50, %v552_v51  ;;  %v257_v46 = vld [vmem:[#allocation6 + $0xf0] sm:$0xff] }
 0x183   :  { %3590 = vmatpush2.bf16.msra.mxu0 %v6112_v2  ;;  %v680_v55 = vld [vmem:[#allocation6 + $0xe28] sm:$0xff]  ;;  %v6056_v2 = vcombine.low %v548_v50, %v552_v51  ;;  %v5763_v50 = vcombine.high %v253_v19, %v257_v46 }
 0x184   :  { %3591 = vmatprep.subr.bf16.mxu0 %v6105_v4  ;;  %v6185_v61 = vcombine.high %v676_v52, %v680_v55  ;;  %v5795_v4 = vcombine.high %v285_v62, %v289_v63 }
 0x185   :  { %3631 = vmatpush2.bf16.msra.mxu1 %v6240_v3  ;;  %v6184_v3 = vcombine.low %v676_v52, %v680_v55  ;;  %v245_v52 = vld [vmem:[#allocation6 + $0x90] sm:$0xff] }
 0x186   :  { %3632 = vmatprep.subr.bf16.mxu1 %v6233_v5  ;;  %v5923_v5 = vcombine.high %v413_v0, %v417_v1  ;;  %v249_v55 = vld [vmem:[#allocation6 + $0xb0] sm:$0xff] }
 0x187   :  { %3592 = vmatpush2.bf16.msra.mxu0 %v6104_v10  ;;  %v5794_v10 = vcombine.low %v285_v62, %v289_v63  ;;  %v5755_v62 = vcombine.high %v245_v52, %v249_v55 }
 0x188   :  { %3593 = vmatprep.subr.bf16.mxu0 %v6097_v12  ;;  %v5787_v12 = vcombine.high %v277_v6, %v281_v7 }
 0x189   :  { %3633 = vmatpush2.bf16.msra.mxu1 %v6232_v11  ;;  %v5922_v11 = vcombine.low %v413_v0, %v417_v1  ;;  %v237_v0 = vld [vmem:[#allocation6 + $0x50] sm:$0xff] }
 0x18a   :  { %3634 = vmatprep.subr.bf16.mxu1 %v6225_v13  ;;  %v5915_v13 = vcombine.high %v405_v8, %v409_v9  ;;  %v241_v1 = vld [vmem:[#allocation6 + $0x70] sm:$0xff] }
 0x18b   :  { %3594 = vmatpush2.bf16.msra.mxu0 %v6096_v21  ;;  %v401_v21 = vld [vmem:[#allocation6 + $0x570] sm:$0xff] }
 0x18c   :  { %3595 = vmatprep.subr.bf16.mxu0 %v6089_v24  ;;  %v5786_v24 = vcombine.low %v277_v6, %v281_v7  ;;  %v5747_v6 = vcombine.high %v237_v0, %v241_v1  ;;  %v229_v8 = vld [vmem:[#allocation6 + $0x10] sm:$0xff] }
 0x18d   :  { %3635 = vmatpush2.bf16.msra.mxu1 %v6224_v23  ;;  %v233_v9 = vld [vmem:[#allocation6 + $0x30] sm:$0xff] }
 0x18e   :  { %3636 = vmatprep.subr.bf16.mxu1 %v6217_v25 }
 0x18f   :  { %3596 = vmatpush2.bf16.msra.mxu0 %v6088_v30  ;;  %v5907_v30 = vcombine.high %v397_v18, %v401_v21 }
 0x190   :  { %3597 = vmatprep.subr.bf16.mxu0 %v6081_v32  ;;  %v265_v32 = vld [vmem:[#allocation6 + $0x130] sm:$0xff] }
 0x191   :  { %3637 = vmatpush2.bf16.msra.mxu1 %v6216_v31  ;;  %v261_v31 = vld [vmem:[#allocation6 + $0x110] sm:$0xff] }
 0x192   :  { %3638 = vmatprep.subr.bf16.mxu1 %v6209_v33 }
 0x193   :  { %3598 = vmatpush2.bf16.msra.mxu0 %v6080_v40  ;;  %v5778_v40 = vcombine.low %v269_v14, %v273_v15  ;;  %v5739_v14 = vcombine.high %v229_v8, %v233_v9 }
 0x194   :  { %3599 = vmatprep.subr.bf16.mxu0 %v6073_v42  ;;  %v5906_v42 = vcombine.low %v397_v18, %v401_v21  ;;  %v353_v18 = vld [vmem:[#allocation6 + $0x3f0] sm:$0xff] }
 0x195   :  { %3639 = vmatpush2.bf16.msra.mxu1 %v6208_v41  ;;  %v477_v21 = vld [vmem:[#allocation6 + $0x7d0] sm:$0xff] }
 0x196   :  { %3640 = vmatprep.subr.bf16.mxu1 %v6201_v43  ;;  %v5771_v43 = vcombine.high %v261_v31, %v265_v32 }
 0x197   :  { %3600 = vmatpush2.bf16.msra.mxu0 %v6072_v47  ;;  %v381_v47 = vld [vmem:[#allocation6 + $0x4d0] sm:$0xff] }
 0x198   :  { %3601 = vmatprep.subr.bf16.mxu0 %v6065_v48  ;;  %v5770_v48 = vcombine.low %v261_v31, %v265_v32  ;;  %v469_v31 = vld [vmem:[#allocation6 + $0x790] sm:$0xff] }
 0x199   :  { %3641 = vmatpush2.bf16.msra.mxu1 %v6200_v22  ;;  %v385_v22 = vld [vmem:[#allocation6 + $0x4f0] sm:$0xff] }
 0x19a   :  { %3642 = vmatprep.subr.bf16.mxu1 %v6193_v49  ;;  %v5898_v49 = vcombine.low %v389_v35, %v393_v37  ;;  %v5891_v51 = vcombine.high %v381_v47, %v385_v22  ;;  %v473_v32 = vld [vmem:[#allocation6 + $0x7b0] sm:$0xff] }
 0x19b   :  { %3602 = vmatpush2.bf16.msra.mxu0 %v6064_v56  ;;  %v373_v56 = vld [vmem:[#allocation6 + $0x490] sm:$0xff] }
 0x19c   :  { %3603 = vmatprep.subr.bf16.mxu0 %v6057_v60  ;;  %v5762_v60 = vcombine.low %v253_v19, %v257_v46 }
 0x19d   :  { %3643 = vmatpush2.bf16.msra.mxu1 %v6192_v57  ;;  %v377_v57 = vld [vmem:[#allocation6 + $0x4b0] sm:$0xff] }
 0x19e   :  { %3644 = vmatprep.subr.bf16.mxu1 %v6185_v61  ;;  %v5890_v61 = vcombine.low %v381_v47, %v385_v22  ;;  %v5883_v63 = vcombine.high %v373_v56, %v377_v57  ;;  %v325_v47 = vld [vmem:[#allocation6 + $0x310] sm:$0xff] }
 0x19f   :  { %3604 = vmatpush2.bf16.msra.mxu0 %v6056_v2  ;;  %v365_v2 = vld [vmem:[#allocation6 + $0x450] sm:$0xff] }
 0x1a0   :  { %3655 = vmatprep.subr.bf16.mxu0 %v5795_v4  ;;  %v5754_v4 = vcombine.low %v245_v52, %v249_v55  ;;  %v329_v22 = vld [vmem:[#allocation6 + $0x330] sm:$0xff] }
 0x1a1   :  { %3645 = vmatpush2.bf16.msra.mxu1 %v6184_v3  ;;  %v369_v3 = vld [vmem:[#allocation6 + $0x470] sm:$0xff]  ;;  %v5835_v52 = vcombine.high %v325_v47, %v329_v22 }
 0x1a2   :  { %3696 = vmatprep.subr.bf16.mxu1 %v5923_v5  ;;  %v3361_v17 = vpop.f32.mrf.mxu0  ;;  %3606 = vmatmul.mubr.bf16.vlgmr.msra.gmra.mxu0 %v6786_v36  ;;  %v5882_v5 = vcombine.low %v373_v56, %v377_v57  ;;  %v5875_v7 = vcombine.high %v365_v2, %v369_v3  ;;  %v317_v56 = vld [vmem:[#allocation6 + $0x2d0] sm:$0xff] }
 0x1a3   :  { %3656 = vmatpush1.bf16.msra.mxu0 %v5794_v10  ;;  %3687 = vmatprep.mubr.bf16.mxu0 %v6752_v58  ;;  %v357_v10 = vld [vmem:[#allocation6 + $0x410] sm:$0xff] }
 0x1a4   :  { %v3402_v23 = vpop.f32.mrf.mxu1  ;;  %3647 = vmatmul.mubr.bf16.vlgmr.msra.gmra.mxu1 %v6790_v39  ;;  %v3363_v53 = vpop.f32.mrf.mxu0  ;;  %3657 = vmatprep.subr.bf16.mxu0 %v5787_v12  ;;  %v5746_v12 = vcombine.low %v237_v0, %v241_v1  ;;  %v321_v57 = vld [vmem:[#allocation6 + $0x2f0] sm:$0xff] }
 0x1a5   :  { %v6802_v25 = vadd.f32 %v3402_v23, %v3361_v17  ;;  %3697 = vmatpush1.bf16.msra.mxu1 %v5922_v11  ;;  %3728 = vmatprep.mubr.bf16.mxu1 %v6756_v59  ;;  %v361_v11 = vld [vmem:[#allocation6 + $0x430] sm:$0xff]  ;;  %v5827_v0 = vcombine.high %v317_v56, %v321_v57 }
 0x1a6   :  { %v3404_v54 = vpop.f32.mrf.mxu1  ;;  %3698 = vmatprep.subr.bf16.mxu1 %v5915_v13  ;;  %v3365_v34 = vpop.f32.mrf.mxu0  ;;  %v5874_v13 = vcombine.low %v365_v2, %v369_v3  ;;  %v5867_v15 = vcombine.high %v357_v10, %v361_v11  ;;  %v349_v17 = vld [vmem:[#allocation6 + $0x3d0] sm:$0xff] }
 0x1a7   :  { %v6805_v33 = vadd.f32 %v3404_v54, %v3363_v53  ;;  %3658 = vmatpush1.bf16.msra.mxu0 %v5786_v24  ;;  %v481_v23 = vld [vmem:[#allocation6 + $0x7f0] sm:$0xff]  ;;  %v5738_v24 = vcombine.low %v229_v8, %v233_v9  ;;  %v5866_v53 = vcombine.low %v357_v10, %v361_v11  ;;  %v5858_v34 = vcombine.low %v349_v17, %v353_v18 }
 0x1a8   :  { %v3406_v38 = vpop.f32.mrf.mxu1  ;;  %v3366_v41 = vpop.f32.mrf.mxu0  ;;  %3659 = vmatprep.subr.bf16.mxu0 %v5779_v28  ;;  %v5987_v28 = vcombine.high %v477_v21, %v481_v23  ;;  %v341_v54 = vld [vmem:[#allocation6 + $0x390] sm:$0xff]  ;;  %v5986_v35 = vcombine.low %v477_v21, %v481_v23 }
 0x1a9   :  { %3699 = vmatpush1.bf16.msra.mxu1 %v5914_v26  ;;  %v5859_v26 = vcombine.high %v349_v17, %v353_v18  ;;  %v5979_v38 = vcombine.high %v469_v31, %v473_v32  ;;  %v337_v41 = vld [vmem:[#allocation6 + $0x370] sm:$0xff] }
 0x1aa   :  { %v3407_v44 = vpop.f32.mrf.mxu1  ;;  %3700 = vmatprep.subr.bf16.mxu1 %v5907_v30  ;;  %v345_v30 = vld [vmem:[#allocation6 + $0x3b0] sm:$0xff] }
 0x1ab   :  { %3660 = vmatpush1.bf16.msra.mxu0 %v5778_v40  ;;  %v5851_v37 = vcombine.high %v341_v54, %v345_v30  ;;  %v333_v40 = vld [vmem:[#allocation6 + $0x350] sm:$0xff]  ;;  %v5850_v44 = vcombine.low %v341_v54, %v345_v30 }
 0x1ac   :  { %3661 = vmatprep.subr.bf16.mxu0 %v5771_v43  ;;  %v465_v43 = vld [vmem:[#allocation6 + $0x770] sm:$0xff]  ;;  %v5843_v19 = vcombine.high %v333_v40, %v337_v41 }
 0x1ad   :  { %3701 = vmatpush1.bf16.msra.mxu1 %v5906_v42  ;;  %v461_v42 = vld [vmem:[#allocation6 + $0x750] sm:$0xff] }
 0x1ae   :  { %3702 = vmatprep.subr.bf16.mxu1 %v5899_v45  ;;  %v5978_v45 = vcombine.low %v469_v31, %v473_v32  ;;  %v5971_v46 = vcombine.high %v461_v42, %v465_v43  ;;  %v309_v2 = vld [vmem:[#allocation6 + $0x290] sm:$0xff] }
 0x1af   :  { %3662 = vmatpush1.bf16.msra.mxu0 %v5770_v48  ;;  %v453_v48 = vld [vmem:[#allocation6 + $0x710] sm:$0xff] }
 0x1b0   :  { %3663 = vmatprep.subr.bf16.mxu0 %v5763_v50  ;;  %v5842_v50 = vcombine.low %v333_v40, %v337_v41  ;;  %v313_v3 = vld [vmem:[#allocation6 + $0x2b0] sm:$0xff] }
 0x1b1   :  { %3703 = vmatpush1.bf16.msra.mxu1 %v5898_v49  ;;  %v457_v49 = vld [vmem:[#allocation6 + $0x730] sm:$0xff]  ;;  %v5819_v8 = vcombine.high %v309_v2, %v313_v3 }
 0x1b2   :  { %3704 = vmatprep.subr.bf16.mxu1 %v5891_v51  ;;  %v5970_v51 = vcombine.low %v461_v42, %v465_v43  ;;  %v5963_v55 = vcombine.high %v453_v48, %v457_v49  ;;  %v301_v10 = vld [vmem:[#allocation6 + $0x250] sm:$0xff] }
 0x1b3   :  { %3664 = vmatpush1.bf16.msra.mxu0 %v5762_v60  ;;  %v445_v60 = vld [vmem:[#allocation6 + $0x6d0] sm:$0xff] }
 0x1b4   :  { %3665 = vmatprep.subr.bf16.mxu0 %v5755_v62  ;;  %v5834_v62 = vcombine.low %v325_v47, %v329_v22  ;;  %v305_v11 = vld [vmem:[#allocation6 + $0x270] sm:$0xff] }
 0x1b5   :  { %3705 = vmatpush1.bf16.msra.mxu1 %v5890_v61  ;;  %v449_v61 = vld [vmem:[#allocation6 + $0x6f0] sm:$0xff]  ;;  %v5811_v17 = vcombine.high %v301_v10, %v305_v11 }
 0x1b6   :  { %3706 = vmatprep.subr.bf16.mxu1 %v5883_v63  ;;  %v5962_v63 = vcombine.low %v453_v48, %v457_v49  ;;  %v5955_v1 = vcombine.high %v445_v60, %v449_v61  ;;  %v293_v21 = vld [vmem:[#allocation6 + $0x210] sm:$0xff] }
 0x1b7   :  { %3666 = vmatpush1.bf16.msra.mxu0 %v5754_v4  ;;  %v437_v4 = vld [vmem:[#allocation6 + $0x690] sm:$0xff] }
 0x1b8   :  { %3667 = vmatprep.subr.bf16.mxu0 %v5747_v6  ;;  %v5826_v6 = vcombine.low %v317_v56, %v321_v57  ;;  %v297_v23 = vld [vmem:[#allocation6 + $0x230] sm:$0xff] }
 0x1b9   :  { %3707 = vmatpush1.bf16.msra.mxu1 %v5882_v5  ;;  %v441_v5 = vld [vmem:[#allocation6 + $0x6b0] sm:$0xff]  ;;  %v5803_v54 = vcombine.high %v293_v21, %v297_v23 }
 0x1ba   :  { %3708 = vmatprep.subr.bf16.mxu1 %v5875_v7  ;;  %v5954_v7 = vcombine.low %v445_v60, %v449_v61  ;;  %v5947_v9 = vcombine.high %v437_v4, %v441_v5  ;;  %v541_v31 = vld [vmem:[#allocation6 + $0x9d0] sm:$0xff] }
 0x1bb   :  { %3668 = vmatpush1.bf16.msra.mxu0 %v5746_v12  ;;  %v429_v12 = vld [vmem:[#allocation6 + $0x650] sm:$0xff] }
 0x1bc   :  { %3669 = vmatprep.subr.bf16.mxu0 %v5739_v14  ;;  %v5818_v14 = vcombine.low %v309_v2, %v313_v3  ;;  %v545_v32 = vld [vmem:[#allocation6 + $0x9f0] sm:$0xff] }
 0x1bd   :  { %3709 = vmatpush1.bf16.msra.mxu1 %v5874_v13  ;;  %v433_v13 = vld [vmem:[#allocation6 + $0x670] sm:$0xff]  ;;  %v6051_v40 = vcombine.high %v541_v31, %v545_v32 }
 0x1be   :  { %3710 = vmatprep.subr.bf16.mxu1 %v5867_v15  ;;  %v5946_v15 = vcombine.low %v437_v4, %v441_v5  ;;  %v5939_v18 = vcombine.high %v429_v12, %v433_v13  ;;  %v533_v42 = vld [vmem:[#allocation6 + $0x990] sm:$0xff] }
 0x1bf   :  { %3670 = vmatpush1.bf16.msra.mxu0 %v5738_v24  ;;  %v421_v24 = vld [vmem:[#allocation6 + $0x610] sm:$0xff] }
 0x1c0   :  { %3671 = vmatprep.subr.bf16.mxu0 %v5859_v26  ;;  %v5810_v26 = vcombine.low %v301_v10, %v305_v11  ;;  %v537_v43 = vld [vmem:[#allocation6 + $0x9b0] sm:$0xff] }
 0x1c1   :  { %3711 = vmatpush1.bf16.msra.mxu1 %v5866_v53  ;;  %v425_v53 = vld [vmem:[#allocation6 + $0x630] sm:$0xff]  ;;  %v6043_v47 = vcombine.high %v533_v42, %v537_v43  ;;  %v6042_v57 = vcombine.low %v533_v42, %v537_v43 }
 0x1c2   :  { %3712 = vmatprep.subr.bf16.mxu1 %v5987_v28  ;;  %v5938_v28 = vcombine.low %v429_v12, %v433_v13  ;;  %v5931_v30 = vcombine.high %v421_v24, %v425_v53  ;;  %v525_v48 = vld [vmem:[#allocation6 + $0x950] sm:$0xff] }
 0x1c3   :  { %3672 = vmatpush2.bf16.msra.mxu0 %v5858_v34  ;;  %v669_v34 = vld [vmem:[#allocation6 + $0xdd0] sm:$0xff] }
 0x1c4   :  { %3673 = vmatprep.subr.bf16.mxu0 %v5851_v37  ;;  %v5802_v37 = vcombine.low %v293_v21, %v297_v23  ;;  %v529_v49 = vld [vmem:[#allocation6 + $0x970] sm:$0xff] }
 0x1c5   :  { %3713 = vmatpush2.bf16.msra.mxu1 %v5986_v35  ;;  %v673_v35 = vld [vmem:[#allocation6 + $0xdf0] sm:$0xff] }
 0x1c6   :  { %3714 = vmatprep.subr.bf16.mxu1 %v5979_v38  ;;  %v5930_v38 = vcombine.low %v421_v24, %v425_v53  ;;  %v6179_v41 = vcombine.high %v669_v34, %v673_v35  ;;  %v517_v3 = vld [vmem:[#allocation6 + $0x910] sm:$0xff] }
 0x1c7   :  { %3674 = vmatpush2.bf16.msra.mxu0 %v5850_v44  ;;  %v661_v44 = vld [vmem:[#allocation6 + $0xd90] sm:$0xff] }
 0x1c8   :  { %3675 = vmatprep.subr.bf16.mxu0 %v5843_v19  ;;  %v6050_v19 = vcombine.low %v541_v31, %v545_v32  ;;  %v521_v4 = vld [vmem:[#allocation6 + $0x930] sm:$0xff] }
 0x1c9   :  { %3715 = vmatpush2.bf16.msra.mxu1 %v5978_v45  ;;  %v665_v45 = vld [vmem:[#allocation6 + $0xdb0] sm:$0xff]  ;;  %v6027_v11 = vcombine.high %v517_v3, %v521_v4  ;;  %v6026_v21 = vcombine.low %v517_v3, %v521_v4 }
 0x1ca   :  { %3716 = vmatprep.subr.bf16.mxu1 %v5971_v46  ;;  %v6178_v46 = vcombine.low %v669_v34, %v673_v35  ;;  %v6171_v22 = vcombine.high %v661_v44, %v665_v45  ;;  %v6170_v61 = vcombine.low %v661_v44, %v665_v45  ;;  %v645_v5 = vld [vmem:[#allocation6 + $0xd10] sm:$0xff] }
 0x1cb   :  { %3676 = vmatpush2.bf16.msra.mxu0 %v5842_v50  ;;  %v725_v3 = vld [vmem:[#allocation6 + $0xf90] sm:$0xff] }
 0x1cc   :  { %3677 = vmatprep.subr.bf16.mxu0 %v5835_v52  ;;  %v657_v52 = vld [vmem:[#allocation6 + $0xd70] sm:$0xff] }
 0x1cd   :  { %3717 = vmatpush2.bf16.msra.mxu1 %v5970_v51  ;;  %v653_v51 = vld [vmem:[#allocation6 + $0xd50] sm:$0xff] }
 0x1ce   :  { %3718 = vmatprep.subr.bf16.mxu1 %v5963_v55  ;;  %v6163_v2 = vcombine.high %v653_v51, %v657_v52  ;;  %v729_v4 = vld [vmem:[#allocation6 + $0xfb0] sm:$0xff] }
 0x1cf   :  { %3678 = vmatpush2.bf16.msra.mxu0 %v5834_v62  ;;  %v6035_v62 = vcombine.high %v525_v48, %v529_v49 }
 0x1d0   :  { %3679 = vmatprep.subr.bf16.mxu0 %v5827_v0 }
 0x1d1   :  { %3719 = vmatpush2.bf16.msra.mxu1 %v5962_v63 }
 0x1d2   :  { %3720 = vmatprep.subr.bf16.mxu1 %v5955_v1 }
 0x1d3   :  { %3680 = vmatpush2.bf16.msra.mxu0 %v5826_v6  ;;  %v649_v6 = vld [vmem:[#allocation6 + $0xd30] sm:$0xff] }
 0x1d4   :  { %3681 = vmatprep.subr.bf16.mxu0 %v5819_v8  ;;  %v6155_v13 = vcombine.high %v645_v5, %v649_v6  ;;  %v6154_v23 = vcombine.low %v645_v5, %v649_v6 }
 0x1d5   :  { %3721 = vmatpush2.bf16.msra.mxu1 %v5954_v7 }
 0x1d6   :  { %3722 = vmatprep.subr.bf16.mxu1 %v5947_v9  ;;  %v6034_v9 = vcombine.low %v525_v48, %v529_v49 }
 0x1d7   :  { %3682 = vmatpush2.bf16.msra.mxu0 %v5818_v14  ;;  %v509_v14 = vld [vmem:[#allocation6 + $0x8d0] sm:$0xff] }
 0x1d8   :  { %3683 = vmatprep.subr.bf16.mxu0 %v5811_v17  ;;  %v637_v17 = vld [vmem:[#allocation6 + $0xcd0] sm:$0xff] }
 0x1d9   :  { %3723 = vmatpush2.bf16.msra.mxu1 %v5946_v15  ;;  %v513_v15 = vld [vmem:[#allocation6 + $0x8f0] sm:$0xff] }
 0x1da   :  { %3724 = vmatprep.subr.bf16.mxu1 %v5939_v18  ;;  %v641_v18 = vld [vmem:[#allocation6 + $0xcf0] sm:$0xff]  ;;  %v6019_v24 = vcombine.high %v509_v14, %v513_v15  ;;  %v6018_v31 = vcombine.low %v509_v14, %v513_v15 }
 0x1db   :  { %3684 = vmatpush2.bf16.msra.mxu0 %v5810_v26  ;;  %v6147_v53 = vcombine.high %v637_v17, %v641_v18  ;;  %v501_v26 = vld [vmem:[#allocation6 + $0x890] sm:$0xff]  ;;  %v6146_v32 = vcombine.low %v637_v17, %v641_v18 }
 0x1dc   :  { %3685 = vmatprep.subr.bf16.mxu0 %v5803_v54  ;;  %v629_v54 = vld [vmem:[#allocation6 + $0xc90] sm:$0xff] }
 0x1dd   :  { %3725 = vmatpush2.bf16.msra.mxu1 %v5938_v28  ;;  %v505_v28 = vld [vmem:[#allocation6 + $0x8b0] sm:$0xff] }
 0x1de   :  { %3726 = vmatprep.subr.bf16.mxu1 %v5931_v30  ;;  %v633_v30 = vld [vmem:[#allocation6 + $0xcb0] sm:$0xff]  ;;  %v6011_v34 = vcombine.high %v501_v26, %v505_v28  ;;  %v6010_v42 = vcombine.low %v501_v26, %v505_v28 }
 0x1df   :  { %3686 = vmatpush2.bf16.msra.mxu0 %v5802_v37  ;;  %v6139_v35 = vcombine.high %v629_v54, %v633_v30  ;;  %v493_v37 = vld [vmem:[#allocation6 + $0x850] sm:$0xff]  ;;  %v6138_v43 = vcombine.low %v629_v54, %v633_v30 }
 0x1e0   :  { %3737 = vmatprep.subr.bf16.mxu0 %v6051_v40  ;;  %v621_v40 = vld [vmem:[#allocation6 + $0xc50] sm:$0xff] }
 0x1e1   :  { %3727 = vmatpush2.bf16.msra.mxu1 %v5930_v38  ;;  %v497_v38 = vld [vmem:[#allocation6 + $0x870] sm:$0xff] }
 0x1e2   :  { %3778 = vmatprep.subr.bf16.mxu1 %v6179_v41  ;;  %v3443_v50 = vpop.f32.mrf.mxu0  ;;  %3688 = vmatmul.mubr.bf16.vlgmr.msra.gmra.mxu0 %v6762_v16  ;;  %v625_v41 = vld [vmem:[#allocation6 + $0xc70] sm:$0xff]  ;;  %v6003_v44 = vcombine.high %v493_v37, %v497_v38  ;;  %v6002_v48 = vcombine.low %v493_v37, %v497_v38 }
 0x1e3   :  { %v3444_v55 = vadd.f32 %v3443_v50, %v6802_v25  ;;  %3738 = vmatpush1.bf16.msra.mxu0 %v6050_v19  ;;  %3769 = vmatprep.mubr.bf16.mxu0 %v6774_v27  ;;  %v6131_v45 = vcombine.high %v621_v40, %v625_v41  ;;  %v485_v19 = vld [vmem:[#allocation6 + $0x810] sm:$0xff]  ;;  %v6130_v49 = vcombine.low %v621_v40, %v625_v41 }
 0x1e4   :  { %v3484_v56 = vpop.f32.mrf.mxu1  ;;  %3729 = vmatmul.mubr.bf16.vlgmr.msra.gmra.mxu1 %v6768_v20  ;;  %v3445_v60 = vpop.f32.mrf.mxu0  ;;  %3739 = vmatprep.subr.bf16.mxu0 %v6043_v47  ;;  %v613_v47 = vld [vmem:[#allocation6 + $0xc10] sm:$0xff] }
 0x1e5   :  { %3779 = vmatpush1.bf16.msra.mxu1 %v6178_v46  ;;  %v6811_v63 = vadd.f32 %v3484_v56, %v3444_v55  ;;  %v3446_v0 = vadd.f32 %v3445_v60, %v6805_v33  ;;  %3810 = vmatprep.mubr.bf16.mxu1 %v6779_v29  ;;  %v6162_v33 = vcombine.low %v653_v51, %v657_v52  ;;  %v489_v46 = vld [vmem:[#allocation6 + $0x830] sm:$0xff] }
 0x1e6   :  { %v3486_v1 = vpop.f32.mrf.mxu1  ;;  %3780 = vmatprep.subr.bf16.mxu1 %v6171_v22  ;;  %v3447_v25 = vpop.f32.mrf.mxu0  ;;  %v617_v22 = vld [vmem:[#allocation6 + $0xc30] sm:$0xff]  ;;  %v5995_v50 = vcombine.high %v485_v19, %v489_v46  ;;  %v5994_v60 = vcombine.low %v485_v19, %v489_v46 }
 0x1e7   :  { %v6816_v7 = vadd.f32 %v3486_v1, %v3446_v0  ;;  %3740 = vmatpush1.bf16.msra.mxu0 %v6042_v57  ;;  %v6123_v51 = vcombine.high %v613_v47, %v617_v22  ;;  %v605_v52 = vld [vmem:[#allocation6 + $0xbd0] sm:$0xff] }
 0x1e8   :  { %v3488_v8 = vpop.f32.mrf.mxu1  ;;  %v3448_v10 = vpop.f32.mrf.mxu0  ;;  %3741 = vmatprep.subr.bf16.mxu0 %v6035_v62  ;;  %v609_v55 = vld [vmem:[#allocation6 + $0xbf0] sm:$0xff] }
 0x1e9   :  { %3781 = vmatpush1.bf16.msra.mxu1 %v6170_v61  ;;  %v733_v56 = vld [vmem:[#allocation6 + $0xfd0] sm:$0xff]  ;;  %v6122_v61 = vcombine.low %v613_v47, %v617_v22  ;;  %v6115_v62 = vcombine.high %v605_v52, %v609_v55  ;;  %v6114_v25 = vcombine.low %v605_v52, %v609_v55  ;;  %v6235_v8 = vcombine.high %v725_v3, %v729_v4 }
 0x1ea   :  { %v3489_v12 = vpop.f32.mrf.mxu1  ;;  %3782 = vmatprep.subr.bf16.mxu1 %v6163_v2  ;;  %v737_v57 = vld [vmem:[#allocation6 + $0xff0] sm:$0xff] }
 0x1eb   :  { %3742 = vmatpush1.bf16.msra.mxu0 %v6034_v9  ;;  %v6243_v0 = vcombine.high %v733_v56, %v737_v57  ;;  %v597_v1 = vld [vmem:[#allocation6 + $0xb90] sm:$0xff]  ;;  %v6242_v5 = vcombine.low %v733_v56, %v737_v57 }
 0x1ec   :  { %3743 = vmatprep.subr.bf16.mxu0 %v6027_v11  ;;  %v601_v2 = vld [vmem:[#allocation6 + $0xbb0] sm:$0xff] }
 0x1ed   :  { %3783 = vmatpush1.bf16.msra.mxu1 %v6162_v33  ;;  %v6107_v6 = vcombine.high %v597_v1, %v601_v2  ;;  %v589_v9 = vld [vmem:[#allocation6 + $0xb50] sm:$0xff]  ;;  %v6106_v12 = vcombine.low %v597_v1, %v601_v2 }
 0x1ee   :  { %3784 = vmatprep.subr.bf16.mxu1 %v6155_v13  ;;  %v593_v10 = vld [vmem:[#allocation6 + $0xb70] sm:$0xff]  ;;  %v6234_v13 = vcombine.low %v725_v3, %v729_v4  ;;  %v286_v3 = vld [vmem:[#allocation6 + $0x1d8] sm:$0xff] }
 0x1ef   :  { %3744 = vmatpush1.bf16.msra.mxu0 %v6026_v21  ;;  %v717_v33 = vld [vmem:[#allocation6 + $0xf50] sm:$0xff]  ;;  %v6099_v14 = vcombine.high %v589_v9, %v593_v10  ;;  %v290_v4 = vld [vmem:[#allocation6 + $0x1f8] sm:$0xff] }
 0x1f0   :  { %3745 = vmatprep.subr.bf16.mxu0 %v6019_v24  ;;  %v721_v11 = vld [vmem:[#allocation6 + $0xf70] sm:$0xff]  ;;  %v6098_v24 = vcombine.low %v589_v9, %v593_v10  ;;  %v5797_v9 = vcombine.high %v286_v3, %v290_v4 }
 0x1f1   :  { %3785 = vmatpush1.bf16.msra.mxu1 %v6154_v23  ;;  %v6227_v15 = vcombine.high %v717_v33, %v721_v11  ;;  %v581_v17 = vld [vmem:[#allocation6 + $0xb10] sm:$0xff] }
 0x1f2   :  { %3786 = vmatprep.subr.bf16.mxu1 %v6147_v53  ;;  %v585_v18 = vld [vmem:[#allocation6 + $0xb30] sm:$0xff]  ;;  %v6226_v53 = vcombine.low %v717_v33, %v721_v11  ;;  %v278_v33 = vld [vmem:[#allocation6 + $0x198] sm:$0xff] }
 0x1f3   :  { %3746 = vmatpush1.bf16.msra.mxu0 %v6018_v31  ;;  %v709_v21 = vld [vmem:[#allocation6 + $0xf10] sm:$0xff]  ;;  %v6091_v26 = vcombine.high %v581_v17, %v585_v18  ;;  %v282_v11 = vld [vmem:[#allocation6 + $0x1b8] sm:$0xff] }
 0x1f4   :  { %3747 = vmatprep.subr.bf16.mxu0 %v6011_v34  ;;  %v713_v23 = vld [vmem:[#allocation6 + $0xf30] sm:$0xff]  ;;  %v6090_v34 = vcombine.low %v581_v17, %v585_v18  ;;  %v5789_v17 = vcombine.high %v278_v33, %v282_v11 }
 0x1f5   :  { %3787 = vmatpush1.bf16.msra.mxu1 %v6146_v32  ;;  %v6219_v28 = vcombine.high %v709_v21, %v713_v23  ;;  %v573_v54 = vld [vmem:[#allocation6 + $0xad0] sm:$0xff] }
 0x1f6   :  { %3788 = vmatprep.subr.bf16.mxu1 %v6139_v35  ;;  %v577_v30 = vld [vmem:[#allocation6 + $0xaf0] sm:$0xff]  ;;  %v6218_v35 = vcombine.low %v709_v21, %v713_v23  ;;  %v270_v21 = vld [vmem:[#allocation6 + $0x158] sm:$0xff] }
 0x1f7   :  { %3748 = vmatpush1.bf16.msra.mxu0 %v6010_v42  ;;  %v701_v31 = vld [vmem:[#allocation6 + $0xed0] sm:$0xff]  ;;  %v6083_v37 = vcombine.high %v573_v54, %v577_v30  ;;  %v274_v23 = vld [vmem:[#allocation6 + $0x178] sm:$0xff] }
 0x1f8   :  { %3749 = vmatprep.subr.bf16.mxu0 %v6003_v44  ;;  %v705_v32 = vld [vmem:[#allocation6 + $0xef0] sm:$0xff]  ;;  %v6082_v44 = vcombine.low %v573_v54, %v577_v30  ;;  %v5788_v54 = vcombine.low %v278_v33, %v282_v11 }
 0x1f9   :  { %3789 = vmatpush1.bf16.msra.mxu1 %v6138_v43  ;;  %v6211_v38 = vcombine.high %v701_v31, %v705_v32  ;;  %v565_v40 = vld [vmem:[#allocation6 + $0xa90] sm:$0xff] }
 0x1fa   :  { %3790 = vmatprep.subr.bf16.mxu1 %v6131_v45  ;;  %v569_v41 = vld [vmem:[#allocation6 + $0xab0] sm:$0xff]  ;;  %v6210_v45 = vcombine.low %v701_v31, %v705_v32 }
 0x1fb   :  { %3750 = vmatpush1.bf16.msra.mxu0 %v6002_v48  ;;  %v693_v42 = vld [vmem:[#allocation6 + $0xe90] sm:$0xff]  ;;  %v6075_v19 = vcombine.high %v565_v40, %v569_v41 }
 0x1fc   :  { %3751 = vmatprep.subr.bf16.mxu0 %v5995_v50  ;;  %v697_v43 = vld [vmem:[#allocation6 + $0xeb0] sm:$0xff]  ;;  %v6074_v50 = vcombine.low %v565_v40, %v569_v41  ;;  %v266_v40 = vld [vmem:[#allocation6 + $0x138] sm:$0xff] }
 0x1fd   :  { %3791 = vmatpush1.bf16.msra.mxu1 %v6130_v49  ;;  %v6203_v46 = vcombine.high %v693_v42, %v697_v43  ;;  %v557_v47 = vld [vmem:[#allocation6 + $0xa50] sm:$0xff] }
 0x1fe   :  { %3792 = vmatprep.subr.bf16.mxu1 %v6123_v51  ;;  %v561_v22 = vld [vmem:[#allocation6 + $0xa70] sm:$0xff]  ;;  %v6202_v51 = vcombine.low %v693_v42, %v697_v43  ;;  %v390_v43 = vld [vmem:[#allocation6 + $0x518] sm:$0xff] }
 0x1ff   :  { %3752 = vmatpush1.bf16.msra.mxu0 %v5994_v60  ;;  %v685_v48 = vld [vmem:[#allocation6 + $0xe50] sm:$0xff]  ;;  %v6067_v52 = vcombine.high %v557_v47, %v561_v22 }
 0x200   :  { %3753 = vmatprep.subr.bf16.mxu0 %v6115_v62  ;;  %v689_v49 = vld [vmem:[#allocation6 + $0xe70] sm:$0xff]  ;;  %v6066_v62 = vcombine.low %v557_v47, %v561_v22 }
 0x201   :  { %3793 = vmatpush1.bf16.msra.mxu1 %v6122_v61  ;;  %v6195_v55 = vcombine.high %v685_v48, %v689_v49  ;;  %v549_v56 = vld [vmem:[#allocation6 + $0xa10] sm:$0xff] }
 0x202   :  { %3794 = vmatprep.subr.bf16.mxu1 %v6243_v0  ;;  %v553_v57 = vld [vmem:[#allocation6 + $0xa30] sm:$0xff]  ;;  %v6194_v0 = vcombine.low %v685_v48, %v689_v49 }
 0x203   :  { %3754 = vmatpush2.bf16.msra.mxu0 %v6114_v25  ;;  %v677_v60 = vld [vmem:[#allocation6 + $0xe10] sm:$0xff]  ;;  %v6059_v1 = vcombine.high %v549_v56, %v553_v57  ;;  %v414_v25 = vld [vmem:[#allocation6 + $0x5d8] sm:$0xff] }
 0x204   :  { %3755 = vmatprep.subr.bf16.mxu0 %v6107_v6  ;;  %v681_v61 = vld [vmem:[#allocation6 + $0xe30] sm:$0xff]  ;;  %v6058_v6 = vcombine.low %v549_v56, %v553_v57 }
 0x205   :  { %3795 = vmatpush2.bf16.msra.mxu1 %v6242_v5  ;;  %v6187_v2 = vcombine.high %v677_v60, %v681_v61  ;;  %v418_v5 = vld [vmem:[#allocation6 + $0x5f8] sm:$0xff] }
 0x206   :  { %3796 = vmatprep.subr.bf16.mxu1 %v6235_v8  ;;  %v6186_v8 = vcombine.low %v677_v60, %v681_v61  ;;  %v5925_v10 = vcombine.high %v414_v25, %v418_v5  ;;  %v246_v60 = vld [vmem:[#allocation6 + $0x98] sm:$0xff] }
 0x207   :  { %3756 = vmatpush2.bf16.msra.mxu0 %v6106_v12  ;;  %v406_v12 = vld [vmem:[#allocation6 + $0x598] sm:$0xff] }
 0x208   :  { %3757 = vmatprep.subr.bf16.mxu0 %v6099_v14  ;;  %v5796_v14 = vcombine.low %v286_v3, %v290_v4  ;;  %v250_v61 = vld [vmem:[#allocation6 + $0xb8] sm:$0xff] }
 0x209   :  { %3797 = vmatpush2.bf16.msra.mxu1 %v6234_v13  ;;  %v410_v13 = vld [vmem:[#allocation6 + $0x5b8] sm:$0xff]  ;;  %v5757_v3 = vcombine.high %v246_v60, %v250_v61 }
 0x20a   :  { %3798 = vmatprep.subr.bf16.mxu1 %v6227_v15  ;;  %v5924_v15 = vcombine.low %v414_v25, %v418_v5  ;;  %v5917_v18 = vcombine.high %v406_v12, %v410_v13  ;;  %v5916_v32 = vcombine.low %v406_v12, %v410_v13  ;;  %v238_v25 = vld [vmem:[#allocation6 + $0x58] sm:$0xff] }
 0x20b   :  { %3758 = vmatpush2.bf16.msra.mxu0 %v6098_v24  ;;  %v242_v5 = vld [vmem:[#allocation6 + $0x78] sm:$0xff] }
 0x20c   :  { %3759 = vmatprep.subr.bf16.mxu0 %v6091_v26  ;;  %v402_v26 = vld [vmem:[#allocation6 + $0x578] sm:$0xff]  ;;  %v5749_v33 = vcombine.high %v238_v25, %v242_v5 }
 0x20d   :  { %3799 = vmatpush2.bf16.msra.mxu1 %v6226_v53  ;;  %v398_v53 = vld [vmem:[#allocation6 + $0x558] sm:$0xff] }
 0x20e   :  { %3800 = vmatprep.subr.bf16.mxu1 %v6219_v28  ;;  %v5908_v47 = vcombine.low %v398_v53, %v402_v26  ;;  %v230_v12 = vld [vmem:[#allocation6 + $0x18] sm:$0xff] }
 0x20f   :  { %3760 = vmatpush2.bf16.msra.mxu0 %v6090_v34  ;;  %v5781_v34 = vcombine.high %v270_v21, %v274_v23  ;;  %v234_v13 = vld [vmem:[#allocation6 + $0x38] sm:$0xff] }
 0x210   :  { %3761 = vmatprep.subr.bf16.mxu0 %v6083_v37  ;;  %v5909_v37 = vcombine.high %v398_v53, %v402_v26  ;;  %v354_v53 = vld [vmem:[#allocation6 + $0x3f8] sm:$0xff] }
 0x211   :  { %3801 = vmatpush2.bf16.msra.mxu1 %v6218_v35  ;;  %v478_v26 = vld [vmem:[#allocation6 + $0x7d8] sm:$0xff] }
 0x212   :  { %3802 = vmatprep.subr.bf16.mxu1 %v6211_v38  ;;  %v262_v38 = vld [vmem:[#allocation6 + $0x118] sm:$0xff] }
 0x213   :  { %3762 = vmatpush2.bf16.msra.mxu0 %v6082_v44  ;;  %v394_v44 = vld [vmem:[#allocation6 + $0x538] sm:$0xff]  ;;  %v5773_v22 = vcombine.high %v262_v38, %v266_v40 }
 0x214   :  { %3763 = vmatprep.subr.bf16.mxu0 %v6075_v19  ;;  %v5780_v19 = vcombine.low %v270_v21, %v274_v23  ;;  %v5901_v49 = vcombine.high %v390_v43, %v394_v44  ;;  %v5741_v21 = vcombine.high %v230_v12, %v234_v13 }
 0x215   :  { %3803 = vmatpush2.bf16.msra.mxu1 %v6210_v45 }
 0x216   :  { %3804 = vmatprep.subr.bf16.mxu1 %v6203_v46 }
 0x217   :  { %3764 = vmatpush2.bf16.msra.mxu0 %v6074_v50  ;;  %v254_v50 = vld [vmem:[#allocation6 + $0xd8] sm:$0xff] }
 0x218   :  { %3765 = vmatprep.subr.bf16.mxu0 %v6067_v52  ;;  %v386_v52 = vld [vmem:[#allocation6 + $0x4f8] sm:$0xff] }
 0x219   :  { %3805 = vmatpush2.bf16.msra.mxu1 %v6202_v51  ;;  %v382_v51 = vld [vmem:[#allocation6 + $0x4d8] sm:$0xff] }
 0x21a   :  { %3806 = vmatprep.subr.bf16.mxu1 %v6195_v55  ;;  %v5772_v55 = vcombine.low %v262_v38, %v266_v40  ;;  %v5893_v57 = vcombine.high %v382_v51, %v386_v52  ;;  %v470_v38 = vld [vmem:[#allocation6 + $0x798] sm:$0xff] }
 0x21b   :  { %3766 = vmatpush2.bf16.msra.mxu0 %v6066_v62  ;;  %v374_v62 = vld [vmem:[#allocation6 + $0x498] sm:$0xff] }
 0x21c   :  { %3767 = vmatprep.subr.bf16.mxu0 %v6059_v1  ;;  %v474_v40 = vld [vmem:[#allocation6 + $0x7b8] sm:$0xff] }
 0x21d   :  { %3807 = vmatpush2.bf16.msra.mxu1 %v6194_v0  ;;  %v378_v0 = vld [vmem:[#allocation6 + $0x4b8] sm:$0xff] }
 0x21e   :  { %3808 = vmatprep.subr.bf16.mxu1 %v6187_v2  ;;  %v5892_v2 = vcombine.low %v382_v51, %v386_v52  ;;  %v5885_v4 = vcombine.high %v374_v62, %v378_v0  ;;  %v326_v51 = vld [vmem:[#allocation6 + $0x318] sm:$0xff] }
 0x21f   :  { %3768 = vmatpush2.bf16.msra.mxu0 %v6058_v6  ;;  %v366_v6 = vld [vmem:[#allocation6 + $0x458] sm:$0xff] }
 0x220   :  { %3819 = vmatprep.subr.bf16.mxu0 %v5797_v9  ;;  %v5756_v9 = vcombine.low %v246_v60, %v250_v61  ;;  %v330_v52 = vld [vmem:[#allocation6 + $0x338] sm:$0xff] }
 0x221   :  { %3809 = vmatpush2.bf16.msra.mxu1 %v6186_v8  ;;  %v370_v8 = vld [vmem:[#allocation6 + $0x478] sm:$0xff]  ;;  %v5837_v60 = vcombine.high %v326_v51, %v330_v52 }
 0x222   :  { %3860 = vmatprep.subr.bf16.mxu1 %v5925_v10  ;;  %v3525_v24 = vpop.f32.mrf.mxu0  ;;  %3770 = vmatmul.mubr.bf16.vlgmr.msra.gmra.mxu0 %v6786_v36  ;;  %v5884_v10 = vcombine.low %v374_v62, %v378_v0  ;;  %v5877_v11 = vcombine.high %v366_v6, %v370_v8  ;;  %v318_v62 = vld [vmem:[#allocation6 + $0x2d8] sm:$0xff] }
 0x223   :  { %3820 = vmatpush1.bf16.msra.mxu0 %v5796_v14  ;;  %3851 = vmatprep.mubr.bf16.mxu0 %v6752_v58  ;;  %v258_v58 = vld [vmem:[#allocation6 + $0xf8] sm:$0xff] }
 0x224   :  { %v3566_v28 = vpop.f32.mrf.mxu1  ;;  %3811 = vmatmul.mubr.bf16.vlgmr.msra.gmra.mxu1 %v6790_v39  ;;  %v3527_v31 = vpop.f32.mrf.mxu0  ;;  %3821 = vmatprep.subr.bf16.mxu0 %v5789_v17  ;;  %v5765_v56 = vcombine.high %v254_v50, %v258_v58  ;;  %v5764_v1 = vcombine.low %v254_v50, %v258_v58  ;;  %v358_v14 = vld [vmem:[#allocation6 + $0x418] sm:$0xff]  ;;  %v5748_v17 = vcombine.low %v238_v25, %v242_v5 }
 0x225   :  { %v6820_v30 = vadd.f32 %v3566_v28, %v3525_v24  ;;  %3861 = vmatpush1.bf16.msra.mxu1 %v5924_v15  ;;  %3892 = vmatprep.mubr.bf16.mxu1 %v6756_v59  ;;  %v5900_v59 = vcombine.low %v390_v43, %v394_v44  ;;  %v362_v15 = vld [vmem:[#allocation6 + $0x438] sm:$0xff] }
 0x226   :  { %v3568_v35 = vpop.f32.mrf.mxu1  ;;  %3862 = vmatprep.subr.bf16.mxu1 %v5917_v18  ;;  %v3529_v42 = vpop.f32.mrf.mxu0  ;;  %v5876_v18 = vcombine.low %v366_v6, %v370_v8  ;;  %v5869_v23 = vcombine.high %v358_v14, %v362_v15  ;;  %v350_v24 = vld [vmem:[#allocation6 + $0x3d8] sm:$0xff] }
 0x227   :  { %v6823_v41 = vadd.f32 %v3568_v35, %v3527_v31  ;;  %3822 = vmatpush1.bf16.msra.mxu0 %v5788_v54  ;;  %v482_v28 = vld [vmem:[#allocation6 + $0x7f8] sm:$0xff]  ;;  %v5740_v54 = vcombine.low %v230_v12, %v234_v13  ;;  %v5868_v31 = vcombine.low %v358_v14, %v362_v15  ;;  %v5860_v42 = vcombine.low %v350_v24, %v354_v53 }
 0x228   :  { %v3570_v45 = vpop.f32.mrf.mxu1  ;;  %v3530_v46 = vpop.f32.mrf.mxu0  ;;  %3823 = vmatprep.subr.bf16.mxu0 %v5781_v34  ;;  %v5989_v34 = vcombine.high %v478_v26, %v482_v28  ;;  %v342_v35 = vld [vmem:[#allocation6 + $0x398] sm:$0xff]  ;;  %v5988_v43 = vcombine.low %v478_v26, %v482_v28 }
 0x229   :  { %3863 = vmatpush1.bf16.msra.mxu1 %v5916_v32  ;;  %v5861_v32 = vcombine.high %v350_v24, %v354_v53  ;;  %v5981_v45 = vcombine.high %v470_v38, %v474_v40  ;;  %v338_v46 = vld [vmem:[#allocation6 + $0x378] sm:$0xff] }
 0x22a   :  { %v3571_v48 = vpop.f32.mrf.mxu1  ;;  %3864 = vmatprep.subr.bf16.mxu1 %v5909_v37  ;;  %v346_v37 = vld [vmem:[#allocation6 + $0x3b8] sm:$0xff] }
 0x22b   :  { %3824 = vmatpush1.bf16.msra.mxu0 %v5780_v19  ;;  %v5853_v44 = vcombine.high %v342_v35, %v346_v37  ;;  %v334_v19 = vld [vmem:[#allocation6 + $0x358] sm:$0xff]  ;;  %v5852_v48 = vcombine.low %v342_v35, %v346_v37 }
 0x22c   :  { %3825 = vmatprep.subr.bf16.mxu0 %v5773_v22  ;;  %v466_v22 = vld [vmem:[#allocation6 + $0x778] sm:$0xff]  ;;  %v5845_v50 = vcombine.high %v334_v19, %v338_v46 }
 0x22d   :  { %3865 = vmatpush1.bf16.msra.mxu1 %v5908_v47  ;;  %v462_v47 = vld [vmem:[#allocation6 + $0x758] sm:$0xff] }
 0x22e   :  { %3866 = vmatprep.subr.bf16.mxu1 %v5901_v49  ;;  %v5980_v49 = vcombine.low %v470_v38, %v474_v40  ;;  %v5973_v58 = vcombine.high %v462_v47, %v466_v22  ;;  %v322_v0 = vld [vmem:[#allocation6 + $0x2f8] sm:$0xff] }
 0x22f   :  { %3826 = vmatpush1.bf16.msra.mxu0 %v5772_v55  ;;  %v454_v55 = vld [vmem:[#allocation6 + $0x718] sm:$0xff]  ;;  %v5829_v25 = vcombine.high %v318_v62, %v322_v0 }
 0x230   :  { %3827 = vmatprep.subr.bf16.mxu0 %v5765_v56  ;;  %v5844_v56 = vcombine.low %v334_v19, %v338_v46  ;;  %v310_v6 = vld [vmem:[#allocation6 + $0x298] sm:$0xff] }
 0x231   :  { %3867 = vmatpush1.bf16.msra.mxu1 %v5900_v59  ;;  %v458_v59 = vld [vmem:[#allocation6 + $0x738] sm:$0xff] }
 0x232   :  { %3868 = vmatprep.subr.bf16.mxu1 %v5893_v57  ;;  %v5972_v57 = vcombine.low %v462_v47, %v466_v22  ;;  %v5965_v61 = vcombine.high %v454_v55, %v458_v59  ;;  %v314_v8 = vld [vmem:[#allocation6 + $0x2b8] sm:$0xff] }
 0x233   :  { %3828 = vmatpush1.bf16.msra.mxu0 %v5764_v1  ;;  %v446_v1 = vld [vmem:[#allocation6 + $0x6d8] sm:$0xff]  ;;  %v5821_v12 = vcombine.high %v310_v6, %v314_v8 }
 0x234   :  { %3829 = vmatprep.subr.bf16.mxu0 %v5757_v3  ;;  %v5836_v3 = vcombine.low %v326_v51, %v330_v52  ;;  %v302_v14 = vld [vmem:[#allocation6 + $0x258] sm:$0xff] }
 0x235   :  { %3869 = vmatpush1.bf16.msra.mxu1 %v5892_v2  ;;  %v450_v2 = vld [vmem:[#allocation6 + $0x6f8] sm:$0xff] }
 0x236   :  { %3870 = vmatprep.subr.bf16.mxu1 %v5885_v4  ;;  %v5964_v4 = vcombine.low %v454_v55, %v458_v59  ;;  %v5957_v5 = vcombine.high %v446_v1, %v450_v2  ;;  %v306_v15 = vld [vmem:[#allocation6 + $0x278] sm:$0xff] }
 0x237   :  { %3830 = vmatpush1.bf16.msra.mxu0 %v5756_v9  ;;  %v438_v9 = vld [vmem:[#allocation6 + $0x698] sm:$0xff]  ;;  %v5813_v24 = vcombine.high %v302_v14, %v306_v15 }
 0x238   :  { %3831 = vmatprep.subr.bf16.mxu0 %v5749_v33  ;;  %v5828_v33 = vcombine.low %v318_v62, %v322_v0  ;;  %v294_v26 = vld [vmem:[#allocation6 + $0x218] sm:$0xff] }
 0x239   :  { %3871 = vmatpush1.bf16.msra.mxu1 %v5884_v10  ;;  %v442_v10 = vld [vmem:[#allocation6 + $0x6b8] sm:$0xff] }
 0x23a   :  { %3872 = vmatprep.subr.bf16.mxu1 %v5877_v11  ;;  %v5956_v11 = vcombine.low %v446_v1, %v450_v2  ;;  %v5949_v13 = vcombine.high %v438_v9, %v442_v10  ;;  %v298_v28 = vld [vmem:[#allocation6 + $0x238] sm:$0xff] }
 0x23b   :  { %3832 = vmatpush1.bf16.msra.mxu0 %v5748_v17  ;;  %v430_v17 = vld [vmem:[#allocation6 + $0x658] sm:$0xff]  ;;  %v5805_v35 = vcombine.high %v294_v26, %v298_v28 }
 0x23c   :  { %3833 = vmatprep.subr.bf16.mxu0 %v5741_v21  ;;  %v5820_v21 = vcombine.low %v310_v6, %v314_v8  ;;  %v542_v38 = vld [vmem:[#allocation6 + $0x9d8] sm:$0xff] }
 0x23d   :  { %3873 = vmatpush1.bf16.msra.mxu1 %v5876_v18  ;;  %v434_v18 = vld [vmem:[#allocation6 + $0x678] sm:$0xff] }
 0x23e   :  { %3874 = vmatprep.subr.bf16.mxu1 %v5869_v23  ;;  %v5948_v23 = vcombine.low %v438_v9, %v442_v10  ;;  %v5941_v53 = vcombine.high %v430_v17, %v434_v18  ;;  %v546_v40 = vld [vmem:[#allocation6 + $0x9f8] sm:$0xff] }
 0x23f   :  { %3834 = vmatpush1.bf16.msra.mxu0 %v5740_v54  ;;  %v422_v54 = vld [vmem:[#allocation6 + $0x618] sm:$0xff]  ;;  %v6053_v19 = vcombine.high %v542_v38, %v546_v40 }
 0x240   :  { %3835 = vmatprep.subr.bf16.mxu0 %v5861_v32  ;;  %v5812_v32 = vcombine.low %v302_v14, %v306_v15  ;;  %v534_v47 = vld [vmem:[#allocation6 + $0x998] sm:$0xff] }
 0x241   :  { %3875 = vmatpush1.bf16.msra.mxu1 %v5868_v31  ;;  %v426_v31 = vld [vmem:[#allocation6 + $0x638] sm:$0xff] }
 0x242   :  { %3876 = vmatprep.subr.bf16.mxu1 %v5989_v34  ;;  %v5940_v34 = vcombine.low %v430_v17, %v434_v18  ;;  %v5933_v37 = vcombine.high %v422_v54, %v426_v31  ;;  %v538_v22 = vld [vmem:[#allocation6 + $0x9b8] sm:$0xff] }
 0x243   :  { %3836 = vmatpush2.bf16.msra.mxu0 %v5860_v42  ;;  %v670_v42 = vld [vmem:[#allocation6 + $0xdd8] sm:$0xff]  ;;  %v6045_v51 = vcombine.high %v534_v47, %v538_v22  ;;  %v6044_v0 = vcombine.low %v534_v47, %v538_v22 }
 0x244   :  { %3837 = vmatprep.subr.bf16.mxu0 %v5853_v44  ;;  %v5804_v44 = vcombine.low %v294_v26, %v298_v28  ;;  %v526_v55 = vld [vmem:[#allocation6 + $0x958] sm:$0xff] }
 0x245   :  { %3877 = vmatpush2.bf16.msra.mxu1 %v5988_v43  ;;  %v674_v43 = vld [vmem:[#allocation6 + $0xdf8] sm:$0xff] }
 0x246   :  { %3878 = vmatprep.subr.bf16.mxu1 %v5981_v45  ;;  %v5932_v45 = vcombine.low %v422_v54, %v426_v31  ;;  %v6181_v46 = vcombine.high %v670_v42, %v674_v43  ;;  %v530_v59 = vld [vmem:[#allocation6 + $0x978] sm:$0xff] }
 0x247   :  { %3838 = vmatpush2.bf16.msra.mxu0 %v5852_v48  ;;  %v662_v48 = vld [vmem:[#allocation6 + $0xd98] sm:$0xff]  ;;  %v6036_v10 = vcombine.low %v526_v55, %v530_v59 }
 0x248   :  { %3839 = vmatprep.subr.bf16.mxu0 %v5845_v50  ;;  %v6052_v50 = vcombine.low %v542_v38, %v546_v40  ;;  %v522_v6 = vld [vmem:[#allocation6 + $0x938] sm:$0xff] }
 0x249   :  { %3879 = vmatpush2.bf16.msra.mxu1 %v5980_v49  ;;  %v666_v49 = vld [vmem:[#allocation6 + $0xdb8] sm:$0xff] }
 0x24a   :  { %3880 = vmatprep.subr.bf16.mxu1 %v5973_v58  ;;  %v6180_v58 = vcombine.low %v670_v42, %v674_v43  ;;  %v6173_v52 = vcombine.high %v662_v48, %v666_v49  ;;  %v6172_v2 = vcombine.low %v662_v48, %v666_v49  ;;  %v650_v8 = vld [vmem:[#allocation6 + $0xd38] sm:$0xff] }
 0x24b   :  { %3840 = vmatpush2.bf16.msra.mxu0 %v5844_v56  ;;  %v510_v15 = vld [vmem:[#allocation6 + $0x8d8] sm:$0xff] }
 0x24c   :  { %3841 = vmatprep.subr.bf16.mxu0 %v5837_v60  ;;  %v658_v60 = vld [vmem:[#allocation6 + $0xd78] sm:$0xff] }
 0x24d   :  { %3881 = vmatpush2.bf16.msra.mxu1 %v5972_v57  ;;  %v654_v57 = vld [vmem:[#allocation6 + $0xd58] sm:$0xff] }
 0x24e   :  { %3882 = vmatprep.subr.bf16.mxu1 %v5965_v61  ;;  %v514_v17 = vld [vmem:[#allocation6 + $0x8f8] sm:$0xff] }
 0x24f   :  { %3842 = vmatpush2.bf16.msra.mxu0 %v5836_v3  ;;  %v6037_v3 = vcombine.high %v526_v55, %v530_v59  ;;  %v638_v18 = vld [vmem:[#allocation6 + $0xcd8] sm:$0xff]  ;;  %v6020_v31 = vcombine.low %v510_v15, %v514_v17 }
 0x250   :  { %3843 = vmatprep.subr.bf16.mxu0 %v5829_v25  ;;  %v506_v26 = vld [vmem:[#allocation6 + $0x8b8] sm:$0xff] }
 0x251   :  { %3883 = vmatpush2.bf16.msra.mxu1 %v5964_v4  ;;  %v630_v28 = vld [vmem:[#allocation6 + $0xc98] sm:$0xff] }
 0x252   :  { %3884 = vmatprep.subr.bf16.mxu1 %v5957_v5  ;;  %v518_v5 = vld [vmem:[#allocation6 + $0x918] sm:$0xff] }
 0x253   :  { %3844 = vmatpush2.bf16.msra.mxu0 %v5828_v33  ;;  %v634_v54 = vld [vmem:[#allocation6 + $0xcb8] sm:$0xff] }
 0x254   :  { %3845 = vmatprep.subr.bf16.mxu0 %v5821_v12  ;;  %v6029_v12 = vcombine.high %v518_v5, %v522_v6  ;;  %v498_v38 = vld [vmem:[#allocation6 + $0x878] sm:$0xff] }
 0x255   :  { %3885 = vmatpush2.bf16.msra.mxu1 %v5956_v11  ;;  %v6164_v11 = vcombine.low %v654_v57, %v658_v60  ;;  %v622_v40 = vld [vmem:[#allocation6 + $0xc58] sm:$0xff] }
 0x256   :  { %3886 = vmatprep.subr.bf16.mxu1 %v5949_v13  ;;  %v626_v42 = vld [vmem:[#allocation6 + $0xc78] sm:$0xff] }
 0x257   :  { %3846 = vmatpush2.bf16.msra.mxu0 %v5820_v21  ;;  %v6028_v21 = vcombine.low %v518_v5, %v522_v6  ;;  %v490_v47 = vld [vmem:[#allocation6 + $0x838] sm:$0xff] }
 0x258   :  { %3847 = vmatprep.subr.bf16.mxu0 %v5813_v24  ;;  %v614_v22 = vld [vmem:[#allocation6 + $0xc18] sm:$0xff] }
 0x259   :  { %3887 = vmatpush2.bf16.msra.mxu1 %v5948_v23  ;;  %v6021_v23 = vcombine.high %v510_v15, %v514_v17  ;;  %v618_v48 = vld [vmem:[#allocation6 + $0xc38] sm:$0xff] }
 0x25a   :  { %3888 = vmatprep.subr.bf16.mxu1 %v5941_v53  ;;  %v502_v53 = vld [vmem:[#allocation6 + $0x898] sm:$0xff] }
 0x25b   :  { %3848 = vmatpush2.bf16.msra.mxu0 %v5812_v32  ;;  %v6012_v43 = vcombine.low %v502_v53, %v506_v26  ;;  %v610_v55 = vld [vmem:[#allocation6 + $0xbf8] sm:$0xff] }
 0x25c   :  { %3849 = vmatprep.subr.bf16.mxu0 %v5805_v35  ;;  %v6141_v35 = vcombine.high %v630_v28, %v634_v54  ;;  %v734_v59 = vld [vmem:[#allocation6 + $0xfd8] sm:$0xff] }
 0x25d   :  { %3889 = vmatpush2.bf16.msra.mxu1 %v5940_v34  ;;  %v6013_v34 = vcombine.high %v502_v53, %v506_v26  ;;  %v582_v15 = vld [vmem:[#allocation6 + $0xb18] sm:$0xff] }
 0x25e   :  { %3890 = vmatprep.subr.bf16.mxu1 %v5933_v37  ;;  %v494_v37 = vld [vmem:[#allocation6 + $0x858] sm:$0xff] }
 0x25f   :  { %3850 = vmatpush2.bf16.msra.mxu0 %v5804_v44  ;;  %v6140_v44 = vcombine.low %v630_v28, %v634_v54  ;;  %v6004_v49 = vcombine.low %v494_v37, %v498_v38  ;;  %v586_v17 = vld [vmem:[#allocation6 + $0xb38] sm:$0xff] }
 0x260   :  { %3901 = vmatprep.subr.bf16.mxu0 %v6053_v19  ;;  %v6133_v19 = vcombine.high %v622_v40, %v626_v42  ;;  %v574_v53 = vld [vmem:[#allocation6 + $0xad8] sm:$0xff] }
 0x261   :  { %3891 = vmatpush2.bf16.msra.mxu1 %v5932_v45  ;;  %v6005_v45 = vcombine.high %v494_v37, %v498_v38  ;;  %v578_v26 = vld [vmem:[#allocation6 + $0xaf8] sm:$0xff] }
 0x262   :  { %3942 = vmatprep.subr.bf16.mxu1 %v6181_v46  ;;  %v3607_v56 = vpop.f32.mrf.mxu0  ;;  %3852 = vmatmul.mubr.bf16.vlgmr.msra.gmra.mxu0 %v6762_v16  ;;  %v6165_v16 = vcombine.high %v654_v57, %v658_v60  ;;  %v486_v46 = vld [vmem:[#allocation6 + $0x818] sm:$0xff]  ;;  %v6124_v60 = vcombine.low %v614_v22, %v618_v48 }
 0x263   :  { %v3608_v61 = vadd.f32 %v3607_v56, %v6820_v30  ;;  %3902 = vmatpush1.bf16.msra.mxu0 %v6052_v50  ;;  %3933 = vmatprep.mubr.bf16.mxu0 %v6774_v27  ;;  %v642_v27 = vld [vmem:[#allocation6 + $0xcf8] sm:$0xff]  ;;  %v6132_v50 = vcombine.low %v622_v40, %v626_v42  ;;  %v5996_v57 = vcombine.low %v486_v46, %v490_v47 }
 0x264   :  { %v3648_v62 = vpop.f32.mrf.mxu1  ;;  %3893 = vmatmul.mubr.bf16.vlgmr.msra.gmra.mxu1 %v6768_v20  ;;  %v6829_v1 = vpop.f32.mrf.mxu0  ;;  %3903 = vmatprep.subr.bf16.mxu0 %v6045_v51  ;;  %v646_v20 = vld [vmem:[#allocation6 + $0xd18] sm:$0xff]  ;;  %v6149_v24 = vcombine.high %v638_v18, %v642_v27  ;;  %v6148_v32 = vcombine.low %v638_v18, %v642_v27  ;;  %v6125_v51 = vcombine.high %v614_v22, %v618_v48 }
 0x265   :  { %3943 = vmatpush1.bf16.msra.mxu1 %v6180_v58  ;;  %v6831_v4 = vadd.f32 %v3648_v62, %v3608_v61  ;;  %3974 = vmatprep.mubr.bf16.mxu1 %v6779_v29  ;;  %v6157_v14 = vcombine.high %v646_v20, %v650_v8  ;;  %v6156_v29 = vcombine.low %v646_v20, %v650_v8  ;;  %v738_v56 = vld [vmem:[#allocation6 + $0xff8] sm:$0xff] }
 0x266   :  { %v6833_v25 = vpop.f32.mrf.mxu1  ;;  %3944 = vmatprep.subr.bf16.mxu1 %v6173_v52  ;;  %v3611_v30 = vpop.f32.mrf.mxu0  ;;  %v5997_v58 = vcombine.high %v486_v46, %v490_v47  ;;  %v606_v52 = vld [vmem:[#allocation6 + $0xbd8] sm:$0xff]  ;;  %v6245_v62 = vcombine.high %v734_v59, %v738_v56  ;;  %v6244_v6 = vcombine.low %v734_v59, %v738_v56 }
 0x267   :  { %3904 = vmatpush1.bf16.msra.mxu0 %v6044_v0  ;;  %v6117_v61 = vcombine.high %v606_v52, %v610_v55  ;;  %v598_v0 = vld [vmem:[#allocation6 + $0xb98] sm:$0xff]  ;;  %v6116_v5 = vcombine.low %v606_v52, %v610_v55 }
 0x268   :  { %v3652_v9 = vpop.f32.mrf.mxu1  ;;  %v3612_v33 = vpop.f32.mrf.mxu0  ;;  %3905 = vmatprep.subr.bf16.mxu0 %v6037_v3  ;;  %v726_v3 = vld [vmem:[#allocation6 + $0xf98] sm:$0xff] }
 0x269   :  { %3945 = vmatpush1.bf16.msra.mxu1 %v6172_v2  ;;  %v602_v2 = vld [vmem:[#allocation6 + $0xbb8] sm:$0xff] }
 0x26a   :  { %v3653_v13 = vpop.f32.mrf.mxu1  ;;  %3946 = vmatprep.subr.bf16.mxu1 %v6165_v16  ;;  %v730_v16 = vld [vmem:[#allocation6 + $0xfb8] sm:$0xff]  ;;  %v6109_v30 = vcombine.high %v598_v0, %v602_v2 }
 0x26b   :  { %3906 = vmatpush1.bf16.msra.mxu0 %v6036_v10  ;;  %v6237_v20 = vcombine.high %v726_v3, %v730_v16  ;;  %v590_v8 = vld [vmem:[#allocation6 + $0xb58] sm:$0xff] }
 0x26c   :  { %3907 = vmatprep.subr.bf16.mxu0 %v6029_v12  ;;  %v594_v9 = vld [vmem:[#allocation6 + $0xb78] sm:$0xff]  ;;  %v6236_v12 = vcombine.low %v726_v3, %v730_v16  ;;  %v3610_v16 = vadd.f32 %v6829_v1, %v6823_v41  ;;  %v4120_v1 = vld [vmem:[#allocation9 + $0x1e0] sm:$0xff] }
 0x26d   :  { %3947 = vmatpush1.bf16.msra.mxu1 %v6164_v11  ;;  %v718_v10 = vld [vmem:[#allocation6 + $0xf58] sm:$0xff]  ;;  %v6108_v11 = vcombine.low %v598_v0, %v602_v2  ;;  %v6101_v13 = vcombine.high %v590_v8, %v594_v9 }
 0x26e   :  { %3948 = vmatprep.subr.bf16.mxu1 %v6157_v14  ;;  %v722_v33 = vld [vmem:[#allocation6 + $0xf78] sm:$0xff] }
 0x26f   :  { %3908 = vmatpush1.bf16.msra.mxu0 %v6028_v21  ;;  %v6229_v14 = vcombine.high %v718_v10, %v722_v33  ;;  %v710_v18 = vld [vmem:[#allocation6 + $0xf18] sm:$0xff]  ;;  %v6100_v21 = vcombine.low %v590_v8, %v594_v9  ;;  %v4121_v8 = vld [vmem:[#allocation9 + $0x1e8] sm:$0xff] }
 0x270   :  { %3909 = vmatprep.subr.bf16.mxu0 %v6021_v23  ;;  %v714_v27 = vld [vmem:[#allocation6 + $0xf38] sm:$0xff]  ;;  %v6093_v23 = vcombine.high %v582_v15, %v586_v17 }
 0x271   :  { %3949 = vmatpush1.bf16.msra.mxu1 %v6156_v29  ;;  %v6228_v29 = vcombine.low %v718_v10, %v722_v33  ;;  %v702_v28 = vld [vmem:[#allocation6 + $0xed8] sm:$0xff]  ;;  %v4249_v10 = vld [vmem:[#allocation9 + $0x5e8] sm:$0xff]  ;;  %v3651_v33 = vadd.f32 %v6833_v25, %v3610_v16 }
 0x272   :  { %3950 = vmatprep.subr.bf16.mxu1 %v6149_v24  ;;  %v6221_v24 = vcombine.high %v710_v18, %v714_v27  ;;  %v706_v54 = vld [vmem:[#allocation6 + $0xef8] sm:$0xff]  ;;  %v4245_v25 = vld [vmem:[#allocation9 + $0x5c8] sm:$0xff] }
 0x273   :  { %3910 = vmatpush1.bf16.msra.mxu0 %v6020_v31  ;;  %v6092_v31 = vcombine.low %v582_v15, %v586_v17  ;;  %v566_v37 = vld [vmem:[#allocation6 + $0xa98] sm:$0xff]  ;;  %v4081_v16 = vld [vmem:[#allocation9 + $0xa8] sm:$0xff] }
 0x274   :  { %3911 = vmatprep.subr.bf16.mxu0 %v6013_v34  ;;  %v6085_v34 = vcombine.high %v574_v53, %v578_v26  ;;  %v570_v38 = vld [vmem:[#allocation6 + $0xab8] sm:$0xff] }
 0x275   :  { %3951 = vmatpush1.bf16.msra.mxu1 %v6148_v32  ;;  %v6220_v32 = vcombine.low %v710_v18, %v714_v27  ;;  %v694_v40 = vld [vmem:[#allocation6 + $0xe98] sm:$0xff]  ;;  %v4116_v18 = vld [vmem:[#allocation9 + $0x1c0] sm:$0xff] }
 0x276   :  { %3952 = vmatprep.subr.bf16.mxu1 %v6141_v35  ;;  %v6213_v35 = vcombine.high %v702_v28, %v706_v54  ;;  %v698_v42 = vld [vmem:[#allocation6 + $0xeb8] sm:$0xff] }
 0x277   :  { %3912 = vmatpush1.bf16.msra.mxu0 %v6012_v43  ;;  %v6084_v43 = vcombine.low %v574_v53, %v578_v26  ;;  %v558_v46 = vld [vmem:[#allocation6 + $0xa58] sm:$0xff]  ;;  %v4240_v53 = vld [vmem:[#allocation9 + $0x5a0] sm:$0xff]  ;;  %v4109_v26 = vld [vmem:[#allocation9 + $0x188] sm:$0xff] }
 0x278   :  { %3913 = vmatprep.subr.bf16.mxu0 %v6005_v45  ;;  %v6077_v45 = vcombine.high %v566_v37, %v570_v38  ;;  %v562_v47 = vld [vmem:[#allocation6 + $0xa78] sm:$0xff] }
 0x279   :  { %3953 = vmatpush1.bf16.msra.mxu1 %v6140_v44  ;;  %v6212_v44 = vcombine.low %v702_v28, %v706_v54  ;;  %v686_v22 = vld [vmem:[#allocation6 + $0xe58] sm:$0xff]  ;;  %v4237_v54 = vld [vmem:[#allocation9 + $0x588] sm:$0xff] }
 0x27a   :  { %3954 = vmatprep.subr.bf16.mxu1 %v6133_v19  ;;  %v6205_v19 = vcombine.high %v694_v40, %v698_v42  ;;  %v690_v48 = vld [vmem:[#allocation6 + $0xe78] sm:$0xff] }
 0x27b   :  { %3914 = vmatpush1.bf16.msra.mxu0 %v6004_v49  ;;  %v6076_v49 = vcombine.low %v566_v37, %v570_v38  ;;  %v6197_v52 = vcombine.high %v686_v22, %v690_v48  ;;  %v550_v55 = vld [vmem:[#allocation6 + $0xa18] sm:$0xff]  ;;  %v4233_v38 = vld [vmem:[#allocation9 + $0x568] sm:$0xff] }
 0x27c   :  { %3915 = vmatprep.subr.bf16.mxu0 %v5997_v58  ;;  %v6204_v58 = vcombine.low %v694_v40, %v698_v42  ;;  %v554_v59 = vld [vmem:[#allocation6 + $0xa38] sm:$0xff]  ;;  %v4104_v40 = vld [vmem:[#allocation9 + $0x160] sm:$0xff] }
 0x27d   :  { %3955 = vmatpush1.bf16.msra.mxu1 %v6132_v50  ;;  %v4012_v50 = vlaneseq  ;;  %v678_v56 = vld [vmem:[#allocation6 + $0xe18] sm:$0xff]  ;;  %v6061_v0 = vcombine.high %v550_v55, %v554_v59  ;;  %v4232_v42 = vld [vmem:[#allocation9 + $0x560] sm:$0xff] }
 0x27e   :  { %3956 = vmatprep.subr.bf16.mxu1 %v6125_v51  ;;  %v6069_v51 = vcombine.high %v558_v46, %v562_v47 }
 0x27f   :  { %3916 = vmatpush1.bf16.msra.mxu0 %v5996_v57  ;;  %v682_v57 = vld [vmem:[#allocation6 + $0xe38] sm:$0xff] }
 0x280   :  { %3917 = vmatprep.subr.bf16.mxu0 %v6117_v61  ;;  %v6838_v61 = vshrl.u32 %v4012_v50, 7  ;;  %v6189_v2 = vcombine.high %v678_v56, %v682_v57 }
 0x281   :  { %3957 = vmatpush1.bf16.msra.mxu1 %v6124_v60  ;;  %v6068_v60 = vcombine.low %v558_v46, %v562_v47  ;;  %v4097_v46 = vld [vmem:[#allocation9 + $0x128] sm:$0xff] }
 0x282   :  { %3958 = vmatprep.subr.bf16.mxu1 %v6245_v62  ;;  %v6196_v62 = vcombine.low %v686_v22, %v690_v48  ;;  %v6841_v3 = vsub.s32 1, %v6838_v61  ;;  %v4225_v47 = vld [vmem:[#allocation9 + $0x528] sm:$0xff]  ;;  %v4096_v22 = vld [vmem:[#allocation9 + $0x120] sm:$0xff] }
 0x283   :  { %3918 = vmatpush2.bf16.msra.mxu0 %v6116_v5  ;;  %v6846_v5 = vsub.s32 3, %v6838_v61  ;;  %v4224_v48 = vld [vmem:[#allocation9 + $0x520] sm:$0xff] }
 0x284   :  { %3919 = vmatprep.subr.bf16.mxu0 %v6109_v30  ;;  %v6188_v30 = vcombine.low %v678_v56, %v682_v57  ;;  %v4088_v56 = vld [vmem:[#allocation9 + $0xe0] sm:$0xff] }
 0x285   :  { %3959 = vmatpush2.bf16.msra.mxu1 %v6244_v6  ;;  %v6060_v6 = vcombine.low %v550_v55, %v554_v59  ;;  %v4089_v55 = vld [vmem:[#allocation9 + $0xe8] sm:$0xff]  ;;  %v4216_v57 = vld [vmem:[#allocation9 + $0x4e0] sm:$0xff] }
 0x286   :  { %3960 = vmatprep.subr.bf16.mxu1 %v6237_v20  ;;  %v6848_v20 = vld [vmem:[#allocation8] sm:$0xff]  ;;  %v4217_v59 = vld [vmem:[#allocation9 + $0x4e8] sm:$0xff] }
 0x287   :  { %3920 = vmatpush2.bf16.msra.mxu0 %v6108_v11  ;;  %v4019_v9 = vrot.slane %v6848_v20, %v6841_v3  ;;  %v4027_v41 = vrot.slane %v6848_v20, %v6846_v5  ;;  %v4248_v11 = vld [vmem:[#allocation9 + $0x5e0] sm:$0xff] }
 0x288   :  { %3921 = vmatprep.subr.bf16.mxu0 %v6101_v13 }
 0x289   :  { %3961 = vmatpush2.bf16.msra.mxu1 %v6236_v12  ;;  %v6856_v12 = vadd.f32 %v4019_v9, %v6816_v7  ;;  %v6859_v15 = vadd.f32 %v4027_v41, %v3651_v33  ;;  %v4244_v7 = vld [vmem:[#allocation9 + $0x5c0] sm:$0xff]  ;;  %v4077_v9 = vld [vmem:[#allocation9 + $0x88] sm:$0xff] }
 0x28a   :  { %3962 = vmatprep.subr.bf16.mxu1 %v6229_v14  ;;  %v4117_v14 = vld [vmem:[#allocation9 + $0x1c8] sm:$0xff]  ;;  %v4076_v33 = vld [vmem:[#allocation9 + $0x80] sm:$0xff] }
 0x28b   :  { %3922 = vmatpush2.bf16.msra.mxu0 %v6100_v21  ;;  %v4204_v41 = vld [vmem:[#allocation9 + $0x480] sm:$0xff] }
 0x28c   :  { %3923 = vmatprep.subr.bf16.mxu0 %v6093_v23  ;;  %v4241_v23 = vld [vmem:[#allocation9 + $0x5a8] sm:$0xff] }
 0x28d   :  { %3963 = vmatpush2.bf16.msra.mxu1 %v6228_v29  ;;  %v4113_v29 = vld [vmem:[#allocation9 + $0x1a8] sm:$0xff] }
 0x28e   :  { %3964 = vmatprep.subr.bf16.mxu1 %v6221_v24  ;;  %v4112_v24 = vld [vmem:[#allocation9 + $0x1a0] sm:$0xff] }
 0x28f   :  { %3924 = vmatpush2.bf16.msra.mxu0 %v6092_v31  ;;  %v4108_v31 = vld [vmem:[#allocation9 + $0x180] sm:$0xff] }
 0x290   :  { %3925 = vmatprep.subr.bf16.mxu0 %v6085_v34  ;;  %v4236_v34 = vld [vmem:[#allocation9 + $0x580] sm:$0xff] }
 0x291   :  { %3965 = vmatpush2.bf16.msra.mxu1 %v6220_v32 }
 0x292   :  { %3966 = vmatprep.subr.bf16.mxu1 %v6213_v35  ;;  %v4105_v35 = vld [vmem:[#allocation9 + $0x168] sm:$0xff] }
 0x293   :  { %3926 = vmatpush2.bf16.msra.mxu0 %v6084_v43  ;;  %v4101_v43 = vld [vmem:[#allocation9 + $0x148] sm:$0xff] }
 0x294   :  { %3927 = vmatprep.subr.bf16.mxu0 %v6077_v45  ;;  %v4100_v45 = vld [vmem:[#allocation9 + $0x140] sm:$0xff] }
 0x295   :  { %3967 = vmatpush2.bf16.msra.mxu1 %v6212_v44  ;;  %v4229_v44 = vld [vmem:[#allocation9 + $0x548] sm:$0xff] }
 0x296   :  { %3968 = vmatprep.subr.bf16.mxu1 %v6205_v19  ;;  %v4228_v19 = vld [vmem:[#allocation9 + $0x540] sm:$0xff] }
 0x297   :  { %3928 = vmatpush2.bf16.msra.mxu0 %v6076_v49  ;;  %v4093_v49 = vld [vmem:[#allocation9 + $0x108] sm:$0xff] }
 0x298   :  { %3929 = vmatprep.subr.bf16.mxu0 %v6069_v51  ;;  %v4092_v51 = vld [vmem:[#allocation9 + $0x100] sm:$0xff] }
 0x299   :  { %3969 = vmatpush2.bf16.msra.mxu1 %v6204_v58  ;;  %v4221_v58 = vld [vmem:[#allocation9 + $0x508] sm:$0xff] }
 0x29a   :  { %3970 = vmatprep.subr.bf16.mxu1 %v6197_v52  ;;  %v4220_v52 = vld [vmem:[#allocation9 + $0x500] sm:$0xff] }
 0x29b   :  { %3930 = vmatpush2.bf16.msra.mxu0 %v6068_v60  ;;  %v4085_v60 = vld [vmem:[#allocation9 + $0xc8] sm:$0xff] }
 0x29c   :  { %3931 = vmatprep.subr.bf16.mxu0 %v6061_v0  ;;  %v4084_v0 = vld [vmem:[#allocation9 + $0xc0] sm:$0xff] }
 0x29d   :  { %3971 = vmatpush2.bf16.msra.mxu1 %v6196_v62  ;;  %v4213_v62 = vld [vmem:[#allocation9 + $0x4c8] sm:$0xff] }
 0x29e   :  { %3972 = vmatprep.subr.bf16.mxu1 %v6189_v2  ;;  %v4212_v2 = vld [vmem:[#allocation9 + $0x4c0] sm:$0xff] }
 0x29f   :  { %3932 = vmatpush2.bf16.msra.mxu0 %v6060_v6  ;;  %v4209_v6 = vld [vmem:[#allocation9 + $0x4a8] sm:$0xff] }
 0x2a0   :  { %4594 = vmatprep.subr.mxu0 %v4121_v8  ;;  %v4208_v8 = vld [vmem:[#allocation9 + $0x4a0] sm:$0xff] }
 0x2a1   :  { %3973 = vmatpush2.bf16.msra.mxu1 %v6188_v30  ;;  %v4080_v30 = vld [vmem:[#allocation9 + $0xa0] sm:$0xff] }
 0x2a2   :  { %4665 = vmatprep.subr.mxu1 %v4249_v10  ;;  %v3689_v13 = vpop.f32.mrf.mxu0  ;;  %3934 = vmatmul.mubr.bf16.vlgmr.msra.gmra.mxu0 %v6786_v36  ;;  %v4205_v10 = vld [vmem:[#allocation9 + $0x488] sm:$0xff] }
 0x2a3   :  { %4595 = vmatpush1.msra.mxu0 %v4120_v1  ;;  %4658 = vmatprep.mubr.f32.mxu0 %v6856_v12  ;;  %v4073_v1 = vld [vmem:[#allocation9 + $0x68] sm:$0xff] }
 0x2a4   :  { %v3730_v17 = vpop.f32.mrf.mxu1  ;;  %3975 = vmatmul.mubr.bf16.vlgmr.msra.gmra.mxu1 %v6790_v39  ;;  %v6865_v21 = vpop.f32.mrf.mxu0  ;;  %4596 = vmatprep.subr.mxu0 %v4117_v14  ;;  %v4200_v14 = vld [vmem:[#allocation9 + $0x460] sm:$0xff] }
 0x2a5   :  { %v6862_v27 = vadd.f32 %v3730_v17, %v3689_v13  ;;  %4666 = vmatpush1.msra.mxu1 %v4248_v11  ;;  %4729 = vmatprep.mubr.f32.mxu1 %v6859_v15  ;;  %v4201_v11 = vld [vmem:[#allocation9 + $0x468] sm:$0xff]  ;;  %v4072_v13 = vld [vmem:[#allocation9 + $0x60] sm:$0xff] }
 0x2a6   :  { %v6868_v36 = vpop.f32.mrf.mxu1  ;;  %4667 = vmatprep.subr.mxu1 %v4245_v25  ;;  %4597 = vmatpush1.msra.mxu0 %v4116_v18  ;;  %v3693_v39 = vpop.f32.mrf.mxu0  ;;  %v4069_v17 = vld [vmem:[#allocation9 + $0x48] sm:$0xff]  ;;  %v4068_v18 = vld [vmem:[#allocation9 + $0x40] sm:$0xff] }
 0x2a7   :  { %4668 = vmatpush1.msra.mxu1 %v4244_v7  ;;  %4598 = vmatprep.subr.mxu0 %v4113_v29  ;;  %v4197_v25 = vld [vmem:[#allocation9 + $0x448] sm:$0xff]  ;;  %v4196_v7 = vld [vmem:[#allocation9 + $0x440] sm:$0xff] }
 0x2a8   :  { %v3734_v28 = vpop.f32.mrf.mxu1  ;;  %4669 = vmatprep.subr.mxu1 %v4241_v23  ;;  %4599 = vmatpush1.msra.mxu0 %v4112_v24  ;;  %v3694_v32 = vpop.f32.mrf.mxu0  ;;  %v4065_v29 = vld [vmem:[#allocation9 + $0x28] sm:$0xff]  ;;  %v4064_v24 = vld [vmem:[#allocation9 + $0x20] sm:$0xff] }
 0x2a9   :  { %4670 = vmatpush1.msra.mxu1 %v4240_v53  ;;  %4600 = vmatprep.subr.mxu0 %v4109_v26  ;;  %v4193_v23 = vld [vmem:[#allocation9 + $0x428] sm:$0xff]  ;;  %v4192_v39 = vld [vmem:[#allocation9 + $0x420] sm:$0xff] }
 0x2aa   :  { %v3735_v37 = vpop.f32.mrf.mxu1  ;;  %4671 = vmatprep.subr.mxu1 %v4237_v54  ;;  %4601 = vmatpush1.msra.mxu0 %v4108_v31  ;;  %v4061_v53 = vld [vmem:[#allocation9 + $0x8] sm:$0xff]  ;;  %v4060_v28 = vld [vmem:[#allocation9] sm:$0xff] }
 0x2ab   :  { %4672 = vmatpush1.msra.mxu1 %v4236_v34  ;;  %4602 = vmatprep.subr.mxu0 %v4105_v35  ;;  %v4189_v26 = vld [vmem:[#allocation9 + $0x408] sm:$0xff]  ;;  %v4188_v54 = vld [vmem:[#allocation9 + $0x400] sm:$0xff] }
 0x2ac   :  { %4673 = vmatprep.subr.mxu1 %v4233_v38  ;;  %4603 = vmatpush1.msra.mxu0 %v4104_v40  ;;  %v4185_v31 = vld [vmem:[#allocation9 + $0x3e8] sm:$0xff]  ;;  %v4184_v34 = vld [vmem:[#allocation9 + $0x3e0] sm:$0xff] }
 0x2ad   :  { %4674 = vmatpush1.msra.mxu1 %v4232_v42  ;;  %4604 = vmatprep.subr.mxu0 %v4101_v43  ;;  %v4313_v32 = vld [vmem:[#allocation9 + $0x7e8] sm:$0xff]  ;;  %v4312_v35 = vld [vmem:[#allocation9 + $0x7e0] sm:$0xff] }
 0x2ae   :  { %4675 = vmatprep.subr.mxu1 %v4229_v44  ;;  %4605 = vmatpush1.msra.mxu0 %v4100_v45  ;;  %v4181_v37 = vld [vmem:[#allocation9 + $0x3c8] sm:$0xff]  ;;  %v4180_v40 = vld [vmem:[#allocation9 + $0x3c0] sm:$0xff] }
 0x2af   :  { %4676 = vmatpush1.msra.mxu1 %v4228_v19  ;;  %4606 = vmatprep.subr.mxu0 %v4097_v46  ;;  %v4309_v38 = vld [vmem:[#allocation9 + $0x7c8] sm:$0xff]  ;;  %v4308_v42 = vld [vmem:[#allocation9 + $0x7c0] sm:$0xff] }
 0x2b0   :  { %4677 = vmatprep.subr.mxu1 %v4225_v47  ;;  %4607 = vmatpush1.msra.mxu0 %v4096_v22  ;;  %v4177_v43 = vld [vmem:[#allocation9 + $0x3a8] sm:$0xff]  ;;  %v4176_v45 = vld [vmem:[#allocation9 + $0x3a0] sm:$0xff] }
 0x2b1   :  { %4678 = vmatpush1.msra.mxu1 %v4224_v48  ;;  %4608 = vmatprep.subr.mxu0 %v4093_v49  ;;  %v4305_v44 = vld [vmem:[#allocation9 + $0x7a8] sm:$0xff]  ;;  %v4304_v19 = vld [vmem:[#allocation9 + $0x7a0] sm:$0xff] }
 0x2b2   :  { %4679 = vmatprep.subr.mxu1 %v4221_v58  ;;  %4609 = vmatpush1.msra.mxu0 %v4092_v51  ;;  %v4173_v46 = vld [vmem:[#allocation9 + $0x388] sm:$0xff]  ;;  %v4172_v22 = vld [vmem:[#allocation9 + $0x380] sm:$0xff] }
 0x2b3   :  { %4680 = vmatpush1.msra.mxu1 %v4220_v52  ;;  %4610 = vmatprep.subr.mxu0 %v4089_v55  ;;  %v4301_v47 = vld [vmem:[#allocation9 + $0x788] sm:$0xff]  ;;  %v4300_v48 = vld [vmem:[#allocation9 + $0x780] sm:$0xff] }
 0x2b4   :  { %4681 = vmatprep.subr.mxu1 %v4217_v59  ;;  %4611 = vmatpush1.msra.mxu0 %v4088_v56  ;;  %v4169_v49 = vld [vmem:[#allocation9 + $0x368] sm:$0xff]  ;;  %v4168_v51 = vld [vmem:[#allocation9 + $0x360] sm:$0xff] }
 0x2b5   :  { %4682 = vmatpush1.msra.mxu1 %v4216_v57  ;;  %4612 = vmatprep.subr.mxu0 %v4085_v60  ;;  %v4297_v58 = vld [vmem:[#allocation9 + $0x768] sm:$0xff]  ;;  %v4296_v52 = vld [vmem:[#allocation9 + $0x760] sm:$0xff] }
 0x2b6   :  { %4683 = vmatprep.subr.mxu1 %v4213_v62  ;;  %4613 = vmatpush1.msra.mxu0 %v4084_v0  ;;  %v4165_v55 = vld [vmem:[#allocation9 + $0x348] sm:$0xff]  ;;  %v4164_v56 = vld [vmem:[#allocation9 + $0x340] sm:$0xff] }
 0x2b7   :  { %4684 = vmatpush1.msra.mxu1 %v4212_v2  ;;  %4614 = vmatprep.subr.mxu0 %v4081_v16  ;;  %v4293_v59 = vld [vmem:[#allocation9 + $0x748] sm:$0xff]  ;;  %v4292_v57 = vld [vmem:[#allocation9 + $0x740] sm:$0xff] }
 0x2b8   :  { %4685 = vmatprep.subr.mxu1 %v4209_v6  ;;  %4615 = vmatpush1.msra.mxu0 %v4080_v30  ;;  %v4161_v60 = vld [vmem:[#allocation9 + $0x328] sm:$0xff]  ;;  %v4160_v0 = vld [vmem:[#allocation9 + $0x320] sm:$0xff] }
 0x2b9   :  { %4686 = vmatpush1.msra.mxu1 %v4208_v8  ;;  %4616 = vmatprep.subr.mxu0 %v4077_v9  ;;  %v4289_v62 = vld [vmem:[#allocation9 + $0x728] sm:$0xff]  ;;  %v4288_v2 = vld [vmem:[#allocation9 + $0x720] sm:$0xff] }
 0x2ba   :  { %4687 = vmatprep.subr.mxu1 %v4205_v10  ;;  %4617 = vmatpush1.msra.mxu0 %v4076_v33  ;;  %v4157_v16 = vld [vmem:[#allocation9 + $0x308] sm:$0xff]  ;;  %v4156_v30 = vld [vmem:[#allocation9 + $0x300] sm:$0xff] }
 0x2bb   :  { %4688 = vmatpush1.msra.mxu1 %v4204_v41  ;;  %4618 = vmatprep.subr.mxu0 %v4073_v1  ;;  %v4285_v6 = vld [vmem:[#allocation9 + $0x708] sm:$0xff]  ;;  %v4284_v8 = vld [vmem:[#allocation9 + $0x700] sm:$0xff] }
 0x2bc   :  { %4689 = vmatprep.subr.mxu1 %v4201_v11  ;;  %4619 = vmatpush1.msra.mxu0 %v4072_v13  ;;  %v4153_v9 = vld [vmem:[#allocation9 + $0x2e8] sm:$0xff]  ;;  %v4152_v33 = vld [vmem:[#allocation9 + $0x2e0] sm:$0xff] }
 0x2bd   :  { %4690 = vmatpush1.msra.mxu1 %v4200_v14  ;;  %4620 = vmatprep.subr.mxu0 %v4069_v17  ;;  %v4281_v10 = vld [vmem:[#allocation9 + $0x6e8] sm:$0xff]  ;;  %v4280_v41 = vld [vmem:[#allocation9 + $0x6e0] sm:$0xff] }
 0x2be   :  { %4691 = vmatprep.subr.mxu1 %v4197_v25  ;;  %4621 = vmatpush1.msra.mxu0 %v4068_v18  ;;  %v4149_v1 = vld [vmem:[#allocation9 + $0x2c8] sm:$0xff]  ;;  %v4148_v13 = vld [vmem:[#allocation9 + $0x2c0] sm:$0xff] }
 0x2bf   :  { %4692 = vmatpush1.msra.mxu1 %v4196_v7  ;;  %4622 = vmatprep.subr.mxu0 %v4065_v29  ;;  %v4277_v11 = vld [vmem:[#allocation9 + $0x6c8] sm:$0xff]  ;;  %v4276_v14 = vld [vmem:[#allocation9 + $0x6c0] sm:$0xff] }
 0x2c0   :  { %4693 = vmatprep.subr.mxu1 %v4193_v23  ;;  %4623 = vmatpush1.msra.mxu0 %v4064_v24  ;;  %v4145_v17 = vld [vmem:[#allocation9 + $0x2a8] sm:$0xff]  ;;  %v4144_v18 = vld [vmem:[#allocation9 + $0x2a0] sm:$0xff] }
 0x2c1   :  { %4694 = vmatpush1.msra.mxu1 %v4192_v39  ;;  %4624 = vmatprep.subr.mxu0 %v4061_v53  ;;  %v4273_v25 = vld [vmem:[#allocation9 + $0x6a8] sm:$0xff]  ;;  %v4272_v7 = vld [vmem:[#allocation9 + $0x6a0] sm:$0xff] }
 0x2c2   :  { %4695 = vmatprep.subr.mxu1 %v4189_v26  ;;  %4625 = vmatpush1.msra.mxu0 %v4060_v28  ;;  %v4141_v29 = vld [vmem:[#allocation9 + $0x288] sm:$0xff]  ;;  %v4140_v24 = vld [vmem:[#allocation9 + $0x280] sm:$0xff]  ;;  %v6871_v26 = vsub.s32 0, %v6838_v61 }
 0x2c3   :  { %4696 = vmatpush1.msra.mxu1 %v4188_v54  ;;  %4626 = vmatprep.subr.mxu0 %v4185_v31  ;;  %v4269_v23 = vld [vmem:[#allocation9 + $0x688] sm:$0xff]  ;;  %v4268_v39 = vld [vmem:[#allocation9 + $0x680] sm:$0xff]  ;;  %v6874_v31 = vsub.s32 2, %v6838_v61 }
 0x2c4   :  { %4697 = vmatprep.subr.mxu1 %v4313_v32  ;;  %4627 = vmatpush2.msra.mxu0 %v4184_v34  ;;  %v4137_v53 = vld [vmem:[#allocation9 + $0x268] sm:$0xff]  ;;  %v4136_v54 = vld [vmem:[#allocation9 + $0x260] sm:$0xff] }
 0x2c5   :  { %4698 = vmatpush2.msra.mxu1 %v4312_v35  ;;  %4628 = vmatprep.subr.mxu0 %v4181_v37  ;;  %v4265_v28 = vld [vmem:[#allocation9 + $0x668] sm:$0xff]  ;;  %v4264_v32 = vld [vmem:[#allocation9 + $0x660] sm:$0xff] }
 0x2c6   :  { %4699 = vmatprep.subr.mxu1 %v4309_v38  ;;  %4629 = vmatpush2.msra.mxu0 %v4180_v40  ;;  %v4133_v34 = vld [vmem:[#allocation9 + $0x248] sm:$0xff]  ;;  %v4132_v37 = vld [vmem:[#allocation9 + $0x240] sm:$0xff] }
 0x2c7   :  { %4700 = vmatpush2.msra.mxu1 %v4308_v42  ;;  %4630 = vmatprep.subr.mxu0 %v4177_v43  ;;  %v4261_v35 = vld [vmem:[#allocation9 + $0x648] sm:$0xff]  ;;  %v4260_v38 = vld [vmem:[#allocation9 + $0x640] sm:$0xff]  ;;  %v4015_v42 = vrot.slane %v6848_v20, %v6871_v26 }
 0x2c8   :  { %4701 = vmatprep.subr.mxu1 %v4305_v44  ;;  %4631 = vmatpush2.msra.mxu0 %v4176_v45  ;;  %v4129_v40 = vld [vmem:[#allocation9 + $0x228] sm:$0xff]  ;;  %v4128_v44 = vld [vmem:[#allocation9 + $0x220] sm:$0xff]  ;;  %v4023_v45 = vrot.slane %v6848_v20, %v6874_v31 }
 0x2c9   :  { %4702 = vmatpush2.msra.mxu1 %v4304_v19  ;;  %4632 = vmatprep.subr.mxu0 %v4173_v46  ;;  %v4257_v43 = vld [vmem:[#allocation9 + $0x628] sm:$0xff]  ;;  %v4256_v19 = vld [vmem:[#allocation9 + $0x620] sm:$0xff] }
 0x2ca   :  { %4703 = vmatprep.subr.mxu1 %v4301_v47  ;;  %4633 = vmatpush2.msra.mxu0 %v4172_v22  ;;  %v4125_v46 = vld [vmem:[#allocation9 + $0x208] sm:$0xff]  ;;  %v4124_v22 = vld [vmem:[#allocation9 + $0x200] sm:$0xff] }
 0x2cb   :  { %4704 = vmatpush2.msra.mxu1 %v4300_v48  ;;  %4634 = vmatprep.subr.mxu0 %v4169_v49  ;;  %v4253_v47 = vld [vmem:[#allocation9 + $0x608] sm:$0xff]  ;;  %v4252_v48 = vld [vmem:[#allocation9 + $0x600] sm:$0xff]  ;;  %v6881_v49 = vadd.f32 %v4015_v42, %v6811_v63 }
 0x2cc   :  { %4705 = vmatprep.subr.mxu1 %v4297_v58  ;;  %4635 = vmatpush2.msra.mxu0 %v4168_v51  ;;  %v4377_v58 = vld [vmem:[#allocation9 + $0x9e8] sm:$0xff]  ;;  %v4034_v51 = vsub.s32 5, %v6838_v61 }
 0x2cd   :  { %4706 = vmatpush2.msra.mxu1 %v4296_v52  ;;  %4636 = vmatprep.subr.mxu0 %v4165_v55  ;;  %v6885_v52 = vadd.f32 %v4023_v45, %v6831_v4  ;;  %v4345_v42 = vld [vmem:[#allocation9 + $0x8e8] sm:$0xff]  ;;  %v4476_v45 = vld [vmem:[#allocation9 + $0xd00] sm:$0xff] }
 0x2ce   :  { %4707 = vmatprep.subr.mxu1 %v4293_v59  ;;  %4637 = vmatpush2.msra.mxu0 %v4164_v56  ;;  %v4376_v59 = vld [vmem:[#allocation9 + $0x9e0] sm:$0xff]  ;;  %v4505_v56 = vld [vmem:[#allocation9 + $0xde8] sm:$0xff] }
 0x2cf   :  { %4708 = vmatpush2.msra.mxu1 %v4292_v57  ;;  %4638 = vmatprep.subr.mxu0 %v4161_v60  ;;  %v3733_v57 = vadd.f32 %v6868_v36, %v6865_v21  ;;  %v4373_v60 = vld [vmem:[#allocation9 + $0x9c8] sm:$0xff]  ;;  %v4500_v21 = vld [vmem:[#allocation9 + $0xdc0] sm:$0xff] }
 0x2d0   :  { %4709 = vmatprep.subr.mxu1 %v4289_v62  ;;  %4639 = vmatpush2.msra.mxu0 %v4160_v0  ;;  %v4504_v62 = vld [vmem:[#allocation9 + $0xde0] sm:$0xff] }
 0x2d1   :  { %4710 = vmatpush2.msra.mxu1 %v4288_v2  ;;  %4640 = vmatprep.subr.mxu0 %v4157_v16  ;;  %v4372_v0 = vld [vmem:[#allocation9 + $0x9c0] sm:$0xff]  ;;  %v4501_v2 = vld [vmem:[#allocation9 + $0xdc8] sm:$0xff] }
 0x2d2   :  { %4711 = vmatprep.subr.mxu1 %v4285_v6  ;;  %4641 = vmatpush2.msra.mxu0 %v4156_v30  ;;  %v4035_v30 = vrot.slane %v6848_v20, %v4034_v51  ;;  %v4336_v51 = vld [vmem:[#allocation9 + $0x8a0] sm:$0xff] }
 0x2d3   :  { %4712 = vmatpush2.msra.mxu1 %v4284_v8  ;;  %4642 = vmatprep.subr.mxu0 %v4153_v9  ;;  %v4369_v8 = vld [vmem:[#allocation9 + $0x9a8] sm:$0xff]  ;;  %v4368_v9 = vld [vmem:[#allocation9 + $0x9a0] sm:$0xff] }
 0x2d4   :  { %4713 = vmatprep.subr.mxu1 %v4281_v10  ;;  %4643 = vmatpush2.msra.mxu0 %v4152_v33  ;;  %v4497_v10 = vld [vmem:[#allocation9 + $0xda8] sm:$0xff] }
 0x2d5   :  { %4714 = vmatpush2.msra.mxu1 %v4280_v41  ;;  %4644 = vmatprep.subr.mxu0 %v4149_v1  ;;  %v4365_v1 = vld [vmem:[#allocation9 + $0x988] sm:$0xff] }
 0x2d6   :  { %4715 = vmatprep.subr.mxu1 %v4277_v11  ;;  %4645 = vmatpush2.msra.mxu0 %v4148_v13  ;;  %v4496_v11 = vld [vmem:[#allocation9 + $0xda0] sm:$0xff] }
 0x2d7   :  { %4716 = vmatpush2.msra.mxu1 %v4276_v14  ;;  %4646 = vmatprep.subr.mxu0 %v4145_v17  ;;  %v4364_v14 = vld [vmem:[#allocation9 + $0x980] sm:$0xff] }
 0x2d8   :  { %4717 = vmatprep.subr.mxu1 %v4273_v25  ;;  %4647 = vmatpush2.msra.mxu0 %v4144_v18  ;;  %v4361_v25 = vld [vmem:[#allocation9 + $0x968] sm:$0xff] }
 0x2d9   :  { %4718 = vmatpush2.msra.mxu1 %v4272_v7  ;;  %4648 = vmatprep.subr.mxu0 %v4141_v29  ;;  %v4493_v18 = vld [vmem:[#allocation9 + $0xd88] sm:$0xff]  ;;  %v4360_v7 = vld [vmem:[#allocation9 + $0x960] sm:$0xff] }
 0x2da   :  { %4719 = vmatprep.subr.mxu1 %v4269_v23  ;;  %4649 = vmatpush2.msra.mxu0 %v4140_v24  ;;  %v4492_v29 = vld [vmem:[#allocation9 + $0xd80] sm:$0xff]  ;;  %v4357_v23 = vld [vmem:[#allocation9 + $0x948] sm:$0xff] }
 0x2db   :  { %4720 = vmatpush2.msra.mxu1 %v4268_v39  ;;  %4650 = vmatprep.subr.mxu0 %v4137_v53  ;;  %v4489_v24 = vld [vmem:[#allocation9 + $0xd68] sm:$0xff]  ;;  %v4356_v39 = vld [vmem:[#allocation9 + $0x940] sm:$0xff] }
 0x2dc   :  { %4721 = vmatprep.subr.mxu1 %v4265_v28  ;;  %4651 = vmatpush2.msra.mxu0 %v4136_v54  ;;  %v4488_v53 = vld [vmem:[#allocation9 + $0xd60] sm:$0xff]  ;;  %v4353_v28 = vld [vmem:[#allocation9 + $0x928] sm:$0xff] }
 0x2dd   :  { %4722 = vmatpush2.msra.mxu1 %v4264_v32  ;;  %4652 = vmatprep.subr.mxu0 %v4133_v34  ;;  %v4485_v54 = vld [vmem:[#allocation9 + $0xd48] sm:$0xff]  ;;  %v4352_v32 = vld [vmem:[#allocation9 + $0x920] sm:$0xff] }
 0x2de   :  { %4723 = vmatprep.subr.mxu1 %v4261_v35  ;;  %4653 = vmatpush2.msra.mxu0 %v4132_v37  ;;  %v4484_v34 = vld [vmem:[#allocation9 + $0xd40] sm:$0xff]  ;;  %v4349_v35 = vld [vmem:[#allocation9 + $0x908] sm:$0xff] }
 0x2df   :  { %4724 = vmatpush2.msra.mxu1 %v4260_v38  ;;  %4654 = vmatprep.subr.mxu0 %v4129_v40  ;;  %v4481_v37 = vld [vmem:[#allocation9 + $0xd28] sm:$0xff]  ;;  %v4348_v38 = vld [vmem:[#allocation9 + $0x900] sm:$0xff] }
 0x2e0   :  { %4725 = vmatprep.subr.mxu1 %v4257_v43  ;;  %4655 = vmatpush2.msra.mxu0 %v4128_v44  ;;  %v4480_v40 = vld [vmem:[#allocation9 + $0xd20] sm:$0xff]  ;;  %v4477_v43 = vld [vmem:[#allocation9 + $0xd08] sm:$0xff] }
 0x2e1   :  { %4726 = vmatpush2.msra.mxu1 %v4256_v19  ;;  %4656 = vmatprep.subr.mxu0 %v4125_v46  ;;  %v4344_v44 = vld [vmem:[#allocation9 + $0x8e0] sm:$0xff]  ;;  %v4341_v19 = vld [vmem:[#allocation9 + $0x8c8] sm:$0xff] }
 0x2e2   :  { %4727 = vmatprep.subr.mxu1 %v4253_v47  ;;  %4657 = vmatpush2.msra.mxu0 %v4124_v22  ;;  %v6887_v55 = vpop.f32.mrf.mxu0  ;;  %v4473_v46 = vld [vmem:[#allocation9 + $0xce8] sm:$0xff]  ;;  %v4340_v47 = vld [vmem:[#allocation9 + $0x8c0] sm:$0xff] }
 0x2e3   :  { %4728 = vmatpush2.msra.mxu1 %v4252_v48  ;;  %4659 = vmatmul.mubr.f32.vlgmr.msra.gmra.mxu0 %v6881_v49  ;;  %v4472_v22 = vld [vmem:[#allocation9 + $0xce0] sm:$0xff]  ;;  %v4337_v48 = vld [vmem:[#allocation9 + $0x8a8] sm:$0xff] }
 0x2e4   :  { %v6891_v63 = vpop.f32.mrf.mxu1  ;;  %4730 = vmatmul.mubr.f32.vlgmr.msra.gmra.mxu1 %v6885_v52  ;;  %4736 = vmatprep.subr.mxu0 %v4377_v58  ;;  %v3773_v4 = vpop.f32.mrf.mxu0  ;;  %v4469_v58 = vld [vmem:[#allocation9 + $0xcc8] sm:$0xff] }
 0x2e5   :  { %4737 = vmatpush1.msra.mxu0 %v4376_v59  ;;  %v3774_v16 = vadd.f32 %v3773_v4, %v3733_v57  ;;  %4807 = vmatprep.subr.mxu1 %v4505_v56  ;;  %v4468_v59 = vld [vmem:[#allocation9 + $0xcc0] sm:$0xff]  ;;  %v4333_v56 = vld [vmem:[#allocation9 + $0x888] sm:$0xff] }
 0x2e6   :  { %v3814_v6 = vpop.f32.mrf.mxu1  ;;  %4738 = vmatprep.subr.mxu0 %v4373_v60  ;;  %v3775_v36 = vpop.f32.mrf.mxu0  ;;  %4808 = vmatpush1.msra.mxu1 %v4504_v62  ;;  %v4465_v57 = vld [vmem:[#allocation9 + $0xca8] sm:$0xff]  ;;  %v4332_v60 = vld [vmem:[#allocation9 + $0x880] sm:$0xff] }
 0x2e7   :  { %v3815_v33 = vadd.f32 %v3814_v6, %v3774_v16  ;;  %4739 = vmatpush1.msra.mxu0 %v4372_v0  ;;  %4809 = vmatprep.subr.mxu1 %v4501_v2  ;;  %v4464_v62 = vld [vmem:[#allocation9 + $0xca0] sm:$0xff]  ;;  %v4329_v4 = vld [vmem:[#allocation9 + $0x868] sm:$0xff] }
 0x2e8   :  { %v3816_v41 = vpop.f32.mrf.mxu1  ;;  %4740 = vmatprep.subr.mxu0 %v4369_v8  ;;  %v3776_v13 = vpop.f32.mrf.mxu0  ;;  %4810 = vmatpush1.msra.mxu1 %v4500_v21  ;;  %v4461_v0 = vld [vmem:[#allocation9 + $0xc88] sm:$0xff]  ;;  %v4328_v2 = vld [vmem:[#allocation9 + $0x860] sm:$0xff] }
 0x2e9   :  { %v6896_v17 = vadd.f32 %v4035_v30, %v3815_v33  ;;  %4741 = vmatpush1.msra.mxu0 %v4368_v9  ;;  %4811 = vmatprep.subr.mxu1 %v4497_v10  ;;  %v4460_v16 = vld [vmem:[#allocation9 + $0xc80] sm:$0xff]  ;;  %v4325_v6 = vld [vmem:[#allocation9 + $0x848] sm:$0xff] }
 0x2ea   :  { %v3817_v20 = vpop.f32.mrf.mxu1  ;;  %4742 = vmatprep.subr.mxu0 %v4365_v1  ;;  %4812 = vmatpush1.msra.mxu1 %v4496_v11  ;;  %v4457_v30 = vld [vmem:[#allocation9 + $0xc68] sm:$0xff]  ;;  %v4324_v8 = vld [vmem:[#allocation9 + $0x840] sm:$0xff] }
 0x2eb   :  { %4743 = vmatpush1.msra.mxu0 %v4364_v14  ;;  %4800 = vmatprep.mubr.f32.mxu0 %v6896_v17  ;;  %v4456_v21 = vld [vmem:[#allocation9 + $0xc60] sm:$0xff]  ;;  %v4321_v36 = vld [vmem:[#allocation9 + $0x828] sm:$0xff] }
 0x2ec   :  { %4744 = vmatprep.subr.mxu0 %v4361_v25  ;;  %4813 = vmatprep.subr.mxu1 %v4493_v18  ;;  %v4453_v9 = vld [vmem:[#allocation9 + $0xc48] sm:$0xff]  ;;  %v4320_v10 = vld [vmem:[#allocation9 + $0x820] sm:$0xff] }
 0x2ed   :  { %4745 = vmatpush1.msra.mxu0 %v4360_v7  ;;  %4814 = vmatpush1.msra.mxu1 %v4492_v29  ;;  %v4452_v33 = vld [vmem:[#allocation9 + $0xc40] sm:$0xff]  ;;  %v4317_v41 = vld [vmem:[#allocation9 + $0x808] sm:$0xff] }
 0x2ee   :  { %4746 = vmatprep.subr.mxu0 %v4357_v23  ;;  %4815 = vmatprep.subr.mxu1 %v4489_v24  ;;  %v4449_v1 = vld [vmem:[#allocation9 + $0xc28] sm:$0xff]  ;;  %v4316_v11 = vld [vmem:[#allocation9 + $0x800] sm:$0xff] }
 0x2ef   :  { %4747 = vmatpush1.msra.mxu0 %v4356_v39  ;;  %4816 = vmatpush1.msra.mxu1 %v4488_v53  ;;  %v4448_v13 = vld [vmem:[#allocation9 + $0xc20] sm:$0xff]  ;;  %v4441_v14 = vld [vmem:[#allocation9 + $0xbe8] sm:$0xff] }
 0x2f0   :  { %4748 = vmatprep.subr.mxu0 %v4353_v28  ;;  %4817 = vmatprep.subr.mxu1 %v4485_v54  ;;  %v4445_v20 = vld [vmem:[#allocation9 + $0xc08] sm:$0xff]  ;;  %v4440_v25 = vld [vmem:[#allocation9 + $0xbe0] sm:$0xff] }
 0x2f1   :  { %4749 = vmatpush1.msra.mxu0 %v4352_v32  ;;  %4818 = vmatpush1.msra.mxu1 %v4484_v34  ;;  %v4444_v18 = vld [vmem:[#allocation9 + $0xc00] sm:$0xff]  ;;  %v4437_v7 = vld [vmem:[#allocation9 + $0xbc8] sm:$0xff] }
 0x2f2   :  { %4750 = vmatprep.subr.mxu0 %v4349_v35  ;;  %4819 = vmatprep.subr.mxu1 %v4481_v37  ;;  %v4569_v29 = vld [vmem:[#allocation9 + $0xfe8] sm:$0xff]  ;;  %v4436_v23 = vld [vmem:[#allocation9 + $0xbc0] sm:$0xff] }
 0x2f3   :  { %4751 = vmatpush1.msra.mxu0 %v4348_v38  ;;  %4820 = vmatpush1.msra.mxu1 %v4480_v40  ;;  %v4568_v24 = vld [vmem:[#allocation9 + $0xfe0] sm:$0xff]  ;;  %v4433_v39 = vld [vmem:[#allocation9 + $0xba8] sm:$0xff] }
 0x2f4   :  { %4752 = vmatprep.subr.mxu0 %v4345_v42  ;;  %4821 = vmatprep.subr.mxu1 %v4477_v43  ;;  %v4565_v53 = vld [vmem:[#allocation9 + $0xfc8] sm:$0xff]  ;;  %v4432_v28 = vld [vmem:[#allocation9 + $0xba0] sm:$0xff] }
 0x2f5   :  { %4753 = vmatpush1.msra.mxu0 %v4344_v44  ;;  %4822 = vmatpush1.msra.mxu1 %v4476_v45  ;;  %v4564_v54 = vld [vmem:[#allocation9 + $0xfc0] sm:$0xff]  ;;  %v4429_v32 = vld [vmem:[#allocation9 + $0xb88] sm:$0xff] }
 0x2f6   :  { %4754 = vmatprep.subr.mxu0 %v4341_v19  ;;  %4823 = vmatprep.subr.mxu1 %v4473_v46  ;;  %v4561_v34 = vld [vmem:[#allocation9 + $0xfa8] sm:$0xff]  ;;  %v4428_v35 = vld [vmem:[#allocation9 + $0xb80] sm:$0xff] }
 0x2f7   :  { %4755 = vmatpush1.msra.mxu0 %v4340_v47  ;;  %4824 = vmatpush1.msra.mxu1 %v4472_v22  ;;  %v4560_v37 = vld [vmem:[#allocation9 + $0xfa0] sm:$0xff]  ;;  %v4425_v38 = vld [vmem:[#allocation9 + $0xb68] sm:$0xff] }
 0x2f8   :  { %4756 = vmatprep.subr.mxu0 %v4337_v48  ;;  %4825 = vmatprep.subr.mxu1 %v4469_v58  ;;  %v4557_v40 = vld [vmem:[#allocation9 + $0xf88] sm:$0xff]  ;;  %v4424_v42 = vld [vmem:[#allocation9 + $0xb60] sm:$0xff] }
 0x2f9   :  { %4757 = vmatpush1.msra.mxu0 %v4336_v51  ;;  %4826 = vmatpush1.msra.mxu1 %v4468_v59  ;;  %v4556_v43 = vld [vmem:[#allocation9 + $0xf80] sm:$0xff]  ;;  %v4421_v44 = vld [vmem:[#allocation9 + $0xb48] sm:$0xff] }
 0x2fa   :  { %4758 = vmatprep.subr.mxu0 %v4333_v56  ;;  %4827 = vmatprep.subr.mxu1 %v4465_v57  ;;  %v4553_v45 = vld [vmem:[#allocation9 + $0xf68] sm:$0xff]  ;;  %v4420_v19 = vld [vmem:[#allocation9 + $0xb40] sm:$0xff] }
 0x2fb   :  { %4759 = vmatpush1.msra.mxu0 %v4332_v60  ;;  %4828 = vmatpush1.msra.mxu1 %v4464_v62  ;;  %v4552_v46 = vld [vmem:[#allocation9 + $0xf60] sm:$0xff]  ;;  %v4417_v47 = vld [vmem:[#allocation9 + $0xb28] sm:$0xff] }
 0x2fc   :  { %4760 = vmatprep.subr.mxu0 %v4329_v4  ;;  %4829 = vmatprep.subr.mxu1 %v4461_v0  ;;  %v4549_v22 = vld [vmem:[#allocation9 + $0xf48] sm:$0xff]  ;;  %v4416_v48 = vld [vmem:[#allocation9 + $0xb20] sm:$0xff] }
 0x2fd   :  { %4761 = vmatpush1.msra.mxu0 %v4328_v2  ;;  %4830 = vmatpush1.msra.mxu1 %v4460_v16  ;;  %v4548_v58 = vld [vmem:[#allocation9 + $0xf40] sm:$0xff]  ;;  %v4413_v51 = vld [vmem:[#allocation9 + $0xb08] sm:$0xff] }
 0x2fe   :  { %4762 = vmatprep.subr.mxu0 %v4325_v6  ;;  %4831 = vmatprep.subr.mxu1 %v4457_v30  ;;  %v4545_v59 = vld [vmem:[#allocation9 + $0xf28] sm:$0xff]  ;;  %v4412_v56 = vld [vmem:[#allocation9 + $0xb00] sm:$0xff] }
 0x2ff   :  { %4763 = vmatpush1.msra.mxu0 %v4324_v8  ;;  %4832 = vmatpush1.msra.mxu1 %v4456_v21  ;;  %v4544_v57 = vld [vmem:[#allocation9 + $0xf20] sm:$0xff]  ;;  %v4409_v60 = vld [vmem:[#allocation9 + $0xae8] sm:$0xff] }
 0x300   :  { %4764 = vmatprep.subr.mxu0 %v4321_v36  ;;  %4833 = vmatprep.subr.mxu1 %v4453_v9  ;;  %v4541_v62 = vld [vmem:[#allocation9 + $0xf08] sm:$0xff]  ;;  %v4408_v4 = vld [vmem:[#allocation9 + $0xae0] sm:$0xff] }
 0x301   :  { %4765 = vmatpush1.msra.mxu0 %v4320_v10  ;;  %4834 = vmatpush1.msra.mxu1 %v4452_v33  ;;  %v4540_v0 = vld [vmem:[#allocation9 + $0xf00] sm:$0xff]  ;;  %v4405_v2 = vld [vmem:[#allocation9 + $0xac8] sm:$0xff] }
 0x302   :  { %4766 = vmatprep.subr.mxu0 %v4317_v41  ;;  %4835 = vmatprep.subr.mxu1 %v4449_v1  ;;  %v4537_v16 = vld [vmem:[#allocation9 + $0xee8] sm:$0xff]  ;;  %v4404_v6 = vld [vmem:[#allocation9 + $0xac0] sm:$0xff] }
 0x303   :  { %4767 = vmatpush1.msra.mxu0 %v4316_v11  ;;  %4836 = vmatpush1.msra.mxu1 %v4448_v13  ;;  %v4536_v30 = vld [vmem:[#allocation9 + $0xee0] sm:$0xff]  ;;  %v4401_v8 = vld [vmem:[#allocation9 + $0xaa8] sm:$0xff] }
 0x304   :  { %4768 = vmatprep.subr.mxu0 %v4441_v14  ;;  %4837 = vmatprep.subr.mxu1 %v4445_v20  ;;  %v4533_v21 = vld [vmem:[#allocation9 + $0xec8] sm:$0xff]  ;;  %v4400_v36 = vld [vmem:[#allocation9 + $0xaa0] sm:$0xff]  ;;  %v3772_v14 = vadd.f32 %v6887_v55, %v6862_v27  ;;  %v4030_v20 = vsub.s32 4, %v6838_v61  ;;  %v6903_v55 = vld [vmem:[#allocation8] sm:$0xff] }
 0x305   :  { %4769 = vmatpush2.msra.mxu0 %v4440_v25  ;;  %4838 = vmatpush1.msra.mxu1 %v4444_v18  ;;  %v4532_v9 = vld [vmem:[#allocation9 + $0xec0] sm:$0xff]  ;;  %v4397_v10 = vld [vmem:[#allocation9 + $0xa88] sm:$0xff] }
 0x306   :  { %4770 = vmatprep.subr.mxu0 %v4437_v7  ;;  %4839 = vmatprep.subr.mxu1 %v4569_v29  ;;  %v4529_v33 = vld [vmem:[#allocation9 + $0xea8] sm:$0xff]  ;;  %v4396_v41 = vld [vmem:[#allocation9 + $0xa80] sm:$0xff]  ;;  %v3813_v27 = vadd.f32 %v6891_v63, %v3772_v14  ;;  %v4079_v14 = vld [vmem:[#allocation9 + $0x98] sm:$0xff] }
 0x307   :  { %4771 = vmatpush2.msra.mxu0 %v4436_v23  ;;  %4840 = vmatpush2.msra.mxu1 %v4568_v24  ;;  %v4528_v1 = vld [vmem:[#allocation9 + $0xea0] sm:$0xff]  ;;  %v4393_v11 = vld [vmem:[#allocation9 + $0xa68] sm:$0xff] }
 0x308   :  { %4772 = vmatprep.subr.mxu0 %v4433_v39  ;;  %4841 = vmatprep.subr.mxu1 %v4565_v53  ;;  %v4525_v13 = vld [vmem:[#allocation9 + $0xe88] sm:$0xff]  ;;  %v4392_v25 = vld [vmem:[#allocation9 + $0xa60] sm:$0xff] }
 0x309   :  { %4773 = vmatpush2.msra.mxu0 %v4432_v28  ;;  %4842 = vmatpush2.msra.mxu1 %v4564_v54  ;;  %v4524_v18 = vld [vmem:[#allocation9 + $0xe80] sm:$0xff]  ;;  %v4389_v7 = vld [vmem:[#allocation9 + $0xa48] sm:$0xff]  ;;  %v4031_v28 = vrot.slane %v6903_v55, %v4030_v20  ;;  %v4078_v20 = vld [vmem:[#allocation9 + $0x90] sm:$0xff] }
 0x30a   :  { %4774 = vmatprep.subr.mxu0 %v4429_v32  ;;  %4843 = vmatprep.subr.mxu1 %v4561_v34  ;;  %v4521_v29 = vld [vmem:[#allocation9 + $0xe68] sm:$0xff]  ;;  %v4388_v23 = vld [vmem:[#allocation9 + $0xa40] sm:$0xff] }
 0x30b   :  { %4775 = vmatpush2.msra.mxu0 %v4428_v35  ;;  %4844 = vmatpush2.msra.mxu1 %v4560_v37  ;;  %v4520_v24 = vld [vmem:[#allocation9 + $0xe60] sm:$0xff]  ;;  %v4385_v39 = vld [vmem:[#allocation9 + $0xa28] sm:$0xff]  ;;  %v6906_v63 = vadd.f32 %v4031_v28, %v3813_v27  ;;  %v4187_v27 = vld [vmem:[#allocation9 + $0x3f8] sm:$0xff] }
 0x30c   :  { %4776 = vmatprep.subr.mxu0 %v4425_v38  ;;  %4845 = vmatprep.subr.mxu1 %v4557_v40  ;;  %v4517_v53 = vld [vmem:[#allocation9 + $0xe48] sm:$0xff]  ;;  %v4384_v54 = vld [vmem:[#allocation9 + $0xa20] sm:$0xff]  ;;  %v4123_v40 = vld [vmem:[#allocation9 + $0x1f8] sm:$0xff] }
 0x30d   :  { %4777 = vmatpush2.msra.mxu0 %v4424_v42  ;;  %4846 = vmatpush2.msra.mxu1 %v4556_v43  ;;  %v4516_v32 = vld [vmem:[#allocation9 + $0xe40] sm:$0xff]  ;;  %v4381_v34 = vld [vmem:[#allocation9 + $0xa08] sm:$0xff]  ;;  %v4122_v43 = vld [vmem:[#allocation9 + $0x1f0] sm:$0xff] }
 0x30e   :  { %4778 = vmatprep.subr.mxu0 %v4421_v44  ;;  %4847 = vmatprep.subr.mxu1 %v4553_v45  ;;  %v4513_v35 = vld [vmem:[#allocation9 + $0xe28] sm:$0xff]  ;;  %v4380_v37 = vld [vmem:[#allocation9 + $0xa00] sm:$0xff]  ;;  %v4119_v45 = vld [vmem:[#allocation9 + $0x1d8] sm:$0xff] }
 0x30f   :  { %4779 = vmatpush2.msra.mxu0 %v4420_v19  ;;  %4848 = vmatpush2.msra.mxu1 %v4552_v46  ;;  %v4512_v38 = vld [vmem:[#allocation9 + $0xe20] sm:$0xff]  ;;  %v4509_v19 = vld [vmem:[#allocation9 + $0xe08] sm:$0xff]  ;;  %v4186_v28 = vld [vmem:[#allocation9 + $0x3f0] sm:$0xff] }
 0x310   :  { %4780 = vmatprep.subr.mxu0 %v4417_v47  ;;  %4849 = vmatprep.subr.mxu1 %v4549_v22  ;;  %v4118_v22 = vld [vmem:[#allocation9 + $0x1d0] sm:$0xff] }
 0x311   :  { %4781 = vmatpush2.msra.mxu0 %v4416_v48  ;;  %4850 = vmatpush2.msra.mxu1 %v4548_v58  ;;  %v4508_v48 = vld [vmem:[#allocation9 + $0xe00] sm:$0xff] }
 0x312   :  { %4782 = vmatprep.subr.mxu0 %v4413_v51  ;;  %4851 = vmatprep.subr.mxu1 %v4545_v59  ;;  %v4115_v51 = vld [vmem:[#allocation9 + $0x1b8] sm:$0xff] }
 0x313   :  { %4783 = vmatpush2.msra.mxu0 %v4412_v56  ;;  %4852 = vmatpush2.msra.mxu1 %v4544_v57  ;;  %v4251_v59 = vld [vmem:[#allocation9 + $0x5f8] sm:$0xff]  ;;  %v4114_v57 = vld [vmem:[#allocation9 + $0x1b0] sm:$0xff] }
 0x314   :  { %4784 = vmatprep.subr.mxu0 %v4409_v60  ;;  %4853 = vmatprep.subr.mxu1 %v4541_v62  ;;  %v4111_v62 = vld [vmem:[#allocation9 + $0x198] sm:$0xff] }
 0x315   :  { %4785 = vmatpush2.msra.mxu0 %v4408_v4  ;;  %4854 = vmatpush2.msra.mxu1 %v4540_v0  ;;  %v4110_v0 = vld [vmem:[#allocation9 + $0x190] sm:$0xff] }
 0x316   :  { %4786 = vmatprep.subr.mxu0 %v4405_v2  ;;  %4855 = vmatprep.subr.mxu1 %v4537_v16  ;;  %v4107_v16 = vld [vmem:[#allocation9 + $0x178] sm:$0xff] }
 0x317   :  { %4787 = vmatpush2.msra.mxu0 %v4404_v6  ;;  %4856 = vmatpush2.msra.mxu1 %v4536_v30  ;;  %v4103_v6 = vld [vmem:[#allocation9 + $0x158] sm:$0xff]  ;;  %v4102_v30 = vld [vmem:[#allocation9 + $0x150] sm:$0xff] }
 0x318   :  { %4788 = vmatprep.subr.mxu0 %v4401_v8  ;;  %4857 = vmatprep.subr.mxu1 %v4533_v21  ;;  %v4099_v8 = vld [vmem:[#allocation9 + $0x138] sm:$0xff]  ;;  %v4098_v21 = vld [vmem:[#allocation9 + $0x130] sm:$0xff] }
 0x319   :  { %4789 = vmatpush2.msra.mxu0 %v4400_v36  ;;  %4858 = vmatpush2.msra.mxu1 %v4532_v9  ;;  %v4095_v36 = vld [vmem:[#allocation9 + $0x118] sm:$0xff]  ;;  %v4094_v9 = vld [vmem:[#allocation9 + $0x110] sm:$0xff] }
 0x31a   :  { %4790 = vmatprep.subr.mxu0 %v4397_v10  ;;  %4859 = vmatprep.subr.mxu1 %v4529_v33  ;;  %v4091_v10 = vld [vmem:[#allocation9 + $0xf8] sm:$0xff]  ;;  %v4090_v33 = vld [vmem:[#allocation9 + $0xf0] sm:$0xff] }
 0x31b   :  { %4791 = vmatpush2.msra.mxu0 %v4396_v41  ;;  %4860 = vmatpush2.msra.mxu1 %v4528_v1  ;;  %v4087_v41 = vld [vmem:[#allocation9 + $0xd8] sm:$0xff]  ;;  %v4086_v1 = vld [vmem:[#allocation9 + $0xd0] sm:$0xff] }
 0x31c   :  { %4792 = vmatprep.subr.mxu0 %v4393_v11  ;;  %4861 = vmatprep.subr.mxu1 %v4525_v13  ;;  %v4083_v11 = vld [vmem:[#allocation9 + $0xb8] sm:$0xff]  ;;  %v4082_v13 = vld [vmem:[#allocation9 + $0xb0] sm:$0xff] }
 0x31d   :  { %4793 = vmatpush2.msra.mxu0 %v4392_v25  ;;  %4862 = vmatpush2.msra.mxu1 %v4524_v18  ;;  %v4075_v25 = vld [vmem:[#allocation9 + $0x78] sm:$0xff]  ;;  %v4074_v18 = vld [vmem:[#allocation9 + $0x70] sm:$0xff] }
 0x31e   :  { %4794 = vmatprep.subr.mxu0 %v4389_v7  ;;  %4863 = vmatprep.subr.mxu1 %v4521_v29  ;;  %v4071_v7 = vld [vmem:[#allocation9 + $0x58] sm:$0xff]  ;;  %v4070_v29 = vld [vmem:[#allocation9 + $0x50] sm:$0xff] }
 0x31f   :  { %4795 = vmatpush2.msra.mxu0 %v4388_v23  ;;  %4864 = vmatpush2.msra.mxu1 %v4520_v24  ;;  %v4067_v23 = vld [vmem:[#allocation9 + $0x38] sm:$0xff]  ;;  %v4066_v24 = vld [vmem:[#allocation9 + $0x30] sm:$0xff] }
 0x320   :  { %4796 = vmatprep.subr.mxu0 %v4385_v39  ;;  %4865 = vmatprep.subr.mxu1 %v4517_v53  ;;  %v4063_v39 = vld [vmem:[#allocation9 + $0x18] sm:$0xff]  ;;  %v4062_v53 = vld [vmem:[#allocation9 + $0x10] sm:$0xff] }
 0x321   :  { %4797 = vmatpush2.msra.mxu0 %v4384_v54  ;;  %4866 = vmatpush2.msra.mxu1 %v4516_v32  ;;  %v4183_v54 = vld [vmem:[#allocation9 + $0x3d8] sm:$0xff]  ;;  %v4182_v32 = vld [vmem:[#allocation9 + $0x3d0] sm:$0xff] }
 0x322   :  { %4798 = vmatprep.subr.mxu0 %v4381_v34  ;;  %v3853_v42 = vpop.f32.mrf.mxu0  ;;  %4867 = vmatprep.subr.mxu1 %v4513_v35  ;;  %v4179_v34 = vld [vmem:[#allocation9 + $0x3b8] sm:$0xff]  ;;  %v4178_v35 = vld [vmem:[#allocation9 + $0x3b0] sm:$0xff] }
 0x323   :  { %4799 = vmatpush2.msra.mxu0 %v4380_v37  ;;  %4868 = vmatpush2.msra.mxu1 %v4512_v38  ;;  %v4175_v37 = vld [vmem:[#allocation9 + $0x398] sm:$0xff]  ;;  %v4174_v38 = vld [vmem:[#allocation9 + $0x390] sm:$0xff] }
 0x324   :  { %v3894_v44 = vpop.f32.mrf.mxu1  ;;  %4801 = vmatmul.mubr.f32.vlgmr.msra.gmra.mxu0 %v6906_v63  ;;  %4878 = vmatprep.subr.mxu0 %v4123_v40  ;;  %v6911_v47 = vpop.f32.mrf.mxu0  ;;  %v4171_v40 = vld [vmem:[#allocation9 + $0x378] sm:$0xff] }
 0x325   :  { %v6908_v46 = vadd.f32 %v3894_v44, %v3853_v42  ;;  %4879 = vmatpush1.msra.mxu0 %v4122_v43  ;;  %4942 = vmatprep.mubr.f32.mxu0 %v6856_v12  ;;  %v4106_v12 = vld [vmem:[#allocation9 + $0x170] sm:$0xff]  ;;  %v4167_v43 = vld [vmem:[#allocation9 + $0x358] sm:$0xff] }
 0x326   :  { %v6914_v58 = vpop.f32.mrf.mxu1  ;;  %4880 = vmatprep.subr.mxu0 %v4119_v45  ;;  %v3857_v56 = vpop.f32.mrf.mxu0  ;;  %4869 = vmatprep.subr.mxu1 %v4509_v19  ;;  %v4170_v42 = vld [vmem:[#allocation9 + $0x370] sm:$0xff]  ;;  %v4163_v45 = vld [vmem:[#allocation9 + $0x338] sm:$0xff] }
 0x327   :  { %4881 = vmatpush1.msra.mxu0 %v4118_v22  ;;  %4870 = vmatpush2.msra.mxu1 %v4508_v48  ;;  %v4166_v44 = vld [vmem:[#allocation9 + $0x350] sm:$0xff]  ;;  %v4159_v22 = vld [vmem:[#allocation9 + $0x318] sm:$0xff] }
 0x328   :  { %v3898_v60 = vpop.f32.mrf.mxu1  ;;  %4882 = vmatprep.subr.mxu0 %v4115_v51  ;;  %v3858_v4 = vpop.f32.mrf.mxu0  ;;  %4949 = vmatprep.subr.mxu1 %v4251_v59  ;;  %v4162_v19 = vld [vmem:[#allocation9 + $0x330] sm:$0xff]  ;;  %v4155_v51 = vld [vmem:[#allocation9 + $0x2f8] sm:$0xff] }
 0x329   :  { %4883 = vmatpush1.msra.mxu0 %v4114_v57  ;;  %v4158_v48 = vld [vmem:[#allocation9 + $0x310] sm:$0xff]  ;;  %v4151_v56 = vld [vmem:[#allocation9 + $0x2d8] sm:$0xff] }
 0x32a   :  { %v3899_v2 = vpop.f32.mrf.mxu1  ;;  %4884 = vmatprep.subr.mxu0 %v4111_v62  ;;  %v4154_v59 = vld [vmem:[#allocation9 + $0x2f0] sm:$0xff]  ;;  %v4147_v60 = vld [vmem:[#allocation9 + $0x2b8] sm:$0xff] }
 0x32b   :  { %4885 = vmatpush1.msra.mxu0 %v4110_v0  ;;  %v4150_v57 = vld [vmem:[#allocation9 + $0x2d0] sm:$0xff]  ;;  %v4143_v4 = vld [vmem:[#allocation9 + $0x298] sm:$0xff] }
 0x32c   :  { %4886 = vmatprep.subr.mxu0 %v4107_v16  ;;  %v4146_v62 = vld [vmem:[#allocation9 + $0x2b0] sm:$0xff]  ;;  %v4139_v2 = vld [vmem:[#allocation9 + $0x278] sm:$0xff] }
 0x32d   :  { %4887 = vmatpush1.msra.mxu0 %v4106_v12  ;;  %v4142_v0 = vld [vmem:[#allocation9 + $0x290] sm:$0xff]  ;;  %v4135_v12 = vld [vmem:[#allocation9 + $0x258] sm:$0xff] }
 0x32e   :  { %4888 = vmatprep.subr.mxu0 %v4103_v6  ;;  %v4138_v16 = vld [vmem:[#allocation9 + $0x270] sm:$0xff] }
 0x32f   :  { %4889 = vmatpush1.msra.mxu0 %v4102_v30  ;;  %v4134_v6 = vld [vmem:[#allocation9 + $0x250] sm:$0xff]  ;;  %v4131_v30 = vld [vmem:[#allocation9 + $0x238] sm:$0xff] }
 0x330   :  { %4890 = vmatprep.subr.mxu0 %v4099_v8  ;;  %v4130_v8 = vld [vmem:[#allocation9 + $0x230] sm:$0xff] }
 0x331   :  { %4891 = vmatpush1.msra.mxu0 %v4098_v21  ;;  %v4127_v21 = vld [vmem:[#allocation9 + $0x218] sm:$0xff] }
 0x332   :  { %4892 = vmatprep.subr.mxu0 %v4095_v36  ;;  %v4126_v36 = vld [vmem:[#allocation9 + $0x210] sm:$0xff] }
 0x333   :  { %4893 = vmatpush1.msra.mxu0 %v4094_v9  ;;  %v4379_v9 = vld [vmem:[#allocation9 + $0x9f8] sm:$0xff] }
 0x334   :  { %4894 = vmatprep.subr.mxu0 %v4091_v10  ;;  %v4042_v10 = vsub.s32 7, %v6838_v61 }
 0x335   :  { %4895 = vmatpush1.msra.mxu0 %v4090_v33 }
 0x336   :  { %4896 = vmatprep.subr.mxu0 %v4087_v41  ;;  %v4038_v41 = vsub.s32 6, %v6838_v61  ;;  %v4043_v61 = vrot.slane %v6903_v55, %v4042_v10  ;;  %v4331_v10 = vld [vmem:[#allocation9 + $0x878] sm:$0xff] }
 0x337   :  { %4897 = vmatpush1.msra.mxu0 %v4086_v1  ;;  %v4378_v1 = vld [vmem:[#allocation9 + $0x9f0] sm:$0xff] }
 0x338   :  { %4898 = vmatprep.subr.mxu0 %v4083_v11  ;;  %v3897_v11 = vadd.f32 %v6914_v58, %v6911_v47  ;;  %v4039_v47 = vrot.slane %v6903_v55, %v4038_v41  ;;  %v4370_v58 = vld [vmem:[#allocation9 + $0x9b0] sm:$0xff] }
 0x339   :  { %4899 = vmatpush1.msra.mxu0 %v4082_v13  ;;  %v4250_v55 = vld [vmem:[#allocation9 + $0x5f0] sm:$0xff] }
 0x33a   :  { %4900 = vmatprep.subr.mxu0 %v4079_v14  ;;  %v4330_v41 = vld [vmem:[#allocation9 + $0x870] sm:$0xff] }
 0x33b   :  { %4901 = vmatpush1.msra.mxu0 %v4078_v20  ;;  %v4375_v20 = vld [vmem:[#allocation9 + $0x9d8] sm:$0xff] }
 0x33c   :  { %4902 = vmatprep.subr.mxu0 %v4075_v25 }
 0x33d   :  { %4903 = vmatpush1.msra.mxu0 %v4074_v18  ;;  %v4374_v18 = vld [vmem:[#allocation9 + $0x9d0] sm:$0xff] }
 0x33e   :  { %4904 = vmatprep.subr.mxu0 %v4071_v7 }
 0x33f   :  { %4905 = vmatpush1.msra.mxu0 %v4070_v29 }
 0x340   :  { %4906 = vmatprep.subr.mxu0 %v4067_v23  ;;  %v4371_v23 = vld [vmem:[#allocation9 + $0x9b8] sm:$0xff] }
 0x341   :  { %4907 = vmatpush1.msra.mxu0 %v4066_v24 }
 0x342   :  { %4908 = vmatprep.subr.mxu0 %v4063_v39 }
 0x343   :  { %4909 = vmatpush1.msra.mxu0 %v4062_v53  ;;  %v4367_v53 = vld [vmem:[#allocation9 + $0x998] sm:$0xff] }
 0x344   :  { %4910 = vmatprep.subr.mxu0 %v4187_v27 }
 0x345   :  { %4911 = vmatpush2.msra.mxu0 %v4186_v28  ;;  %v4366_v28 = vld [vmem:[#allocation9 + $0x990] sm:$0xff] }
 0x346   :  { %4912 = vmatprep.subr.mxu0 %v4183_v54 }
 0x347   :  { %4913 = vmatpush2.msra.mxu0 %v4182_v32  ;;  %v4363_v32 = vld [vmem:[#allocation9 + $0x978] sm:$0xff] }
 0x348   :  { %4914 = vmatprep.subr.mxu0 %v4179_v34 }
 0x349   :  { %4915 = vmatpush2.msra.mxu0 %v4178_v35  ;;  %v4362_v35 = vld [vmem:[#allocation9 + $0x970] sm:$0xff] }
 0x34a   :  { %4916 = vmatprep.subr.mxu0 %v4175_v37  ;;  %v4359_v37 = vld [vmem:[#allocation9 + $0x958] sm:$0xff] }
 0x34b   :  { %4917 = vmatpush2.msra.mxu0 %v4174_v38  ;;  %v4247_v38 = vld [vmem:[#allocation9 + $0x5d8] sm:$0xff] }
 0x34c   :  { %4918 = vmatprep.subr.mxu0 %v4171_v40  ;;  %v4358_v40 = vld [vmem:[#allocation9 + $0x950] sm:$0xff] }
 0x34d   :  { %4919 = vmatpush2.msra.mxu0 %v4170_v42  ;;  %v4246_v42 = vld [vmem:[#allocation9 + $0x5d0] sm:$0xff] }
 0x34e   :  { %4920 = vmatprep.subr.mxu0 %v4167_v43  ;;  %v4355_v43 = vld [vmem:[#allocation9 + $0x938] sm:$0xff] }
 0x34f   :  { %4921 = vmatpush2.msra.mxu0 %v4166_v44  ;;  %v4243_v44 = vld [vmem:[#allocation9 + $0x5b8] sm:$0xff] }
 0x350   :  { %4922 = vmatprep.subr.mxu0 %v4163_v45  ;;  %v4354_v45 = vld [vmem:[#allocation9 + $0x930] sm:$0xff] }
 0x351   :  { %4923 = vmatpush2.msra.mxu0 %v4162_v19  ;;  %v4242_v19 = vld [vmem:[#allocation9 + $0x5b0] sm:$0xff] }
 0x352   :  { %4924 = vmatprep.subr.mxu0 %v4159_v22  ;;  %v4351_v22 = vld [vmem:[#allocation9 + $0x918] sm:$0xff] }
 0x353   :  { %4925 = vmatpush2.msra.mxu0 %v4158_v48  ;;  %v4239_v48 = vld [vmem:[#allocation9 + $0x598] sm:$0xff] }
 0x354   :  { %4926 = vmatprep.subr.mxu0 %v4155_v51  ;;  %v4350_v51 = vld [vmem:[#allocation9 + $0x910] sm:$0xff] }
 0x355   :  { %4927 = vmatpush2.msra.mxu0 %v4154_v59  ;;  %v4238_v59 = vld [vmem:[#allocation9 + $0x590] sm:$0xff] }
 0x356   :  { %4928 = vmatprep.subr.mxu0 %v4151_v56  ;;  %v4347_v56 = vld [vmem:[#allocation9 + $0x8f8] sm:$0xff] }
 0x357   :  { %4929 = vmatpush2.msra.mxu0 %v4150_v57  ;;  %v4235_v57 = vld [vmem:[#allocation9 + $0x578] sm:$0xff] }
 0x358   :  { %4930 = vmatprep.subr.mxu0 %v4147_v60  ;;  %v4346_v60 = vld [vmem:[#allocation9 + $0x8f0] sm:$0xff] }
 0x359   :  { %4931 = vmatpush2.msra.mxu0 %v4146_v62  ;;  %v4234_v62 = vld [vmem:[#allocation9 + $0x570] sm:$0xff] }
 0x35a   :  { %4932 = vmatprep.subr.mxu0 %v4143_v4  ;;  %v4343_v4 = vld [vmem:[#allocation9 + $0x8d8] sm:$0xff] }
 0x35b   :  { %4933 = vmatpush2.msra.mxu0 %v4142_v0  ;;  %v4342_v0 = vld [vmem:[#allocation9 + $0x8d0] sm:$0xff] }
 0x35c   :  { %4934 = vmatprep.subr.mxu0 %v4139_v2  ;;  %v4230_v2 = vld [vmem:[#allocation9 + $0x550] sm:$0xff] }
 0x35d   :  { %4935 = vmatpush2.msra.mxu0 %v4138_v16  ;;  %v4339_v16 = vld [vmem:[#allocation9 + $0x8b8] sm:$0xff] }
 0x35e   :  { %4936 = vmatprep.subr.mxu0 %v4135_v12  ;;  %v4227_v12 = vld [vmem:[#allocation9 + $0x538] sm:$0xff] }
 0x35f   :  { %4937 = vmatpush2.msra.mxu0 %v4134_v6  ;;  %v4338_v6 = vld [vmem:[#allocation9 + $0x8b0] sm:$0xff] }
 0x360   :  { %4938 = vmatprep.subr.mxu0 %v4131_v30  ;;  %v4226_v30 = vld [vmem:[#allocation9 + $0x530] sm:$0xff] }
 0x361   :  { %4939 = vmatpush2.msra.mxu0 %v4130_v8  ;;  %v4335_v8 = vld [vmem:[#allocation9 + $0x898] sm:$0xff] }
 0x362   :  { %4940 = vmatprep.subr.mxu0 %v4127_v21  ;;  %v3935_v33 = vpop.f32.mrf.mxu0  ;;  %v4223_v21 = vld [vmem:[#allocation9 + $0x518] sm:$0xff] }
 0x363   :  { %4941 = vmatpush2.msra.mxu0 %v4126_v36  ;;  %v3936_v13 = vadd.f32 %v3935_v33, %v6908_v46  ;;  %v4334_v36 = vld [vmem:[#allocation9 + $0x890] sm:$0xff]  ;;  %v4219_v33 = vld [vmem:[#allocation9 + $0x4f8] sm:$0xff] }
 0x364   :  { %v3976_v14 = vpop.f32.mrf.mxu1  ;;  %4943 = vmatmul.mubr.f32.vlgmr.msra.gmra.mxu0 %v6881_v49  ;;  %5020 = vmatprep.subr.mxu0 %v4379_v9  ;;  %v3937_v25 = vpop.f32.mrf.mxu0  ;;  %v4222_v9 = vld [vmem:[#allocation9 + $0x510] sm:$0xff] }
 0x365   :  { %5021 = vmatpush1.msra.mxu0 %v4378_v1  ;;  %5084 = vmatprep.mubr.f32.mxu0 %v6896_v17  ;;  %v3938_v7 = vadd.f32 %v3937_v25, %v3897_v11  ;;  %v3977_v24 = vadd.f32 %v3976_v14, %v3936_v13  ;;  %v4218_v1 = vld [vmem:[#allocation9 + $0x4f0] sm:$0xff]  ;;  %v4327_v11 = vld [vmem:[#allocation9 + $0x858] sm:$0xff] }
 0x366   :  { %v3978_v29 = vpop.f32.mrf.mxu1  ;;  %5022 = vmatprep.subr.mxu0 %v4375_v20  ;;  %v3939_v46 = vpop.f32.mrf.mxu0  ;;  %v4215_v13 = vld [vmem:[#allocation9 + $0x4d8] sm:$0xff]  ;;  %v4326_v14 = vld [vmem:[#allocation9 + $0x850] sm:$0xff] }
 0x367   :  { %v3979_v39 = vadd.f32 %v3978_v29, %v3938_v7  ;;  %5023 = vmatpush1.msra.mxu0 %v4374_v18  ;;  %v6927_v34 = vadd.f32 %v4039_v47, %v3977_v24  ;;  %v4214_v20 = vld [vmem:[#allocation9 + $0x4d0] sm:$0xff]  ;;  %v4323_v25 = vld [vmem:[#allocation9 + $0x838] sm:$0xff] }
 0x368   :  { %v3980_v49 = vpop.f32.mrf.mxu1  ;;  %5024 = vmatprep.subr.mxu0 %v4371_v23  ;;  %v3940_v27 = vpop.f32.mrf.mxu0  ;;  %v4211_v18 = vld [vmem:[#allocation9 + $0x4b8] sm:$0xff]  ;;  %v4322_v7 = vld [vmem:[#allocation9 + $0x830] sm:$0xff] }
 0x369   :  { %v6925_v54 = vadd.f32 %v4043_v61, %v3979_v39  ;;  %5025 = vmatpush1.msra.mxu0 %v4370_v58  ;;  %v4210_v29 = vld [vmem:[#allocation9 + $0x4b0] sm:$0xff]  ;;  %v4319_v61 = vld [vmem:[#allocation9 + $0x818] sm:$0xff] }
 0x36a   :  { %v3981_v17 = vpop.f32.mrf.mxu1  ;;  %5026 = vmatprep.subr.mxu0 %v4367_v53  ;;  %v4207_v23 = vld [vmem:[#allocation9 + $0x498] sm:$0xff]  ;;  %v4318_v24 = vld [vmem:[#allocation9 + $0x810] sm:$0xff] }
 0x36b   :  { %5027 = vmatpush1.msra.mxu0 %v4366_v28  ;;  %4871 = vmatprep.mubr.f32.mxu1 %v6925_v54  ;;  %v4206_v47 = vld [vmem:[#allocation9 + $0x490] sm:$0xff]  ;;  %v4443_v46 = vld [vmem:[#allocation9 + $0xbf8] sm:$0xff] }
 0x36c   :  { %5028 = vmatprep.subr.mxu0 %v4363_v32  ;;  %4872 = vmatmul.mubr.f32.vlgmr.msra.gmra.mxu1 %v6927_v34  ;;  %v4203_v58 = vld [vmem:[#allocation9 + $0x478] sm:$0xff]  ;;  %v4442_v39 = vld [vmem:[#allocation9 + $0xbf0] sm:$0xff] }
 0x36d   :  { %5029 = vmatpush1.msra.mxu0 %v4362_v35  ;;  %4950 = vmatpush1.msra.mxu1 %v4250_v55  ;;  %v4202_v49 = vld [vmem:[#allocation9 + $0x470] sm:$0xff]  ;;  %v4439_v53 = vld [vmem:[#allocation9 + $0xbd8] sm:$0xff] }
 0x36e   :  { %5030 = vmatprep.subr.mxu0 %v4359_v37  ;;  %4951 = vmatprep.subr.mxu1 %v4247_v38  ;;  %v4199_v27 = vld [vmem:[#allocation9 + $0x458] sm:$0xff]  ;;  %v4438_v28 = vld [vmem:[#allocation9 + $0xbd0] sm:$0xff] }
 0x36f   :  { %5013 = vmatprep.mubr.f32.mxu1 %v6859_v15  ;;  %5031 = vmatpush1.msra.mxu0 %v4358_v40  ;;  %v4231_v15 = vld [vmem:[#allocation9 + $0x558] sm:$0xff]  ;;  %v4198_v17 = vld [vmem:[#allocation9 + $0x450] sm:$0xff] }
 0x370   :  { %4952 = vmatpush1.msra.mxu1 %v4246_v42  ;;  %5032 = vmatprep.subr.mxu0 %v4355_v43  ;;  %v4435_v32 = vld [vmem:[#allocation9 + $0xbb8] sm:$0xff]  ;;  %v4434_v55 = vld [vmem:[#allocation9 + $0xbb0] sm:$0xff] }
 0x371   :  { %4953 = vmatprep.subr.mxu1 %v4243_v44  ;;  %5033 = vmatpush1.msra.mxu0 %v4354_v45  ;;  %v4195_v35 = vld [vmem:[#allocation9 + $0x438] sm:$0xff]  ;;  %v4194_v37 = vld [vmem:[#allocation9 + $0x430] sm:$0xff] }
 0x372   :  { %4954 = vmatpush1.msra.mxu1 %v4242_v19  ;;  %5034 = vmatprep.subr.mxu0 %v4351_v22  ;;  %v4431_v38 = vld [vmem:[#allocation9 + $0xb98] sm:$0xff]  ;;  %v4430_v42 = vld [vmem:[#allocation9 + $0xb90] sm:$0xff] }
 0x373   :  { %4955 = vmatprep.subr.mxu1 %v4239_v48  ;;  %5035 = vmatpush1.msra.mxu0 %v4350_v51  ;;  %v4191_v40 = vld [vmem:[#allocation9 + $0x418] sm:$0xff]  ;;  %v4190_v43 = vld [vmem:[#allocation9 + $0x410] sm:$0xff] }
 0x374   :  { %4956 = vmatpush1.msra.mxu1 %v4238_v59  ;;  %5036 = vmatprep.subr.mxu0 %v4347_v56  ;;  %v4427_v44 = vld [vmem:[#allocation9 + $0xb78] sm:$0xff]  ;;  %v4426_v19 = vld [vmem:[#allocation9 + $0xb70] sm:$0xff] }
 0x375   :  { %4957 = vmatprep.subr.mxu1 %v4235_v57  ;;  %5037 = vmatpush1.msra.mxu0 %v4346_v60  ;;  %v4315_v45 = vld [vmem:[#allocation9 + $0x7f8] sm:$0xff]  ;;  %v4314_v22 = vld [vmem:[#allocation9 + $0x7f0] sm:$0xff] }
 0x376   :  { %4958 = vmatpush1.msra.mxu1 %v4234_v62  ;;  %5038 = vmatprep.subr.mxu0 %v4343_v4  ;;  %v4423_v48 = vld [vmem:[#allocation9 + $0xb58] sm:$0xff]  ;;  %v4422_v59 = vld [vmem:[#allocation9 + $0xb50] sm:$0xff] }
 0x377   :  { %4959 = vmatprep.subr.mxu1 %v4231_v15  ;;  %5039 = vmatpush1.msra.mxu0 %v4342_v0  ;;  %v4311_v51 = vld [vmem:[#allocation9 + $0x7d8] sm:$0xff]  ;;  %v4310_v56 = vld [vmem:[#allocation9 + $0x7d0] sm:$0xff] }
 0x378   :  { %4960 = vmatpush1.msra.mxu1 %v4230_v2  ;;  %5040 = vmatprep.subr.mxu0 %v4339_v16  ;;  %v4419_v57 = vld [vmem:[#allocation9 + $0xb38] sm:$0xff]  ;;  %v4418_v62 = vld [vmem:[#allocation9 + $0xb30] sm:$0xff] }
 0x379   :  { %4961 = vmatprep.subr.mxu1 %v4227_v12  ;;  %5041 = vmatpush1.msra.mxu0 %v4338_v6  ;;  %v4307_v60 = vld [vmem:[#allocation9 + $0x7b8] sm:$0xff]  ;;  %v4306_v4 = vld [vmem:[#allocation9 + $0x7b0] sm:$0xff] }
 0x37a   :  { %4962 = vmatpush1.msra.mxu1 %v4226_v30  ;;  %5042 = vmatprep.subr.mxu0 %v4335_v8  ;;  %v4415_v15 = vld [vmem:[#allocation9 + $0xb18] sm:$0xff]  ;;  %v4414_v2 = vld [vmem:[#allocation9 + $0xb10] sm:$0xff] }
 0x37b   :  { %4963 = vmatprep.subr.mxu1 %v4223_v21  ;;  %5043 = vmatpush1.msra.mxu0 %v4334_v36  ;;  %v4303_v0 = vld [vmem:[#allocation9 + $0x798] sm:$0xff]  ;;  %v4302_v16 = vld [vmem:[#allocation9 + $0x790] sm:$0xff] }
 0x37c   :  { %4964 = vmatpush1.msra.mxu1 %v4222_v9  ;;  %5044 = vmatprep.subr.mxu0 %v4331_v10  ;;  %v4411_v12 = vld [vmem:[#allocation9 + $0xaf8] sm:$0xff]  ;;  %v4410_v30 = vld [vmem:[#allocation9 + $0xaf0] sm:$0xff] }
 0x37d   :  { %4965 = vmatprep.subr.mxu1 %v4219_v33  ;;  %5045 = vmatpush1.msra.mxu0 %v4330_v41  ;;  %v4299_v6 = vld [vmem:[#allocation9 + $0x778] sm:$0xff]  ;;  %v4298_v8 = vld [vmem:[#allocation9 + $0x770] sm:$0xff] }
 0x37e   :  { %4966 = vmatpush1.msra.mxu1 %v4218_v1  ;;  %5046 = vmatprep.subr.mxu0 %v4327_v11  ;;  %v4407_v21 = vld [vmem:[#allocation9 + $0xad8] sm:$0xff]  ;;  %v4406_v9 = vld [vmem:[#allocation9 + $0xad0] sm:$0xff] }
 0x37f   :  { %4967 = vmatprep.subr.mxu1 %v4215_v13  ;;  %5047 = vmatpush1.msra.mxu0 %v4326_v14  ;;  %v4295_v36 = vld [vmem:[#allocation9 + $0x758] sm:$0xff]  ;;  %v4294_v10 = vld [vmem:[#allocation9 + $0x750] sm:$0xff] }
 0x380   :  { %4968 = vmatpush1.msra.mxu1 %v4214_v20  ;;  %5048 = vmatprep.subr.mxu0 %v4323_v25  ;;  %v4403_v33 = vld [vmem:[#allocation9 + $0xab8] sm:$0xff]  ;;  %v4402_v1 = vld [vmem:[#allocation9 + $0xab0] sm:$0xff] }
 0x381   :  { %4969 = vmatprep.subr.mxu1 %v4211_v18  ;;  %5049 = vmatpush1.msra.mxu0 %v4322_v7  ;;  %v4291_v41 = vld [vmem:[#allocation9 + $0x738] sm:$0xff]  ;;  %v4290_v11 = vld [vmem:[#allocation9 + $0x730] sm:$0xff] }
 0x382   :  { %4970 = vmatpush1.msra.mxu1 %v4210_v29  ;;  %5050 = vmatprep.subr.mxu0 %v4319_v61  ;;  %v4399_v13 = vld [vmem:[#allocation9 + $0xa98] sm:$0xff]  ;;  %v4398_v20 = vld [vmem:[#allocation9 + $0xa90] sm:$0xff] }
 0x383   :  { %4971 = vmatprep.subr.mxu1 %v4207_v23  ;;  %5051 = vmatpush1.msra.mxu0 %v4318_v24  ;;  %v4287_v14 = vld [vmem:[#allocation9 + $0x718] sm:$0xff]  ;;  %v4286_v25 = vld [vmem:[#allocation9 + $0x710] sm:$0xff] }
 0x384   :  { %4972 = vmatpush1.msra.mxu1 %v4206_v47  ;;  %5052 = vmatprep.subr.mxu0 %v4443_v46  ;;  %v4395_v18 = vld [vmem:[#allocation9 + $0xa78] sm:$0xff]  ;;  %v4394_v29 = vld [vmem:[#allocation9 + $0xa70] sm:$0xff] }
 0x385   :  { %4973 = vmatprep.subr.mxu1 %v4203_v58  ;;  %5053 = vmatpush2.msra.mxu0 %v4442_v39  ;;  %v4283_v7 = vld [vmem:[#allocation9 + $0x6f8] sm:$0xff]  ;;  %v4282_v61 = vld [vmem:[#allocation9 + $0x6f0] sm:$0xff] }
 0x386   :  { %4974 = vmatpush1.msra.mxu1 %v4202_v49  ;;  %5054 = vmatprep.subr.mxu0 %v4439_v53  ;;  %v4391_v23 = vld [vmem:[#allocation9 + $0xa58] sm:$0xff]  ;;  %v4390_v47 = vld [vmem:[#allocation9 + $0xa50] sm:$0xff] }
 0x387   :  { %4975 = vmatprep.subr.mxu1 %v4199_v27  ;;  %5055 = vmatpush2.msra.mxu0 %v4438_v28  ;;  %v4279_v24 = vld [vmem:[#allocation9 + $0x6d8] sm:$0xff]  ;;  %v4278_v46 = vld [vmem:[#allocation9 + $0x6d0] sm:$0xff] }
 0x388   :  { %4976 = vmatpush1.msra.mxu1 %v4198_v17  ;;  %5056 = vmatprep.subr.mxu0 %v4435_v32  ;;  %v4387_v58 = vld [vmem:[#allocation9 + $0xa38] sm:$0xff]  ;;  %v4386_v49 = vld [vmem:[#allocation9 + $0xa30] sm:$0xff] }
 0x389   :  { %4977 = vmatprep.subr.mxu1 %v4195_v35  ;;  %5057 = vmatpush2.msra.mxu0 %v4434_v55  ;;  %v4275_v39 = vld [vmem:[#allocation9 + $0x6b8] sm:$0xff]  ;;  %v4274_v53 = vld [vmem:[#allocation9 + $0x6b0] sm:$0xff] }
 0x38a   :  { %4978 = vmatpush1.msra.mxu1 %v4194_v37  ;;  %5058 = vmatprep.subr.mxu0 %v4431_v38  ;;  %v4383_v27 = vld [vmem:[#allocation9 + $0xa18] sm:$0xff]  ;;  %v4382_v17 = vld [vmem:[#allocation9 + $0xa10] sm:$0xff] }
 0x38b   :  { %4979 = vmatprep.subr.mxu1 %v4191_v40  ;;  %5059 = vmatpush2.msra.mxu0 %v4430_v42  ;;  %v4271_v28 = vld [vmem:[#allocation9 + $0x698] sm:$0xff]  ;;  %v4270_v32 = vld [vmem:[#allocation9 + $0x690] sm:$0xff] }
 0x38c   :  { %4980 = vmatpush1.msra.mxu1 %v4190_v43  ;;  %5060 = vmatprep.subr.mxu0 %v4427_v44  ;;  %v4267_v35 = vld [vmem:[#allocation9 + $0x678] sm:$0xff]  ;;  %v4266_v55 = vld [vmem:[#allocation9 + $0x670] sm:$0xff] }
 0x38d   :  { %4981 = vmatprep.subr.mxu1 %v4315_v45  ;;  %5061 = vmatpush2.msra.mxu0 %v4426_v19  ;;  %v4263_v37 = vld [vmem:[#allocation9 + $0x658] sm:$0xff]  ;;  %v4262_v38 = vld [vmem:[#allocation9 + $0x650] sm:$0xff] }
 0x38e   :  { %4982 = vmatpush2.msra.mxu1 %v4314_v22  ;;  %5062 = vmatprep.subr.mxu0 %v4423_v48  ;;  %v4259_v40 = vld [vmem:[#allocation9 + $0x638] sm:$0xff]  ;;  %v4258_v42 = vld [vmem:[#allocation9 + $0x630] sm:$0xff] }
 0x38f   :  { %4983 = vmatprep.subr.mxu1 %v4311_v51  ;;  %5063 = vmatpush2.msra.mxu0 %v4422_v59  ;;  %v4255_v43 = vld [vmem:[#allocation9 + $0x618] sm:$0xff]  ;;  %v4254_v44 = vld [vmem:[#allocation9 + $0x610] sm:$0xff] }
 0x390   :  { %4984 = vmatpush2.msra.mxu1 %v4310_v56  ;;  %5064 = vmatprep.subr.mxu0 %v4419_v57  ;;  %v4507_v45 = vld [vmem:[#allocation9 + $0xdf8] sm:$0xff]  ;;  %v4506_v19 = vld [vmem:[#allocation9 + $0xdf0] sm:$0xff] }
 0x391   :  { %4985 = vmatprep.subr.mxu1 %v4307_v60  ;;  %5065 = vmatpush2.msra.mxu0 %v4418_v62  ;;  %v4503_v22 = vld [vmem:[#allocation9 + $0xdd8] sm:$0xff]  ;;  %v4498_v51 = vld [vmem:[#allocation9 + $0xdb0] sm:$0xff] }
 0x392   :  { %4986 = vmatpush2.msra.mxu1 %v4306_v4  ;;  %5066 = vmatprep.subr.mxu0 %v4415_v15  ;;  %v4499_v48 = vld [vmem:[#allocation9 + $0xdb8] sm:$0xff]  ;;  %v4494_v56 = vld [vmem:[#allocation9 + $0xd90] sm:$0xff] }
 0x393   :  { %4987 = vmatprep.subr.mxu1 %v4303_v0  ;;  %5067 = vmatpush2.msra.mxu0 %v4414_v2  ;;  %v4495_v59 = vld [vmem:[#allocation9 + $0xd98] sm:$0xff]  ;;  %v4490_v60 = vld [vmem:[#allocation9 + $0xd70] sm:$0xff] }
 0x394   :  { %4988 = vmatpush2.msra.mxu1 %v4302_v16  ;;  %5068 = vmatprep.subr.mxu0 %v4411_v12  ;;  %v4491_v57 = vld [vmem:[#allocation9 + $0xd78] sm:$0xff]  ;;  %v4482_v15 = vld [vmem:[#allocation9 + $0xd30] sm:$0xff] }
 0x395   :  { %4989 = vmatprep.subr.mxu1 %v4299_v6  ;;  %5069 = vmatpush2.msra.mxu0 %v4410_v30  ;;  %v4487_v62 = vld [vmem:[#allocation9 + $0xd58] sm:$0xff]  ;;  %v4478_v0 = vld [vmem:[#allocation9 + $0xd10] sm:$0xff] }
 0x396   :  { %4990 = vmatpush2.msra.mxu1 %v4298_v8  ;;  %5070 = vmatprep.subr.mxu0 %v4407_v21  ;;  %v4483_v4 = vld [vmem:[#allocation9 + $0xd38] sm:$0xff]  ;;  %v4474_v16 = vld [vmem:[#allocation9 + $0xcf0] sm:$0xff] }
 0x397   :  { %4991 = vmatprep.subr.mxu1 %v4295_v36  ;;  %5071 = vmatpush2.msra.mxu0 %v4406_v9  ;;  %v4475_v2 = vld [vmem:[#allocation9 + $0xcf8] sm:$0xff]  ;;  %v4470_v6 = vld [vmem:[#allocation9 + $0xcd0] sm:$0xff] }
 0x398   :  { %4992 = vmatpush2.msra.mxu1 %v4294_v10  ;;  %5072 = vmatprep.subr.mxu0 %v4403_v33  ;;  %v4471_v12 = vld [vmem:[#allocation9 + $0xcd8] sm:$0xff]  ;;  %v4466_v8 = vld [vmem:[#allocation9 + $0xcb0] sm:$0xff] }
 0x399   :  { %4993 = vmatprep.subr.mxu1 %v4291_v41  ;;  %5073 = vmatpush2.msra.mxu0 %v4402_v1  ;;  %v4467_v30 = vld [vmem:[#allocation9 + $0xcb8] sm:$0xff]  ;;  %v4462_v36 = vld [vmem:[#allocation9 + $0xc90] sm:$0xff] }
 0x39a   :  { %4994 = vmatpush2.msra.mxu1 %v4290_v11  ;;  %5074 = vmatprep.subr.mxu0 %v4399_v13  ;;  %v4463_v21 = vld [vmem:[#allocation9 + $0xc98] sm:$0xff]  ;;  %v4458_v10 = vld [vmem:[#allocation9 + $0xc70] sm:$0xff] }
 0x39b   :  { %4995 = vmatprep.subr.mxu1 %v4287_v14  ;;  %5075 = vmatpush2.msra.mxu0 %v4398_v20  ;;  %v4459_v9 = vld [vmem:[#allocation9 + $0xc78] sm:$0xff]  ;;  %v4454_v41 = vld [vmem:[#allocation9 + $0xc50] sm:$0xff] }
 0x39c   :  { %4996 = vmatpush2.msra.mxu1 %v4286_v25  ;;  %5076 = vmatprep.subr.mxu0 %v4395_v18  ;;  %v4455_v33 = vld [vmem:[#allocation9 + $0xc58] sm:$0xff]  ;;  %v4450_v11 = vld [vmem:[#allocation9 + $0xc30] sm:$0xff] }
 0x39d   :  { %4997 = vmatprep.subr.mxu1 %v4283_v7  ;;  %5077 = vmatpush2.msra.mxu0 %v4394_v29  ;;  %v4451_v1 = vld [vmem:[#allocation9 + $0xc38] sm:$0xff]  ;;  %v4446_v14 = vld [vmem:[#allocation9 + $0xc10] sm:$0xff] }
 0x39e   :  { %4998 = vmatpush2.msra.mxu1 %v4282_v61  ;;  %5078 = vmatprep.subr.mxu0 %v4391_v23  ;;  %v4447_v13 = vld [vmem:[#allocation9 + $0xc18] sm:$0xff]  ;;  %v4570_v25 = vld [vmem:[#allocation9 + $0xff0] sm:$0xff] }
 0x39f   :  { %4999 = vmatprep.subr.mxu1 %v4279_v24  ;;  %5079 = vmatpush2.msra.mxu0 %v4390_v47  ;;  %v4571_v20 = vld [vmem:[#allocation9 + $0xff8] sm:$0xff]  ;;  %v4566_v7 = vld [vmem:[#allocation9 + $0xfd0] sm:$0xff] }
 0x3a0   :  { %5000 = vmatpush2.msra.mxu1 %v4278_v46  ;;  %5080 = vmatprep.subr.mxu0 %v4387_v58  ;;  %v4567_v18 = vld [vmem:[#allocation9 + $0xfd8] sm:$0xff]  ;;  %v4562_v61 = vld [vmem:[#allocation9 + $0xfb0] sm:$0xff] }
 0x3a1   :  { %5001 = vmatprep.subr.mxu1 %v4275_v39  ;;  %5081 = vmatpush2.msra.mxu0 %v4386_v49  ;;  %v4563_v29 = vld [vmem:[#allocation9 + $0xfb8] sm:$0xff]  ;;  %v4558_v24 = vld [vmem:[#allocation9 + $0xf90] sm:$0xff] }
 0x3a2   :  { %5002 = vmatpush2.msra.mxu1 %v4274_v53  ;;  %5082 = vmatprep.subr.mxu0 %v4383_v27  ;;  %v4559_v23 = vld [vmem:[#allocation9 + $0xf98] sm:$0xff]  ;;  %v4554_v46 = vld [vmem:[#allocation9 + $0xf70] sm:$0xff] }
 0x3a3   :  { %5003 = vmatprep.subr.mxu1 %v4271_v28  ;;  %5083 = vmatpush2.msra.mxu0 %v4382_v17  ;;  %v4555_v47 = vld [vmem:[#allocation9 + $0xf78] sm:$0xff]  ;;  %v4550_v39 = vld [vmem:[#allocation9 + $0xf50] sm:$0xff] }
 0x3a4   :  { %5004 = vmatpush2.msra.mxu1 %v4270_v32  ;;  %5085 = vmatmul.mubr.f32.vlgmr.msra.gmra.mxu0 %v6906_v63  ;;  %v4502_v63 = vld [vmem:[#allocation9 + $0xdd0] sm:$0xff]  ;;  %v4551_v58 = vld [vmem:[#allocation9 + $0xf58] sm:$0xff] }
 0x3a5   :  { %5005 = vmatprep.subr.mxu1 %v4267_v35  ;;  %v4547_v49 = vld [vmem:[#allocation9 + $0xf38] sm:$0xff]  ;;  %v4546_v53 = vld [vmem:[#allocation9 + $0xf30] sm:$0xff] }
 0x3a6   :  { %5006 = vmatpush2.msra.mxu1 %v4266_v55  ;;  %v4543_v27 = vld [vmem:[#allocation9 + $0xf18] sm:$0xff]  ;;  %v4542_v28 = vld [vmem:[#allocation9 + $0xf10] sm:$0xff] }
 0x3a7   :  { %5007 = vmatprep.subr.mxu1 %v4263_v37  ;;  %v4539_v17 = vld [vmem:[#allocation9 + $0xef8] sm:$0xff]  ;;  %v4538_v32 = vld [vmem:[#allocation9 + $0xef0] sm:$0xff] }
 0x3a8   :  { %5008 = vmatpush2.msra.mxu1 %v4262_v38  ;;  %v4535_v35 = vld [vmem:[#allocation9 + $0xed8] sm:$0xff]  ;;  %v4534_v55 = vld [vmem:[#allocation9 + $0xed0] sm:$0xff] }
 0x3a9   :  { %5009 = vmatprep.subr.mxu1 %v4259_v40  ;;  %v4531_v37 = vld [vmem:[#allocation9 + $0xeb8] sm:$0xff]  ;;  %v4530_v38 = vld [vmem:[#allocation9 + $0xeb0] sm:$0xff] }
 0x3aa   :  { %5010 = vmatpush2.msra.mxu1 %v4258_v42  ;;  %v4527_v40 = vld [vmem:[#allocation9 + $0xe98] sm:$0xff]  ;;  %v4526_v42 = vld [vmem:[#allocation9 + $0xe90] sm:$0xff] }
 0x3ab   :  { %5011 = vmatprep.subr.mxu1 %v4255_v43  ;;  %v4523_v43 = vld [vmem:[#allocation9 + $0xe78] sm:$0xff] }
 0x3ac   :  { %5012 = vmatpush2.msra.mxu1 %v4254_v44  ;;  %v4522_v44 = vld [vmem:[#allocation9 + $0xe70] sm:$0xff] }
 0x3ad   :  { %5014 = vmatmul.mubr.f32.vlgmr.msra.gmra.mxu1 %v6885_v52  ;;  %5091 = vmatprep.subr.mxu1 %v4507_v45  ;;  %v4486_v52 = vld [vmem:[#allocation9 + $0xd50] sm:$0xff]  ;;  %v4519_v45 = vld [vmem:[#allocation9 + $0xe58] sm:$0xff] }
 0x3ae   :  { %5092 = vmatpush1.msra.mxu1 %v4506_v19  ;;  %5155 = vmatprep.mubr.f32.mxu1 %v6925_v54  ;;  %v4479_v54 = vld [vmem:[#allocation9 + $0xd18] sm:$0xff]  ;;  %v4518_v19 = vld [vmem:[#allocation9 + $0xe50] sm:$0xff] }
 0x3af   :  { %5093 = vmatprep.subr.mxu1 %v4503_v22  ;;  %v4515_v22 = vld [vmem:[#allocation9 + $0xe38] sm:$0xff] }
 0x3b0   :  { %5094 = vmatpush1.msra.mxu1 %v4502_v63  ;;  %v4514_v63 = vld [vmem:[#allocation9 + $0xe30] sm:$0xff] }
 0x3b1   :  { %5095 = vmatprep.subr.mxu1 %v4499_v48  ;;  %v4511_v48 = vld [vmem:[#allocation9 + $0xe18] sm:$0xff] }
 0x3b2   :  { %5096 = vmatpush1.msra.mxu1 %v4498_v51  ;;  %v4510_v51 = vld [vmem:[#allocation9 + $0xe10] sm:$0xff] }
 0x3b3   :  { %5097 = vmatprep.subr.mxu1 %v4495_v59  ;;  %v4660_v59 = vpop.f32.mrf.mxu0 }
 0x3b4   :  { %5098 = vmatpush1.msra.mxu1 %v4494_v56  ;;  %v4731_v56 = vpop.f32.mrf.mxu1 }
 0x3b5   :  { %5099 = vmatprep.subr.mxu1 %v4491_v57  ;;  %v4662_v57 = vpop.f32.mrf.mxu0 }
 0x3b6   :  { %5100 = vmatpush1.msra.mxu1 %v4490_v60  ;;  %v4733_v60 = vpop.f32.mrf.mxu1 }
 0x3b7   :  { %5101 = vmatprep.subr.mxu1 %v4487_v62 }
 0x3b8   :  { %5102 = vmatpush1.msra.mxu1 %v4486_v52  ;;  %v4572_v52 = vld [vmem:[#allocation11] sm:$0xf] }
 0x3b9   :  { %5103 = vmatprep.subr.mxu1 %v4483_v4 }
 0x3ba   :  { %5104 = vmatpush1.msra.mxu1 %v4482_v15  ;;  %v4581_v15 = vrot.slane %v4572_v52, %v6841_v3 }
 0x3bb   :  { %5105 = vmatprep.subr.mxu1 %v4479_v54 }
 0x3bc   :  { %5106 = vmatpush1.msra.mxu1 %v4478_v0  ;;  %v4577_v0 = vrot.slane %v4572_v52, %v6871_v26 }
 0x3bd   :  { %5107 = vmatprep.subr.mxu1 %v4475_v2 }
 0x3be   :  { %5108 = vmatpush1.msra.mxu1 %v4474_v16 }
 0x3bf   :  { %5109 = vmatprep.subr.mxu1 %v4471_v12  ;;  %v4663_v12 = vadd.f32 %v4662_v57, %v4581_v15  ;;  %v5330_v57 = vld [vmem:[#allocation15 + $0x2a8] sm:$0xff]  ;;  %v5263_v15 = vld [vmem:[#allocation15 + $0x90] sm:$0xff] }
 0x3c0   :  { %5110 = vmatpush1.msra.mxu1 %v4470_v6  ;;  %v4585_v6 = vrot.slane %v4572_v52, %v6874_v31 }
 0x3c1   :  { %5111 = vmatprep.subr.mxu1 %v4467_v30 }
 0x3c2   :  { %5112 = vmatpush1.msra.mxu1 %v4466_v8  ;;  %v4661_v8 = vadd.f32 %v4660_v59, %v4577_v0  ;;  %v5331_v59 = vld [vmem:[#allocation15 + $0x2b0] sm:$0xff]  ;;  %v5262_v0 = vld [vmem:[#allocation15 + $0x88] sm:$0xff] }
 0x3c3   :  { %5113 = vmatprep.subr.mxu1 %v4463_v21 }
 0x3c4   :  { %5114 = vmatpush1.msra.mxu1 %v4462_v36  ;;  %v4734_v36 = vadd.f32 %v4733_v60, %v4663_v12  ;;  %v5265_v60 = vld [vmem:[#allocation15 + $0xa0] sm:$0xff] }
 0x3c5   :  { %5115 = vmatprep.subr.mxu1 %v4459_v9  ;;  %v5325_v12 = vld [vmem:[#allocation15 + $0x280] sm:$0xff] }
 0x3c6   :  { %5116 = vmatpush1.msra.mxu1 %v4458_v10 }
 0x3c7   :  { %5117 = vmatprep.subr.mxu1 %v4455_v33  ;;  %v4732_v33 = vadd.f32 %v4731_v56, %v4661_v8  ;;  %v5266_v56 = vld [vmem:[#allocation15 + $0xa8] sm:$0xff]  ;;  %v5259_v8 = vld [vmem:[#allocation15 + $0x70] sm:$0xff] }
 0x3c8   :  { %5118 = vmatpush1.msra.mxu1 %v4454_v41 }
 0x3c9   :  { %5119 = vmatprep.subr.mxu1 %v4451_v1 }
 0x3ca   :  { %5120 = vmatpush1.msra.mxu1 %v4450_v11 }
 0x3cb   :  { %5121 = vmatprep.subr.mxu1 %v4447_v13 }
 0x3cc   :  { %5122 = vmatpush1.msra.mxu1 %v4446_v14 }
 0x3cd   :  { %5123 = vmatprep.subr.mxu1 %v4571_v20 }
 0x3ce   :  { %5124 = vmatpush2.msra.mxu1 %v4570_v25 }
 0x3cf   :  { %5125 = vmatprep.subr.mxu1 %v4567_v18 }
 0x3d0   :  { %5126 = vmatpush2.msra.mxu1 %v4566_v7 }
 0x3d1   :  { %5127 = vmatprep.subr.mxu1 %v4563_v29 }
 0x3d2   :  { %5128 = vmatpush2.msra.mxu1 %v4562_v61 }
 0x3d3   :  { %5129 = vmatprep.subr.mxu1 %v4559_v23 }
 0x3d4   :  { %5130 = vmatpush2.msra.mxu1 %v4558_v24 }
 0x3d5   :  { %5131 = vmatprep.subr.mxu1 %v4555_v47 }
 0x3d6   :  { %5132 = vmatpush2.msra.mxu1 %v4554_v46 }
 0x3d7   :  { %5133 = vmatprep.subr.mxu1 %v4551_v58 }
 0x3d8   :  { %5134 = vmatpush2.msra.mxu1 %v4550_v39 }
 0x3d9   :  { %5135 = vmatprep.subr.mxu1 %v4547_v49 }
 0x3da   :  { %5136 = vmatpush2.msra.mxu1 %v4546_v53  ;;  %v5276_v53 = vld [vmem:[#allocation15 + $0xf8] sm:$0xff] }
 0x3db   :  { %5137 = vmatprep.subr.mxu1 %v4543_v27  ;;  %v5340_v27 = vld [vmem:[#allocation15 + $0x2f8] sm:$0xff]  ;;  %5385 = vmatprep.subr.mxu0 %v5276_v53  ;;  %v5313_v53 = vld [vmem:[#allocation15 + $0x220] sm:$0xff] }
 0x3dc   :  { %5138 = vmatpush2.msra.mxu1 %v4542_v28  ;;  %v5275_v28 = vld [vmem:[#allocation15 + $0xf0] sm:$0xff] }
 0x3dd   :  { %5139 = vmatprep.subr.mxu1 %v4539_v17  ;;  %v5339_v17 = vld [vmem:[#allocation15 + $0x2f0] sm:$0xff]  ;;  %5386 = vmatpush1.msra.mxu0 %v5275_v28  ;;  %v5312_v28 = vld [vmem:[#allocation15 + $0x218] sm:$0xff] }
 0x3de   :  { %5140 = vmatpush2.msra.mxu1 %v4538_v32  ;;  %v5274_v32 = vld [vmem:[#allocation15 + $0xe8] sm:$0xff] }
 0x3df   :  { %5141 = vmatprep.subr.mxu1 %v4535_v35  ;;  %v5338_v35 = vld [vmem:[#allocation15 + $0x2e8] sm:$0xff]  ;;  %5387 = vmatprep.subr.mxu0 %v5274_v32  ;;  %v5311_v32 = vld [vmem:[#allocation15 + $0x210] sm:$0xff] }
 0x3e0   :  { %5142 = vmatpush2.msra.mxu1 %v4534_v55  ;;  %v5273_v55 = vld [vmem:[#allocation15 + $0xe0] sm:$0xff] }
 0x3e1   :  { %5143 = vmatprep.subr.mxu1 %v4531_v37  ;;  %v5337_v37 = vld [vmem:[#allocation15 + $0x2e0] sm:$0xff]  ;;  %5388 = vmatpush1.msra.mxu0 %v5273_v55  ;;  %v5310_v55 = vld [vmem:[#allocation15 + $0x208] sm:$0xff] }
 0x3e2   :  { %5144 = vmatpush2.msra.mxu1 %v4530_v38  ;;  %v5272_v38 = vld [vmem:[#allocation15 + $0xd8] sm:$0xff] }
 0x3e3   :  { %5145 = vmatprep.subr.mxu1 %v4527_v40  ;;  %v5336_v40 = vld [vmem:[#allocation15 + $0x2d8] sm:$0xff]  ;;  %5389 = vmatprep.subr.mxu0 %v5272_v38  ;;  %v5309_v38 = vld [vmem:[#allocation15 + $0x200] sm:$0xff] }
 0x3e4   :  { %5146 = vmatpush2.msra.mxu1 %v4526_v42  ;;  %v4802_v62 = vpop.f32.mrf.mxu0  ;;  %v5271_v42 = vld [vmem:[#allocation15 + $0xd0] sm:$0xff] }
 0x3e5   :  { %5147 = vmatprep.subr.mxu1 %v4523_v43  ;;  %v4803_v14 = vadd.f32 %v4802_v62, %v4732_v33  ;;  %v5335_v43 = vld [vmem:[#allocation15 + $0x2d0] sm:$0xff]  ;;  %5390 = vmatpush1.msra.mxu0 %v5271_v42  ;;  %v5329_v62 = vld [vmem:[#allocation15 + $0x2a0] sm:$0xff]  ;;  %v5256_v33 = vld [vmem:[#allocation15 + $0x58] sm:$0xff] }
 0x3e6   :  { %5148 = vmatpush2.msra.mxu1 %v4522_v44  ;;  %v4804_v54 = vpop.f32.mrf.mxu0  ;;  %v5270_v44 = vld [vmem:[#allocation15 + $0xc8] sm:$0xff]  ;;  %v5372_v42 = vld [vmem:[#allocation15 + $0x3f8] sm:$0xff] }
 0x3e7   :  { %5149 = vmatprep.subr.mxu1 %v4519_v45  ;;  %v4805_v41 = vadd.f32 %v4804_v54, %v4734_v36  ;;  %v5334_v45 = vld [vmem:[#allocation15 + $0x2c8] sm:$0xff]  ;;  %5391 = vmatprep.subr.mxu0 %v5270_v44  ;;  %v5327_v54 = vld [vmem:[#allocation15 + $0x290] sm:$0xff] }
 0x3e8   :  { %5150 = vmatpush2.msra.mxu1 %v4518_v19  ;;  %v5269_v19 = vld [vmem:[#allocation15 + $0xc0] sm:$0xff]  ;;  %v5322_v36 = vld [vmem:[#allocation15 + $0x268] sm:$0xff]  ;;  %v5371_v44 = vld [vmem:[#allocation15 + $0x3f0] sm:$0xff] }
 0x3e9   :  { %5151 = vmatprep.subr.mxu1 %v4515_v22  ;;  %v5333_v22 = vld [vmem:[#allocation15 + $0x2c0] sm:$0xff]  ;;  %5392 = vmatpush1.msra.mxu0 %v5269_v19  ;;  %v5370_v19 = vld [vmem:[#allocation15 + $0x3e8] sm:$0xff] }
 0x3ea   :  { %5152 = vmatpush2.msra.mxu1 %v4514_v63  ;;  %v5268_v63 = vld [vmem:[#allocation15 + $0xb8] sm:$0xff] }
 0x3eb   :  { %5153 = vmatprep.subr.mxu1 %v4511_v48  ;;  %v5332_v48 = vld [vmem:[#allocation15 + $0x2b8] sm:$0xff]  ;;  %5393 = vmatprep.subr.mxu0 %v5268_v63  ;;  %v5369_v63 = vld [vmem:[#allocation15 + $0x3e0] sm:$0xff] }
 0x3ec   :  { %5154 = vmatpush2.msra.mxu1 %v4510_v51  ;;  %v5267_v51 = vld [vmem:[#allocation15 + $0xb0] sm:$0xff] }
 0x3ed   :  { %5156 = vmatmul.mubr.f32.vlgmr.msra.gmra.mxu1 %v6927_v34  ;;  %v4589_v34 = vrot.slane %v4572_v52, %v6846_v5  ;;  %5456 = vmatprep.subr.mxu1 %v5340_v27  ;;  %v5264_v52 = vld [vmem:[#allocation15 + $0x98] sm:$0xff] }
 0x3ee   :  { %5457 = vmatpush1.msra.mxu1 %v5339_v17  ;;  %5394 = vmatpush1.msra.mxu0 %v5267_v51  ;;  %v5248_v27 = vld [vmem:[#allocation15 + $0x18] sm:$0xff]  ;;  %v5247_v17 = vld [vmem:[#allocation15 + $0x10] sm:$0xff] }
 0x3ef   :  { %5458 = vmatprep.subr.mxu1 %v5338_v35  ;;  %5395 = vmatprep.subr.mxu0 %v5266_v56  ;;  %v5246_v35 = vld [vmem:[#allocation15 + $0x8] sm:$0xff]  ;;  %v5368_v51 = vld [vmem:[#allocation15 + $0x3d8] sm:$0xff] }
 0x3f0   :  { %5459 = vmatpush1.msra.mxu1 %v5337_v37  ;;  %5396 = vmatpush1.msra.mxu0 %v5265_v60  ;;  %v5245_v37 = vld [vmem:[#allocation15] sm:$0xff] }
 0x3f1   :  { %5460 = vmatprep.subr.mxu1 %v5336_v40  ;;  %5397 = vmatprep.subr.mxu0 %v5264_v52  ;;  %v5308_v40 = vld [vmem:[#allocation15 + $0x1f8] sm:$0xff] }
 0x3f2   :  { %5461 = vmatpush1.msra.mxu1 %v5335_v43  ;;  %5398 = vmatpush1.msra.mxu0 %v5263_v15  ;;  %v5307_v43 = vld [vmem:[#allocation15 + $0x1f0] sm:$0xff] }
 0x3f3   :  { %5462 = vmatprep.subr.mxu1 %v5334_v45  ;;  %5399 = vmatprep.subr.mxu0 %v5262_v0  ;;  %v5306_v45 = vld [vmem:[#allocation15 + $0x1e8] sm:$0xff] }
 0x3f4   :  { %5463 = vmatpush1.msra.mxu1 %v5333_v22  ;;  %v5305_v22 = vld [vmem:[#allocation15 + $0x1e0] sm:$0xff] }
 0x3f5   :  { %5464 = vmatprep.subr.mxu1 %v5332_v48  ;;  %v5304_v48 = vld [vmem:[#allocation15 + $0x1d8] sm:$0xff] }
 0x3f6   :  { %5465 = vmatpush1.msra.mxu1 %v5331_v59 }
 0x3f7   :  { %5466 = vmatprep.subr.mxu1 %v5330_v57 }
 0x3f8   :  { %5467 = vmatpush1.msra.mxu1 %v5329_v62 }
 0x424   :  { %v4944_v2 = vpop.f32.mrf.mxu0 }
 0x425   :  { %v4945_v9 = vadd.f32 %v4944_v2, %v4585_v6  ;;  %v5326_v2 = vld [vmem:[#allocation15 + $0x288] sm:$0xff]  ;;  %v5260_v6 = vld [vmem:[#allocation15 + $0x78] sm:$0xff] }
 0x426   :  { %v4946_v21 = vpop.f32.mrf.mxu0 }
 0x427   :  { %v4947_v1 = vadd.f32 %v4946_v21, %v4589_v34  ;;  %v5323_v34 = vld [vmem:[#allocation15 + $0x270] sm:$0xff]  ;;  %v5258_v21 = vld [vmem:[#allocation15 + $0x68] sm:$0xff] }
 0x42c   :  { %v4873_v4 = vpop.f32.mrf.mxu1 }
 0x42d   :  { %v6942_v18 = vadd.f32 %v4873_v4, %v4803_v14  ;;  %v5328_v4 = vld [vmem:[#allocation15 + $0x298] sm:$0xff]  ;;  %v5318_v14 = vld [vmem:[#allocation15 + $0x248] sm:$0xff] }
 0x42e   :  { %v4875_v16 = vpop.f32.mrf.mxu1  ;;  %5468 = vmatprep.subr.mxu1 %v5328_v4 }
 0x42f   :  { %v6940_v20 = vadd.f32 %v4875_v16, %v4805_v41  ;;  %v5261_v16 = vld [vmem:[#allocation15 + $0x80] sm:$0xff]  ;;  %5469 = vmatpush1.msra.mxu1 %v5327_v54  ;;  %v5320_v41 = vld [vmem:[#allocation15 + $0x258] sm:$0xff] }
 0x430   :  { %5470 = vmatprep.subr.mxu1 %v5326_v2  ;;  %5400 = vmatpush1.msra.mxu0 %v5261_v16  ;;  %v5367_v16 = vld [vmem:[#allocation15 + $0x3d0] sm:$0xff] }
 0x431   :  { %v5164_v23 = vadd.f32 %v6940_v20, %v6942_v18  ;;  %5471 = vmatpush1.msra.mxu1 %v5325_v12  ;;  %5401 = vmatprep.subr.mxu0 %v5260_v6  ;;  %v5366_v12 = vld [vmem:[#allocation15 + $0x3c8] sm:$0xff]  ;;  %v5301_v6 = vld [vmem:[#allocation15 + $0x1c0] sm:$0xff] }
 0x432   :  { %5402 = vmatpush1.msra.mxu0 %v5259_v8  ;;  %v5300_v8 = vld [vmem:[#allocation15 + $0x1b8] sm:$0xff] }
 0x433   :  { %5403 = vmatprep.subr.mxu0 %v5258_v21  ;;  %v5299_v21 = vld [vmem:[#allocation15 + $0x1b0] sm:$0xff] }
 0x464   :  { %v5086_v13 = vpop.f32.mrf.mxu0 }
 0x466   :  { %v5088_v29 = vpop.f32.mrf.mxu0 }
 0x46d   :  { %v5015_v30 = vpop.f32.mrf.mxu1 }
 0x46e   :  { %v5016_v11 = vadd.f32 %v5015_v30, %v4945_v9  ;;  %v5324_v30 = vld [vmem:[#allocation15 + $0x278] sm:$0xff]  ;;  %v5257_v9 = vld [vmem:[#allocation15 + $0x60] sm:$0xff] }
 0x46f   :  { %v5017_v10 = vpop.f32.mrf.mxu1  ;;  %5472 = vmatprep.subr.mxu1 %v5324_v30  ;;  %5404 = vmatpush1.msra.mxu0 %v5257_v9  ;;  %v5365_v30 = vld [vmem:[#allocation15 + $0x3c0] sm:$0xff]  ;;  %v5298_v9 = vld [vmem:[#allocation15 + $0x1a8] sm:$0xff] }
 0x470   :  { %v5018_v25 = vadd.f32 %v5017_v10, %v4947_v1  ;;  %v5087_v7 = vadd.f32 %v5086_v13, %v5016_v11  ;;  %v5321_v10 = vld [vmem:[#allocation15 + $0x260] sm:$0xff]  ;;  %5473 = vmatpush1.msra.mxu1 %v5323_v34  ;;  %v5255_v1 = vld [vmem:[#allocation15 + $0x50] sm:$0xff]  ;;  %v5254_v13 = vld [vmem:[#allocation15 + $0x48] sm:$0xff]  ;;  %5405 = vmatprep.subr.mxu0 %v5256_v33 }
 0x471   :  { %5474 = vmatprep.subr.mxu1 %v5322_v36  ;;  %v5319_v11 = vld [vmem:[#allocation15 + $0x250] sm:$0xff]  ;;  %5406 = vmatpush1.msra.mxu0 %v5255_v1  ;;  %v5364_v34 = vld [vmem:[#allocation15 + $0x3b8] sm:$0xff]  ;;  %v5297_v33 = vld [vmem:[#allocation15 + $0x1a0] sm:$0xff] }
 0x472   :  { %v5089_v47 = vadd.f32 %v5088_v29, %v5018_v25  ;;  %5475 = vmatpush1.msra.mxu1 %v5321_v10  ;;  %v5253_v25 = vld [vmem:[#allocation15 + $0x40] sm:$0xff]  ;;  %v5252_v29 = vld [vmem:[#allocation15 + $0x38] sm:$0xff]  ;;  %5407 = vmatprep.subr.mxu0 %v5254_v13  ;;  %v5363_v36 = vld [vmem:[#allocation15 + $0x3b0] sm:$0xff] }
 0x473   :  { %5476 = vmatprep.subr.mxu1 %v5320_v41  ;;  %5408 = vmatpush1.msra.mxu0 %v5253_v25  ;;  %v5362_v10 = vld [vmem:[#allocation15 + $0x3a8] sm:$0xff]  ;;  %v5361_v41 = vld [vmem:[#allocation15 + $0x3a0] sm:$0xff]  ;;  %v5296_v1 = vld [vmem:[#allocation15 + $0x198] sm:$0xff] }
 0x474   :  { %5477 = vmatpush1.msra.mxu1 %v5319_v11  ;;  %5409 = vmatprep.subr.mxu0 %v5252_v29  ;;  %v5360_v11 = vld [vmem:[#allocation15 + $0x398] sm:$0xff]  ;;  %v5295_v13 = vld [vmem:[#allocation15 + $0x190] sm:$0xff]  ;;  %v5294_v25 = vld [vmem:[#allocation15 + $0x188] sm:$0xff] }
 0x475   :  { %5478 = vmatprep.subr.mxu1 %v5318_v14  ;;  %v5359_v14 = vld [vmem:[#allocation15 + $0x390] sm:$0xff]  ;;  %v5293_v29 = vld [vmem:[#allocation15 + $0x180] sm:$0xff] }
 0x4ad   :  { %v5157_v61 = vpop.f32.mrf.mxu1 }
 0x4ae   :  { %v6946_v24 = vadd.f32 %v5157_v61, %v5087_v7  ;;  %v5317_v7 = vld [vmem:[#allocation15 + $0x240] sm:$0xff]  ;;  %v5316_v61 = vld [vmem:[#allocation15 + $0x238] sm:$0xff] }
 0x4af   :  { %v5159_v46 = vpop.f32.mrf.mxu1  ;;  %5479 = vmatpush1.msra.mxu1 %v5317_v7  ;;  %v5358_v7 = vld [vmem:[#allocation15 + $0x388] sm:$0xff] }
 0x4b0   :  { %v6948_v58 = vadd.f32 %v5159_v46, %v5089_v47  ;;  %v5165_v39 = vadd.f32 %v5164_v23, %v6946_v24  ;;  %v5251_v23 = vld [vmem:[#allocation15 + $0x30] sm:$0xff]  ;;  %v5250_v46 = vld [vmem:[#allocation15 + $0x28] sm:$0xff]  ;;  %5480 = vmatprep.subr.mxu1 %v5316_v61  ;;  %v5357_v61 = vld [vmem:[#allocation15 + $0x380] sm:$0xff] }
 0x4b1   :  { %v5315_v47 = vld [vmem:[#allocation15 + $0x230] sm:$0xff]  ;;  %5410 = vmatpush1.msra.mxu0 %v5251_v23  ;;  %v5292_v23 = vld [vmem:[#allocation15 + $0x178] sm:$0xff] }
 0x4b2   :  { %v5166_v49 = vadd.f32 %v5165_v39, %v6948_v58  ;;  %v5314_v39 = vld [vmem:[#allocation15 + $0x228] sm:$0xff]  ;;  %5481 = vmatpush1.msra.mxu1 %v5315_v47  ;;  %5411 = vmatprep.subr.mxu0 %v5250_v46  ;;  %v5356_v47 = vld [vmem:[#allocation15 + $0x378] sm:$0xff]  ;;  %v5291_v46 = vld [vmem:[#allocation15 + $0x170] sm:$0xff] }
 0x4b3   :  { %5482 = vmatprep.subr.mxu1 %v5314_v39  ;;  %v5355_v39 = vld [vmem:[#allocation15 + $0x370] sm:$0xff] }
 0x4b4   :  { %5167 = vadd.xlane.f32.xlu0 %v5166_v49  ;;  %v5249_v49 = vld [vmem:[#allocation15 + $0x20] sm:$0xff]  ;;  %5483 = vmatpush1.msra.mxu1 %v5313_v53  ;;  %v5354_v53 = vld [vmem:[#allocation15 + $0x368] sm:$0xff] }
 0x4b5   :  { %5412 = vmatpush1.msra.mxu0 %v5249_v49  ;;  %5484 = vmatprep.subr.mxu1 %v5312_v28  ;;  %v5290_v49 = vld [vmem:[#allocation15 + $0x168] sm:$0xff]  ;;  %v5353_v28 = vld [vmem:[#allocation15 + $0x360] sm:$0xff] }
 0x4b6   :  { %5413 = vmatprep.subr.mxu0 %v5248_v27  ;;  %5485 = vmatpush1.msra.mxu1 %v5311_v32  ;;  %v5289_v27 = vld [vmem:[#allocation15 + $0x160] sm:$0xff]  ;;  %v5352_v32 = vld [vmem:[#allocation15 + $0x358] sm:$0xff] }
 0x4b7   :  { %5414 = vmatpush1.msra.mxu0 %v5247_v17  ;;  %5486 = vmatprep.subr.mxu1 %v5310_v55  ;;  %v5288_v17 = vld [vmem:[#allocation15 + $0x158] sm:$0xff]  ;;  %v5351_v55 = vld [vmem:[#allocation15 + $0x350] sm:$0xff] }
 0x4b8   :  { %5415 = vmatprep.subr.mxu0 %v5246_v35  ;;  %5487 = vmatpush1.msra.mxu1 %v5309_v38  ;;  %v5287_v35 = vld [vmem:[#allocation15 + $0x150] sm:$0xff]  ;;  %v5350_v38 = vld [vmem:[#allocation15 + $0x348] sm:$0xff] }
 0x4b9   :  { %5416 = vmatpush1.msra.mxu0 %v5245_v37  ;;  %5488 = vmatprep.subr.mxu1 %v5372_v42  ;;  %v5286_v37 = vld [vmem:[#allocation15 + $0x148] sm:$0xff]  ;;  %v5349_v42 = vld [vmem:[#allocation15 + $0x340] sm:$0xff] }
 0x4ba   :  { %5417 = vmatprep.subr.mxu0 %v5308_v40  ;;  %5489 = vmatpush2.msra.mxu1 %v5371_v44  ;;  %v5285_v40 = vld [vmem:[#allocation15 + $0x140] sm:$0xff]  ;;  %v5348_v44 = vld [vmem:[#allocation15 + $0x338] sm:$0xff] }
 0x4bb   :  { %5418 = vmatpush2.msra.mxu0 %v5307_v43  ;;  %5490 = vmatprep.subr.mxu1 %v5370_v19  ;;  %v5284_v43 = vld [vmem:[#allocation15 + $0x138] sm:$0xff]  ;;  %v5347_v19 = vld [vmem:[#allocation15 + $0x330] sm:$0xff] }
 0x4bc   :  { %5419 = vmatprep.subr.mxu0 %v5306_v45  ;;  %5491 = vmatpush2.msra.mxu1 %v5369_v63  ;;  %v5283_v45 = vld [vmem:[#allocation15 + $0x130] sm:$0xff]  ;;  %v5346_v63 = vld [vmem:[#allocation15 + $0x328] sm:$0xff] }
 0x4bd   :  { %5420 = vmatpush2.msra.mxu0 %v5305_v22  ;;  %5492 = vmatprep.subr.mxu1 %v5368_v51  ;;  %v5282_v22 = vld [vmem:[#allocation15 + $0x128] sm:$0xff]  ;;  %v5345_v51 = vld [vmem:[#allocation15 + $0x320] sm:$0xff] }
 0x4be   :  { %5421 = vmatprep.subr.mxu0 %v5304_v48  ;;  %5493 = vmatpush2.msra.mxu1 %v5367_v16  ;;  %v5281_v48 = vld [vmem:[#allocation15 + $0x120] sm:$0xff] }
 0x4bf   :  { %5494 = vmatprep.subr.mxu1 %v5366_v12  ;;  %v5163_v12 = vld [vmem:[#allocation14] sm:$0xf] }
 0x4c0   :  { %5495 = vmatpush2.msra.mxu1 %v5365_v30 }
 0x4c1   :  { %5496 = vmatprep.subr.mxu1 %v5364_v34 }
 0x4c2   :  { %5497 = vmatpush2.msra.mxu1 %v5363_v36  ;;  %v5224_v36 = vrot.slane %v5163_v12, %v6841_v3 }
 0x4c3   :  { %5498 = vmatprep.subr.mxu1 %v5362_v10  ;;  %v5220_v10 = vrot.slane %v5163_v12, %v6871_v26 }
 0x4c4   :  { %5499 = vmatpush2.msra.mxu1 %v5361_v41 }
 0x4c5   :  { %5500 = vmatprep.subr.mxu1 %v5360_v11 }
 0x4c6   :  { %5501 = vmatpush2.msra.mxu1 %v5359_v14 }
 0x4c7   :  { %5502 = vmatprep.subr.mxu1 %v5358_v7 }
 0x4c8   :  { %5503 = vmatpush2.msra.mxu1 %v5357_v61 }
 0x4c9   :  { %5504 = vmatprep.subr.mxu1 %v5356_v47 }
 0x4ca   :  { %5505 = vmatpush2.msra.mxu1 %v5355_v39 }
 0x4cb   :  { %5506 = vmatprep.subr.mxu1 %v5354_v53 }
 0x4cc   :  { %5507 = vmatpush2.msra.mxu1 %v5353_v28 }
 0x4cd   :  { %5508 = vmatprep.subr.mxu1 %v5352_v32 }
 0x4ce   :  { %5509 = vmatpush2.msra.mxu1 %v5351_v55 }
 0x4cf   :  { %5510 = vmatprep.subr.mxu1 %v5350_v38  ;;  %v5605_v38 = vld [vmem:[#allocation21 + $0xf8] sm:$0xff] }
 0x4d0   :  { %5511 = vmatpush2.msra.mxu1 %v5349_v42  ;;  %v5604_v42 = vld [vmem:[#allocation21 + $0xf0] sm:$0xff] }
 0x4d1   :  { %5512 = vmatprep.subr.mxu1 %v5348_v44  ;;  %v5603_v44 = vld [vmem:[#allocation21 + $0xe8] sm:$0xff] }
 0x4d2   :  { %5513 = vmatpush2.msra.mxu1 %v5347_v19 }
 0x4d3   :  { %5514 = vmatprep.subr.mxu1 %v5346_v63 }
 0x4d4   :  { %5515 = vmatpush2.msra.mxu1 %v5345_v51 }
 0x53d   :  { %v5168_v59 = vpop.xlane.xlu0 %5167 }
 0x53e   :  { %v5170_v56 = vmul.f32 0.001953125, %v5168_v59  ;;  %v5280_v59 = vld [vmem:[#allocation15 + $0x118] sm:$0xff] }
 0x540   :  { %v6953_v57 = vsub.f32 %v6942_v18, %v5170_v56  ;;  %v6956_v60 = vsub.f32 %v6940_v20, %v5170_v56  ;;  %v6959_v62 = vsub.f32 %v6946_v24, %v5170_v56  ;;  %v6962_v52 = vsub.f32 %v6948_v58, %v5170_v56  ;;  %v5303_v24 = vld [vmem:[#allocation15 + $0x1d0] sm:$0xff]  ;;  %v5302_v58 = vld [vmem:[#allocation15 + $0x1c8] sm:$0xff]  ;;  %v5344_v56 = vld [vmem:[#allocation15 + $0x318] sm:$0xff] }
 0x541   :  { %5422 = vmatpush2.msra.mxu0 %v5303_v24  ;;  %5516 = vmatprep.subr.mxu1 %v5344_v56  ;;  %v5587_v56 = vld [vmem:[#allocation21 + $0x68] sm:$0xff] }
 0x542   :  { %v5175_v4 = vmul.f32 %v6953_v57, %v6953_v57  ;;  %v5176_v15 = vmul.f32 %v6956_v60, %v6956_v60  ;;  %v5177_v54 = vmul.f32 %v6959_v62, %v6959_v62  ;;  %v5178_v20 = vmul.f32 %v6962_v52, %v6962_v52  ;;  %5423 = vmatprep.subr.mxu0 %v5302_v58  ;;  %v5162_v58 = vld [vmem:[#allocation12] sm:$0xf] }
 0x543   :  { %5424 = vmatpush2.msra.mxu0 %v5301_v6  ;;  %v5199_v6 = vrot.slane %v5162_v58, %v6841_v3  ;;  %v5207_v30 = vrot.slane %v5162_v58, %v6846_v5  ;;  %v5203_v34 = vrot.slane %v5162_v58, %v6874_v31 }
 0x544   :  { %v5179_v18 = vadd.f32 %v5176_v15, %v5175_v4  ;;  %5425 = vmatprep.subr.mxu0 %v5300_v8  ;;  %v5279_v4 = vld [vmem:[#allocation15 + $0x110] sm:$0xff]  ;;  %v5195_v8 = vrot.slane %v5162_v58, %v6871_v26  ;;  %v5582_v58 = vld [vmem:[#allocation21 + $0x40] sm:$0xff] }
 0x545   :  { %5426 = vmatpush2.msra.mxu0 %v5299_v21  ;;  %v5343_v15 = vld [vmem:[#allocation15 + $0x310] sm:$0xff] }
 0x546   :  { %v5180_v0 = vadd.f32 %v5179_v18, %v5177_v54  ;;  %5427 = vmatprep.subr.mxu0 %v5298_v9  ;;  %v5278_v54 = vld [vmem:[#allocation15 + $0x108] sm:$0xff]  ;;  %5517 = vmatpush2.msra.mxu1 %v5343_v15  ;;  %v5232_v9 = vrot.slane %v5163_v12, %v6846_v5 }
 0x547   :  { %5428 = vmatpush2.msra.mxu0 %v5297_v33  ;;  %v5342_v18 = vld [vmem:[#allocation15 + $0x308] sm:$0xff]  ;;  %v5228_v33 = vrot.slane %v5163_v12, %v6874_v31  ;;  %v5597_v12 = vld [vmem:[#allocation21 + $0xb8] sm:$0xff] }
 0x548   :  { %v5181_v2 = vadd.f32 %v5180_v0, %v5178_v20  ;;  %5429 = vmatprep.subr.mxu0 %v5296_v1  ;;  %v5277_v20 = vld [vmem:[#allocation15 + $0x100] sm:$0xff]  ;;  %5518 = vmatprep.subr.mxu1 %v5342_v18 }
 0x549   :  { %5430 = vmatpush2.msra.mxu0 %v5295_v13  ;;  %v5341_v0 = vld [vmem:[#allocation15 + $0x300] sm:$0xff] }
 0x54a   :  { %5182 = vadd.xlane.f32.xlu0 %v5181_v2  ;;  %5431 = vmatprep.subr.mxu0 %v5294_v25  ;;  %v5586_v15 = vld [vmem:[#allocation21 + $0x60] sm:$0xff]  ;;  %v5585_v18 = vld [vmem:[#allocation21 + $0x58] sm:$0xff] }
 0x54b   :  { %5432 = vmatpush2.msra.mxu0 %v5293_v29  ;;  %5519 = vmatpush2.msra.mxu1 %v5341_v0  ;;  %v5584_v0 = vld [vmem:[#allocation21 + $0x50] sm:$0xff] }
 0x54c   :  { %5433 = vmatprep.subr.mxu0 %v5292_v23 }
 0x54d   :  { %5434 = vmatpush2.msra.mxu0 %v5291_v46 }
 0x54e   :  { %5435 = vmatprep.subr.mxu0 %v5290_v49 }
 0x54f   :  { %5436 = vmatpush2.msra.mxu0 %v5289_v27 }
 0x550   :  { %5437 = vmatprep.subr.mxu0 %v5288_v17 }
 0x551   :  { %5438 = vmatpush2.msra.mxu0 %v5287_v35 }
 0x552   :  { %5439 = vmatprep.subr.mxu0 %v5286_v37 }
 0x553   :  { %5440 = vmatpush2.msra.mxu0 %v5285_v40  ;;  %v5589_v40 = vld [vmem:[#allocation21 + $0x78] sm:$0xff] }
 0x554   :  { %5441 = vmatprep.subr.mxu0 %v5284_v43  ;;  %v5588_v43 = vld [vmem:[#allocation21 + $0x70] sm:$0xff] }
 0x555   :  { %5442 = vmatpush2.msra.mxu0 %v5283_v45 }
 0x556   :  { %5443 = vmatprep.subr.mxu0 %v5282_v22 }
 0x557   :  { %5444 = vmatpush2.msra.mxu0 %v5281_v48 }
 0x558   :  { %5445 = vmatprep.subr.mxu0 %v5280_v59 }
 0x559   :  { %5446 = vmatpush2.msra.mxu0 %v5279_v4  ;;  %v5602_v4 = vld [vmem:[#allocation21 + $0xe0] sm:$0xff] }
 0x55a   :  { %5447 = vmatprep.subr.mxu0 %v5278_v54  ;;  %v5601_v54 = vld [vmem:[#allocation21 + $0xd8] sm:$0xff] }
 0x55b   :  { %5448 = vmatpush2.msra.mxu0 %v5277_v20  ;;  %v5600_v20 = vld [vmem:[#allocation21 + $0xd0] sm:$0xff] }
 0x55c   :  { %6247 = vmatprep.subr.mxu0 %v5605_v38 }
 0x5d3   :  { %v5183_v2 = vpop.xlane.xlu0 %5182 }
 0x5d4   :  { %v5184_v24 = vmul.f32 0.001953125, %v5183_v2  ;;  %v5599_v2 = vld [vmem:[#allocation21 + $0xc8] sm:$0xff] }
 0x5d6   :  { %v5185_v16 = vadd.f32 1e-05, %v5184_v24  ;;  %v5583_v24 = vld [vmem:[#allocation21 + $0x48] sm:$0xff] }
 0x5d8   :  { %6310 = vrsqrt.f32 %v5185_v16  ;;  %v5598_v16 = vld [vmem:[#allocation21 + $0xc0] sm:$0xff] }
 0x5e5   :  { %v6311_v21 = vpop.eup %6310 }
 0x5e6   :  { %v5188_v41 = vmul.f32 %v6311_v21, %v6956_v60  ;;  %v5190_v1 = vmul.f32 %v6311_v21, %v6962_v52  ;;  %v5187_v11 = vmul.f32 %v6311_v21, %v6953_v57  ;;  %v5189_v13 = vmul.f32 %v6311_v21, %v6959_v62  ;;  %v5373_v60 = vld [vmem:[#allocation17] sm:$0x3]  ;;  %v5579_v21 = vld [vmem:[#allocation21 + $0x28] sm:$0xff] }
 0x5e7   :  { %v5378_v57 = vrot.slane %v5373_v60, %v6871_v26  ;;  %v5382_v62 = vrot.slane %v5373_v60, %v6841_v3 }
 0x5e8   :  { %v5213_v14 = vmul.f32 %v5199_v6, %v5188_v41  ;;  %v5215_v25 = vmul.f32 %v5207_v30, %v5190_v1  ;;  %v5212_v7 = vmul.f32 %v5195_v8, %v5187_v11  ;;  %v5214_v29 = vmul.f32 %v5203_v34, %v5189_v13  ;;  %v5581_v6 = vld [vmem:[#allocation21 + $0x38] sm:$0xff]  ;;  %v5596_v30 = vld [vmem:[#allocation21 + $0xb0] sm:$0xff]  ;;  %v5595_v34 = vld [vmem:[#allocation21 + $0xa8] sm:$0xff] }
 0x5e9   :  { %v5580_v8 = vld [vmem:[#allocation21 + $0x30] sm:$0xff]  ;;  %v5591_v11 = vld [vmem:[#allocation21 + $0x88] sm:$0xff] }
 0x5ea   :  { %v5238_v61 = vadd.f32 %v5224_v36, %v5213_v14  ;;  %v5240_v23 = vadd.f32 %v5232_v9, %v5215_v25  ;;  %v5237_v47 = vadd.f32 %v5220_v10, %v5212_v7  ;;  %v5239_v5 = vadd.f32 %v5228_v33, %v5214_v29  ;;  %v5594_v36 = vld [vmem:[#allocation21 + $0xa0] sm:$0xff]  ;;  %v5593_v10 = vld [vmem:[#allocation21 + $0x98] sm:$0xff]  ;;  %v5592_v41 = vld [vmem:[#allocation21 + $0x90] sm:$0xff] }
 0x5eb   :  { %v5578_v9 = vld [vmem:[#allocation21 + $0x20] sm:$0xff]  ;;  %v5577_v33 = vld [vmem:[#allocation21 + $0x18] sm:$0xff]  ;;  %v5576_v1 = vld [vmem:[#allocation21 + $0x10] sm:$0xff] }
 0x5ec   :  { %v5242_v46 = vmax.f32 %v5238_v61, 0.0  ;;  %v5244_v39 = vmax.f32 %v5240_v23, 0.0  ;;  %v5241_v49 = vmax.f32 %v5237_v47, 0.0  ;;  %v5243_v31 = vmax.f32 %v5239_v5, 0.0  ;;  %v5575_v13 = vld [vmem:[#allocation21 + $0x8] sm:$0xff]  ;;  %v5590_v14 = vld [vmem:[#allocation21 + $0x80] sm:$0xff] }
 0x5ed   :  { %v5574_v25 = vld [vmem:[#allocation21] sm:$0xff]  ;;  %v5527_v23 = vld [vmem:[#allocation18] sm:$0x3]  ;;  %v5528_v47 = vld [vmem:[#allocation20] sm:$0x3] }
 0x5ee   :  { %5449 = vmatprep.mubr.f32.mxu0 %v5242_v46  ;;  %5520 = vmatprep.mubr.f32.mxu1 %v5244_v39  ;;  %v5550_v5 = vrot.slane %v5527_v23, %v6871_v26  ;;  %v5554_v46 = vrot.slane %v5527_v23, %v6841_v3  ;;  %v5567_v60 = vrot.slane %v5528_v47, %v6841_v3 }
 0x5ef   :  { %5450 = vmatmul.mubr.f32.vlgmr.msra.gmra.mxu0 %v5241_v49  ;;  %5521 = vmatmul.mubr.f32.vlgmr.msra.gmra.mxu1 %v5243_v31  ;;  %v5563_v31 = vrot.slane %v5528_v47, %v6871_v26 }
 0x5f0   :  { %6248 = vmatpush3.msra.mxu0 %v5589_v40 }
 0x5f1   :  { %6249 = vmatprep.subr.mxu0 %v5604_v42 }
 0x5f2   :  { %6250 = vmatpush3.msra.mxu0 %v5588_v43 }
 0x5f3   :  { %6251 = vmatprep.subr.mxu0 %v5603_v44 }
 0x5f4   :  { %6252 = vmatpush3.msra.mxu0 %v5587_v56 }
 0x5f5   :  { %6253 = vmatprep.subr.mxu0 %v5602_v4 }
 0x5f6   :  { %6254 = vmatpush3.msra.mxu0 %v5586_v15 }
 0x5f7   :  { %6255 = vmatprep.subr.mxu0 %v5601_v54 }
 0x5f8   :  { %6256 = vmatpush3.msra.mxu0 %v5585_v18 }
 0x5f9   :  { %6257 = vmatprep.subr.mxu0 %v5600_v20 }
 0x5fa   :  { %6258 = vmatpush3.msra.mxu0 %v5584_v0 }
 0x5fb   :  { %6259 = vmatprep.subr.mxu0 %v5599_v2 }
 0x5fc   :  { %6260 = vmatpush3.msra.mxu0 %v5583_v24 }
 0x5fd   :  { %6261 = vmatprep.subr.mxu0 %v5598_v16 }
 0x5fe   :  { %6262 = vmatpush3.msra.mxu0 %v5582_v58 }
 0x5ff   :  { %6263 = vmatprep.subr.mxu0 %v5597_v12 }
 0x600   :  { %6264 = vmatpush3.msra.mxu0 %v5581_v6 }
 0x601   :  { %6265 = vmatprep.subr.mxu0 %v5596_v30 }
 0x602   :  { %6266 = vmatpush3.msra.mxu0 %v5580_v8 }
 0x603   :  { %6267 = vmatprep.subr.mxu0 %v5595_v34 }
 0x604   :  { %6268 = vmatpush3.msra.mxu0 %v5579_v21 }
 0x605   :  { %6269 = vmatprep.subr.mxu0 %v5594_v36 }
 0x606   :  { %6270 = vmatpush3.msra.mxu0 %v5578_v9 }
 0x607   :  { %6271 = vmatprep.subr.mxu0 %v5593_v10 }
 0x608   :  { %6272 = vmatpush3.msra.mxu0 %v5577_v33 }
 0x609   :  { %6273 = vmatprep.subr.mxu0 %v5592_v41 }
 0x60a   :  { %6274 = vmatpush3.msra.mxu0 %v5576_v1 }
 0x60b   :  { %6275 = vmatprep.subr.mxu0 %v5591_v11 }
 0x60c   :  { %6276 = vmatpush3.msra.mxu0 %v5575_v13 }
 0x60d   :  { %6277 = vmatprep.subr.mxu0 %v5590_v14 }
 0x60e   :  { %6278 = vmatpush3.msra.mxu0 %v5574_v25 }
 0x6af   :  { %v5451_v52 = vpop.f32.mrf.mxu0  ;;  %v5522_v53 = vpop.f32.mrf.mxu1 }
 0x6b0   :  { %v5452_v27 = vadd.f32 %v5451_v52, %v5378_v57 }
 0x6b1   :  { %v5453_v28 = vpop.f32.mrf.mxu0  ;;  %v5524_v32 = vpop.f32.mrf.mxu1 }
 0x6b2   :  { %v5454_v17 = vadd.f32 %v5453_v28, %v5382_v62  ;;  %v5523_v35 = vadd.f32 %v5522_v53, %v5452_v27 }
 0x6b4   :  { %v5525_v55 = vadd.f32 %v5524_v32, %v5454_v17 }
 0x6b6   :  { %v5529_v37 = vadd.f32 %v5525_v55, %v5523_v35 }
 0x6b8   :  { %5530 = vadd.xlane.f32.xlu1 %v5529_v37 }
 0x741   :  { %v5531_v45 = vpop.xlane.xlu1 %5530 }
 0x742   :  { %v5533_v19 = vmul.f32 0.00390625, %v5531_v45 }
 0x744   :  { %v6986_v22 = vsub.f32 %v5523_v35, %v5533_v19  ;;  %v6988_v63 = vsub.f32 %v5525_v55, %v5533_v19  ;;  %v5684_v35 = vand.u32 127, %v4012_v50  ;;  %v6246_v55 = vld [vmem:[#allocation23] ss:$0 sm:$0xff] }
 0x746   :  { %v5536_v48 = vmul.f32 %v6986_v22, %v6986_v22  ;;  %v5537_v51 = vmul.f32 %v6988_v63, %v6988_v63  ;;  %vm5685_vm0 = vcmp.lt.s32.totalorder %v5684_v35, 4  ;;  %vm5686_vm1 = vcmp.ge.s32.totalorder %v5684_v35, 12 }
 0x747   :  { %vm5687_vm2 = vcmp.lt.s32.totalorder %v5684_v35, 16 }
 0x748   :  { %v5538_v59 = vadd.f32 %v5537_v51, %v5536_v48  ;;  %vm5688_vm3 = vmand %vm5686_vm1, %vm5687_vm2 }
 0x74a   :  { %5539 = vadd.xlane.f32.xlu1 %v5538_v59 }
 0x7d3   :  { %v5540_v7 = vpop.xlane.xlu1 %5539 }
 0x7d4   :  { %v5541_v29 = vmul.f32 0.00390625, %v5540_v7 }
 0x7d6   :  { %v5542_v61 = vadd.f32 1e-05, %v5541_v29 }
 0x7d8   :  { %6312 = vrsqrt.f32 %v5542_v61 }
 0x7e5   :  { %v6313_v39 = vpop.eup %6312 }
 0x7e6   :  { %v5545_v49 = vmul.f32 %v6313_v39, %v6988_v63  ;;  %v5544_v57 = vmul.f32 %v6313_v39, %v6986_v22 }
 0x7e8   :  { %v5558_v62 = vmul.f32 %v5554_v46, %v5545_v49  ;;  %v5557_v52 = vmul.f32 %v5550_v5, %v5544_v57 }
 0x7ea   :  { %v5571_v53 = vadd.f32 %v5567_v60, %v5558_v62  ;;  %v5570_v27 = vadd.f32 %v5563_v31, %v5557_v52 }
 0x7ec   :  { %v5573_v28 = vmax.f32 %v5571_v53, 0.0  ;;  %v5572_v17 = vmax.f32 %v5570_v27, 0.0 }
 0x7ee   :  { %5677 = vmatprep.mubr.f32.mxu0 %v5573_v28 }
 0x7ef   :  { %5678 = vmatmul.mubr.f32.vlgmr.msra.gmra.mxu0 %v5572_v17 }
 0x8af   :  { %v6279_v32 = vpop.f32.mrf.mxu0 }
 0x8b1   :  { %v6280_v37 = vpop.f32.mrf.mxu0 }
 0x8b2   :  { %v6281_v38 = vadd.f32 %v6280_v37, %v6279_v32 }
 0x8b4   :  { %v5680_v26 = vadd.f32 %v6281_v38, %v6246_v55 }
 0x8b6   :  { %v5689_v3 = vsel %vm5685_vm0, %v5680_v26, -1e+30  ;;  %v5699_v45 = vsel %vm5688_vm3, %v5680_v26, 0.0 }
 0x8b7   :  { %5690 = vmax.xlane.f32.xlu0 %v5689_v3  ;;  %v5700_v50 = vmul.f32 1.442695, %v5699_v45 }
 0x940   :  { %v5691_v40 = vpop.xlane.xlu0 %5690 }
 0x941   :  { %v5692_v42 = vsub.f32 %v5689_v3, %v5691_v40 }
 0x943   :  { %v5693_v43 = vmul.f32 1.442695, %v5692_v42 }
 0x945   :  { %6314 = vpow2.f32 %v5693_v43 }
 0x952   :  { %v6315_v44 = vpop.eup %6314 }
 0x953   :  { %5695 = vadd.xlane.f32.xlu1 %v6315_v44 }
 0x9dc   :  { %v5696_v19 = vpop.xlane.xlu1 %5695 }
 0x9dd   :  { %6316 = vrcp.f32 %v5696_v19 }
 0x9de   :  { %6318 = vpow2.f32 %v5700_v50 }
 0x9ea   :  { %v6317_v22 = vpop.eup %6316 }
 0x9eb   :  { %v5698_v63 = vmul.f32 %v6317_v22, %v6315_v44  ;;  %v6319_v48 = vpop.eup %6318 }
 0x9ed   :  { %v5702_v51 = vsel %vm5685_vm0, %v5698_v63, %v5680_v26 }
 0x9ee   :  { %v5703_v59 = vsel %vm5688_vm3, %v6319_v48, %v5702_v51 }
 0x9ef   :  { %5704 = vst [vmem:[#allocation24] sm:$0xff] %v5703_v59 }
 0x9f0   :  { %6592 = shalt.err (!%p6589_p13)
}
 0x9f1   :  { %5714 = dma.vmem_to_hbm [thread:$0]  %s5712_s12, 128, %s7019_s13, [#allocation5]  }
 0x9f2   :  { %6615 = dma.done.wait [#allocation5], 128  }
 0x9f3   :  { %6616 = vsyncadd [#allocation5], 4294967168 }
 0x9f4   :  { %5718 = vsyncpa [#allocation4], 1 }
 0x9f5   :  { %5719 = vsyncpa [#allocation7], 1 }
 0x9f6   :  { %5720 = vsyncpa [#allocation10], 1 }
 0x9f7   :  { %5721 = vsyncpa [#allocation13], 1 }
 0x9f8   :  { %5722 = vsyncpa [#allocation16], 1 }
 0x9f9   :  { %5723 = vsyncpa [#allocation19], 1 }
 0x9fa   :  { %5724 = vsyncpa [#allocation22], 1 }
 0x9fb   :  { %5725 = vsyncpa [#allocation5], 1 }

</bundles_post_ra>
